<compile_context>
chip_gen: v7x
topology: tpu7x:2x2x1
jax: 0.10.0
libtpu: 0.0.40
codegen_flags: <defaults>
</compile_context>

<pallas_src>
import functools

import jax
import jax.numpy as jnp
from jax.experimental import pallas as pl
from jax.experimental.pallas import tpu as pltpu

WEIGHT_BLOCK_BUDGET = 5 * 1024 * 1024      # bytes of bf16 weight per VMEM block
VMEM_LIMIT = 32 * 1024 * 1024              # scoped VMEM cap (safe on v5e/v6e/v7x)


def _round_up(x, m):
    return (x + m - 1) // m * m


def _plan_tc(cin, cout, kk):
    """Adaptive input-channel (reduction) tile so the weight block fits VMEM."""
    if cin <= 128 or kk * cin * cout * 2 <= WEIGHT_BLOCK_BUDGET:
        return cin, cin                                       # untiled
    tc = max(128, (WEIGHT_BLOCK_BUDGET // (2 * kk * cout)) // 128 * 128)
    return tc, _round_up(cin, tc)


# ----------------------------- Pallas kernels ------------------------------

def _conv_kernel(x_ref, w_ref, b_ref, o_ref, *, offsets, mrows, act):
    """Fused conv step: accumulate kh*kw shifted-window matmuls into the f32
    output block (o_ref is the accumulator across the channel-tile grid axis)."""
    kc = pl.program_id(1)

    @pl.when(kc == 0)
    def _init():
        o_ref[...] = jnp.zeros_like(o_ref)

    for t, off in enumerate(offsets):          # static, unrolled tap loop
        xt = x_ref[0, pl.ds(off, mrows), :].astype(jnp.bfloat16)
        o_ref[0] = o_ref[0] + jnp.dot(xt, w_ref[t],
                                      preferred_element_type=jnp.float32)

    @pl.when(kc == pl.num_programs(1) - 1)
    def _finalize():
        y = o_ref[0] + b_ref[...]
        if act == "relu":
            y = jnp.maximum(y, 0.0)
        elif act == "sigmoid":
            y = jax.nn.sigmoid(y)
        o_ref[0] = y


def _maxpool_kernel(a_ref, b_ref, c_ref, d_ref, o_ref):
    o_ref[...] = jnp.maximum(jnp.maximum(a_ref[...], b_ref[...]),
                             jnp.maximum(c_ref[...], d_ref[...]))


# ------------------------------ op wrappers --------------------------------

def _fused_conv(x, w_prep, b_prep, *, kh, kw, pad_h, pad_w, act):
    """y[b,h,w,:] = act(sum_{dy,dx} xpad[b,h+dy,w+dx,:] @ W[dy*kw+dx] + bias).

    x:      (B, H, W, Cin) float32 NHWC
    w_prep: (kh*kw, Cin_padded, Cout) bfloat16   (from prepare_params)
    b_prep: (1, Cout) float32
    """
    B, H, W, C = x.shape
    kk, cin_p, cout = w_prep.shape
    assert kk == kh * kw
    tc, cin_plan = _plan_tc(C, cout, kk)
    assert cin_plan == cin_p, (cin_plan, cin_p)
    nk = cin_p // tc

    Hp = H + pad_h[0] + pad_h[1]
    Wp = W + pad_w[0] + pad_w[1]
    Ho = Hp - kh + 1
    Wo = Wp - kw + 1
    mrows = Ho * Wp                      # output rows (kw-1 junk cols per row)
    L = Hp * Wp
    Lp = L + (kw - 1)                    # keep every tap window in bounds

    xp = x
    if pad_h != (0, 0) or pad_w != (0, 0):
        xp = jnp.pad(xp, ((0, 0), pad_h, pad_w, (0, 0)))
    xf = xp.reshape(B, L, C)
    if Lp > L:
        xf = jnp.pad(xf, ((0, 0), (0, Lp - L), (0, 0)))
    if cin_p > C:
        xf = jnp.pad(xf, ((0, 0), (0, 0), (0, cin_p - C)))

    # tap (dy, dx) -> flat row offset into the padded, flattened image
    offsets = tuple(dy * Wp + dx for dy in range(kh) for dx in range(kw))
    kernel = functools.partial(_conv_kernel, offsets=offsets, mrows=mrows,
                               act=act)

    out = pl.pallas_call(
        kernel,
        out_shape=jax.ShapeDtypeStruct((B, mrows, cout), jnp.float32),
        grid_spec=pltpu.PrefetchScalarGridSpec(
            num_scalar_prefetch=0,
            grid=(B, nk),                                 # reduction axis last
            in_specs=[
                pl.BlockSpec((1, Lp, tc), lambda b, k: (b, 0, k)),
                pl.BlockSpec((kk, tc, cout), lambda b, k: (0, k, 0)),
                pl.BlockSpec((1, cout), lambda b, k: (0, 0)),
            ],
            out_specs=pl.BlockSpec((1, mrows, cout), lambda b, k: (b, 0, 0)),
        ),
        compiler_params=pltpu.CompilerParams(
            dimension_semantics=("parallel", "arbitrary"),
            vmem_limit_bytes=VMEM_LIMIT,
        ),
    )(xf, w_prep, b_prep)

    y = out.reshape(B, Ho, Wp, cout)
    if Wo < Wp:
        y = y[:, :, :Wo, :]              # drop the junk columns
    return y


def conv3x3(x, w_prep, b_prep, act="relu"):
    return _fused_conv(x, w_prep, b_prep, kh=3, kw=3,
                       pad_h=(1, 1), pad_w=(1, 1), act=act)


def conv1x1(x, w_prep, b_prep, act="none"):
    return _fused_conv(x, w_prep, b_prep, kh=1, kw=1,
                       pad_h=(0, 0), pad_w=(0, 0), act=act)


def _uninterleave_phases(y):
    """(B, H, W, 4*C) phase groups (row parity major) -> (B, 2H, 2W, C)."""
    B, H, W, c4 = y.shape
    c = c4 // 4
    y = y.reshape(B, H, W, 2, 2, c)
    y = jnp.transpose(y, (0, 1, 3, 2, 4, 5))
    return y.reshape(B, 2 * H, 2 * W, c)


def conv_transpose_k3s2(x, w_prep, b_prep):
    """ConvTranspose2d(k=3, s=2) via sub-pixel decomposition.
    Emits only the (2H, 2W) top-left region of the (2H+1, 2W+1) output.
    # TODO(synk): the original torch.cat([skip, p], dim=1) would raise because
    # of this k=3,s=2 overshoot; we crop to the skip's spatial size (standard
    # UNet fix), identical to the previous kernel version."""
    y = _fused_conv(x, w_prep, b_prep, kh=2, kw=2,
                    pad_h=(1, 0), pad_w=(1, 0), act="none")
    return _uninterleave_phases(y)


def conv_transpose_k2s2(x, w_prep, b_prep):
    """ConvTranspose2d(k=2, s=2) == 4 pointwise matmuls (exact)."""
    y = _fused_conv(x, w_prep, b_prep, kh=1, kw=1,
                    pad_h=(0, 0), pad_w=(0, 0), act="none")
    return _uninterleave_phases(y)


def maxpool2x2(x):
    """2x2 stride-2 max pool, x: (B, H, W, C) NHWC, tiled Pallas max."""
    B, H, W, C = x.shape
    Ho, Wo = H // 2, W // 2
    a = x[:, 0::2, 0::2, :].reshape(-1, C)
    b = x[:, 0::2, 1::2, :].reshape(-1, C)
    c = x[:, 1::2, 0::2, :].reshape(-1, C)
    d = x[:, 1::2, 1::2, :].reshape(-1, C)
    M = B * Ho * Wo
    tm = min(_round_up(M, 8), 512)
    Mp = _round_up(M, tm)
    if Mp > M:
        padcfg = ((0, Mp - M), (0, 0))
        a, b, c, d = (jnp.pad(t, padcfg) for t in (a, b, c, d))
    spec = pl.BlockSpec((tm, C), lambda i: (i, 0))
    out = pl.pallas_call(
        _maxpool_kernel,
        out_shape=jax.ShapeDtypeStruct((Mp, C), x.dtype),
        grid_spec=pltpu.PrefetchScalarGridSpec(
            num_scalar_prefetch=0, grid=(Mp // tm,),
            in_specs=[spec, spec, spec, spec],
            out_specs=spec),
        compiler_params=pltpu.CompilerParams(
            dimension_semantics=("parallel",),
            vmem_limit_bytes=VMEM_LIMIT),
    )(a, b, c, d)
    return out[:M].reshape(B, Ho, Wo, C)


# -------------------------- weight pre-processing ---------------------------

def _finish_prep(Wm, b, cin, cout_total, kk):
    _, cin_p = _plan_tc(cin, cout_total, kk)
    if cin_p > cin:
        Wm = jnp.pad(Wm, ((0, 0), (0, cin_p - cin), (0, 0)))
    return Wm.astype(jnp.bfloat16), b.reshape(1, -1).astype(jnp.float32)


def _prep_conv3x3(w, b):
    # torch (Cout, Cin, 3, 3) -> (9, Cin_p, Cout), tap order dy-major
    cout, cin = w.shape[0], w.shape[1]
    Wm = jnp.transpose(w, (2, 3, 1, 0)).reshape(9, cin, cout)
    return _finish_prep(Wm, b, cin, cout, 9)


def _prep_conv1x1(w, b):
    cout, cin = w.shape[0], w.shape[1]
    Wm = jnp.transpose(w.reshape(cout, cin), (1, 0))[None]    # (1, Cin, Cout)
    return _finish_prep(Wm, b, cin, cout, 1)


def _prep_convT3(w, b):
    """ConvTranspose2d k=3 s=2 (torch (Cin, Cout, 3, 3)) -> weights of a 2x2
    conv over the top/left-padded input with 4 output phase groups."""
    cin, cout = w.shape[0], w.shape[1]

    def src(par, d):            # original kernel index hit by tap offset d
        if par == 0:
            return 2 - 2 * d
        return 1 if d == 1 else None

    taps = []
    for dy in range(2):
        for dx in range(2):
            groups = []
            for ipar in range(2):
                for jpar in range(2):
                    r, c = src(ipar, dy), src(jpar, dx)
                    if r is None or c is None:
                        groups.append(jnp.zeros((cin, cout), w.dtype))
                    else:
                        groups.append(w[:, :, r, c])
            taps.append(jnp.concatenate(groups, axis=-1))     # (Cin, 4*Cout)
    Wm = jnp.stack(taps, axis=0)                              # (4, Cin, 4*Cout)
    return _finish_prep(Wm, jnp.tile(b, 4), cin, 4 * cout, 4)


def _prep_convT2(w, b):
    """ConvTranspose2d k=2 s=2 (torch (Cin, Cout, 2, 2)) -> one pointwise
    matmul with 4 phase groups (exact sub-pixel decomposition)."""
    cin, cout = w.shape[0], w.shape[1]
    groups = [w[:, :, i, j] for i in range(2) for j in range(2)]
    Wm = jnp.concatenate(groups, axis=-1)[None]               # (1, Cin, 4*Cout)
    return _finish_prep(Wm, jnp.tile(b, 4), cin, 4 * cout, 1)


def prepare_params(p):
    """One-time (outside jit) layout transform + bf16 cast of all weights."""
    q = {}
    for name in ("f1", "f2", "f3", "f4", "f5", "f6", "f7", "f8", "f9"):
        for i in (1, 2):
            q[f"{name}_w{i}"], q[f"{name}_b{i}"] = _prep_conv3x3(
                p[f"{name}_w{i}"], p[f"{name}_b{i}"])
    for name in ("p5", "p6"):
        q[name + "_w"], q[name + "_b"] = _prep_convT3(p[name + "_w"],
                                                      p[name + "_b"])
    for name in ("p7", "p8"):
        q[name + "_w"], q[name + "_b"] = _prep_convT2(p[name + "_w"],
                                                      p[name + "_b"])
    q["p9_w"], q["p9_b"] = _prep_conv1x1(p["p9_w"], p["p9_b"])
    return q


# ------------------------------- parameters --------------------------------

def _conv_params(key, cout, cin, k):
    kw, kb = jax.random.split(key)
    bound = 1.0 / jnp.sqrt(jnp.float32(cin * k * k))
    w = jax.random.uniform(kw, (cout, cin, k, k), jnp.float32, -bound, bound)
    b = jax.random.uniform(kb, (cout,), jnp.float32, -bound, bound)
    return w, b


def _convT_params(key, cin, cout, k):
    kw, kb = jax.random.split(key)
    bound = 1.0 / jnp.sqrt(jnp.float32(cin * k * k))
    w = jax.random.uniform(kw, (cin, cout, k, k), jnp.float32, -bound, bound)
    b = jax.random.uniform(kb, (cout,), jnp.float32, -bound, bound)
    return w, b


def init_params(key):
    p = {}
    blocks = {"f1": (3, 64), "f2": (64, 128), "f3": (128, 256), "f4": (256, 512),
              "f5": (512, 1024), "f6": (1024, 512), "f7": (512, 256),
              "f8": (256, 128), "f9": (128, 64)}
    keys = jax.random.split(key, 32)
    ki = 0
    for name, (cin, cout) in blocks.items():
        p[name + "_w1"], p[name + "_b1"] = _conv_params(keys[ki], cout, cin, 3); ki += 1
        p[name + "_w2"], p[name + "_b2"] = _conv_params(keys[ki], cout, cout, 3); ki += 1
    p["p5_w"], p["p5_b"] = _convT_params(keys[ki], 1024, 512, 3); ki += 1
    p["p6_w"], p["p6_b"] = _convT_params(keys[ki], 512, 256, 3); ki += 1
    p["p7_w"], p["p7_b"] = _convT_params(keys[ki], 256, 128, 2); ki += 1
    p["p8_w"], p["p8_b"] = _convT_params(keys[ki], 128, 64, 2); ki += 1
    p["p9_w"], p["p9_b"] = _conv_params(keys[ki], 3, 64, 1); ki += 1
    return p


# -------------------------------- forward ----------------------------------

def _conv_block(x, params, name):
    x = conv3x3(x, params[name + "_w1"], params[name + "_b1"], act="relu")
    x = conv3x3(x, params[name + "_w2"], params[name + "_b2"], act="relu")
    return x


def scaled_unet_forward(params, x_nchw):
    x = jnp.transpose(x_nchw, (0, 2, 3, 1))          # NCHW -> NHWC
    f1 = _conv_block(x, params, "f1");  p1 = maxpool2x2(f1)
    f2 = _conv_block(p1, params, "f2"); p2 = maxpool2x2(f2)
    f3 = _conv_block(p2, params, "f3"); p3 = maxpool2x2(f3)
    f4 = _conv_block(p3, params, "f4"); p4 = maxpool2x2(f4)
    f5 = _conv_block(p4, params, "f5")

    u5 = conv_transpose_k3s2(f5, params["p5_w"], params["p5_b"])
    f6 = _conv_block(jnp.concatenate([f4, u5], axis=-1), params, "f6")

    u6 = conv_transpose_k3s2(f6, params["p6_w"], params["p6_b"])
    f7 = _conv_block(jnp.concatenate([f3, u6], axis=-1), params, "f7")

    u7 = conv_transpose_k2s2(f7, params["p7_w"], params["p7_b"])
    f8 = _conv_block(jnp.concatenate([f2, u7], axis=-1), params, "f8")

    u8 = conv_transpose_k2s2(f8, params["p8_w"], params["p8_b"])
    f9 = _conv_block(jnp.concatenate([f1, u8], axis=-1), params, "f9")

    out = conv1x1(f9, params["p9_w"], params["p9_b"], act="sigmoid")
    return jnp.transpose(out, (0, 3, 1, 2))          # NHWC -> NCHW


# ------------------------- references & self-tests --------------------------

def _ref_conv(x, w, b, *, padding=0, lhs_dilation=1, act="none"):
    y = jax.lax.conv_general_dilated(
        x.astype(jnp.bfloat16), w.astype(jnp.bfloat16),
        window_strides=(1, 1),
        padding=((padding, padding), (padding, padding)),
        lhs_dilation=(lhs_dilation, lhs_dilation),
        dimension_numbers=("NHWC", "OIHW", "NHWC"),
        preferred_element_type=jnp.float32)
    y = y + b.astype(jnp.float32)
    if act == "relu":
        y = jnp.maximum(y, 0.0)
    elif act == "sigmoid":
        y = jax.nn.sigmoid(y)
    return y


def _ref_conv_transpose(x, w, b, k, s):
    wt = jnp.transpose(w, (1, 0, 2, 3))[:, :, ::-1, ::-1]
    return _ref_conv(x, wt, b, padding=k - 1, lhs_dilation=s)


def _assert_close(a, b, name, tol=2e-2):
    err = float(jnp.max(jnp.abs(a - b)))
    scale = float(jnp.max(jnp.abs(b))) + 1e-6
    assert err <= tol * scale, (name, err, scale)


def _self_test(key):
    ks = jax.random.split(key, 12)

    # 3x3 conv, tiny-K path (Cin=3)
    x = jax.random.normal(ks[0], (2, 16, 16, 3), jnp.float32)
    w, b = _conv_params(ks[1], 64, 3, 3)
    _assert_close(conv3x3(x, *_prep_conv3x3(w, b), act="relu"),
                  _ref_conv(x, w, b, padding=1, act="relu"), "conv3x3_small")

    # 3x3 conv with a tiled channel reduction (Cin=1024 -> 2 reduction tiles)
    x = jax.random.normal(ks[2], (1, 4, 4, 1024), jnp.float32)
    w, b = _conv_params(ks[3], 512, 1024, 3)
    _assert_close(conv3x3(x, *_prep_conv3x3(w, b), act="relu"),
                  _ref_conv(x, w, b, padding=1, act="relu"), "conv3x3_tiled")

    # ConvTranspose2d k=3 s=2 (sub-pixel), compared on the (2H, 2W) crop
    x = jax.random.normal(ks[4], (2, 3, 3, 8), jnp.float32)
    w, b = _convT_params(ks[5], 8, 16, 3)
    _assert_close(conv_transpose_k3s2(x, *_prep_convT3(w, b)),
                  _ref_conv_transpose(x, w, b, 3, 2)[:, :6, :6, :], "convT3")

    # ConvTranspose2d k=2 s=2 (exact)
    x = jax.random.normal(ks[6], (2, 4, 4, 8), jnp.float32)
    w, b = _convT_params(ks[7], 8, 16, 2)
    _assert_close(conv_transpose_k2s2(x, *_prep_convT2(w, b)),
                  _ref_conv_transpose(x, w, b, 2, 2), "convT2")

    # 1x1 conv + sigmoid
    x = jax.random.normal(ks[8], (2, 8, 8, 16), jnp.float32)
    w, b = _conv_params(ks[9], 4, 16, 1)
    _assert_close(conv1x1(x, *_prep_conv1x1(w, b), act="sigmoid"),
                  _ref_conv(x, w, b, padding=0, act="sigmoid"), "conv1x1")

    # 2x2 max pool
    x = jax.random.normal(ks[10], (2, 8, 8, 64), jnp.float32)
    ref = jnp.max(x.reshape(2, 4, 2, 4, 2, 64), axis=(2, 4))
    _assert_close(maxpool2x2(x), ref, "maxpool")


# ---------------------------------- main ------------------------------------

if __name__ == "__main__":
    key = jax.random.PRNGKey(0)
    k_params, k_x, k_test = jax.random.split(key, 3)

    _self_test(k_test)                      # validate kernels vs lax references

    params = init_params(k_params)
    prep = prepare_params(params)           # one-time weight layout / bf16 prep

    # NCHW input, spatial must be divisible by 16 (4 pooling stages).
    x = jax.random.normal(k_x, (2, 3, 16, 16), dtype=jnp.float32)

    fwd = jax.jit(scaled_unet_forward)
    out = jax.block_until_ready(fwd(prep, x))

    assert out.shape == (2, 3, 16, 16), out.shape
    assert out.dtype == jnp.float32
    assert bool(jnp.all(jnp.isfinite(out)))
    assert bool(jnp.all((out >= 0.0) & (out <= 1.0)))   # sigmoid range
    print("KERNEL_OK")
</pallas_src>

<mosaic_0001>
module attributes {stable_mosaic.version = 11 : i64} {
  func.func @_conv_kernel(%arg0: i32, %arg1: i32, %arg2: memref<1x326x3xf32, #tpu.memory_space<vmem>>, %arg3: memref<9x3x64xbf16, #tpu.memory_space<vmem>>, %arg4: memref<1x64xf32, #tpu.memory_space<vmem>>, %arg5: memref<1x288x64xf32, #tpu.memory_space<vmem>>) attributes {dimension_semantics = [#tpu.dimension_semantics<parallel>, #tpu.dimension_semantics<arbitrary>], iteration_bounds = array<i64: 2, 1>, scalar_prefetch = 0 : i64, scratch_operands = 0 : i64, tpu.core_type = #tpu.core_type<tc>, window_params = [{transform_indices = @transform_0, window_bounds = array<i64: 1, 326, 3>}, {transform_indices = @transform_1, window_bounds = array<i64: 9, 3, 64>}, {pipeline_mode = #tpu.pipeline_mode<synchronous>, transform_indices = @transform_2, window_bounds = array<i64: 1, 64>}, {transform_indices = @transform_3, window_bounds = array<i64: 1, 288, 64>}]} {
    %c0_i32 = arith.constant 0 : i32
    %0 = arith.cmpi eq, %arg1, %c0_i32 : i32
    %1 = arith.extui %0 : i1 to i32
    %c0_i32_0 = arith.constant 0 : i32
    %2 = arith.cmpi ne, %1, %c0_i32_0 : i32
    scf.if %2 {
      %cst_104 = arith.constant 0.000000e+00 : f32
      %114 = vector.broadcast %cst_104 : f32 to vector<1x288x64xf32>
      %c0_105 = arith.constant 0 : index
      %c0_106 = arith.constant 0 : index
      %c0_107 = arith.constant 0 : index
      %115 = vector.load %arg5[%c0_105, %c0_106, %c0_107] : memref<1x288x64xf32, #tpu.memory_space<vmem>>, vector<1x288x64xf32>
      tpu.vector_store %arg5[%c0_105, %c0_106, %c0_107], %114 {strides = array<i32>} : memref<1x288x64xf32, #tpu.memory_space<vmem>>, vector<1x288x64xf32>,
    } else {
    }
    %c0 = arith.constant 0 : index
    %c0_1 = arith.constant 0 : index
    %c0_2 = arith.constant 0 : index
    %3 = vector.load %arg2[%c0, %c0_1, %c0_2] : memref<1x326x3xf32, #tpu.memory_space<vmem>>, vector<1x288x3xf32>
    %4 = vector.shape_cast %3 : vector<1x288x3xf32> to vector<288x3xf32>
    %5 = arith.truncf %4 : vector<288x3xf32> to vector<288x3xbf16>
    %c0_3 = arith.constant 0 : index
    %c0_4 = arith.constant 0 : index
    %c0_5 = arith.constant 0 : index
    %6 = vector.load %arg5[%c0_3, %c0_4, %c0_5] : memref<1x288x64xf32, #tpu.memory_space<vmem>>, vector<1x288x64xf32>
    %7 = vector.shape_cast %6 : vector<1x288x64xf32> to vector<288x64xf32>
    %c0_6 = arith.constant 0 : index
    %c0_7 = arith.constant 0 : index
    %c0_8 = arith.constant 0 : index
    %8 = vector.load %arg3[%c0_6, %c0_7, %c0_8] : memref<9x3x64xbf16, #tpu.memory_space<vmem>>, vector<1x3x64xbf16>
    %9 = vector.shape_cast %8 : vector<1x3x64xbf16> to vector<3x64xbf16>
    %cst = arith.constant dense<0.000000e+00> : vector<288x64xf32>
    %10 = tpu.matmul %5, %9, %cst {dimension_numbers = #tpu.dot_dimension_numbers<[1], [0], [0], [1], [0, 0, 1, 1], [], []>} : vector<288x3xbf16>, vector<3x64xbf16>, vector<288x64xf32> -> vector<288x64xf32>
    %11 = arith.addf %7, %10 : vector<288x64xf32>
    %c0_9 = arith.constant 0 : index
    %c0_10 = arith.constant 0 : index
    %c0_11 = arith.constant 0 : index
    %12 = vector.load %arg5[%c0_9, %c0_10, %c0_11] : memref<1x288x64xf32, #tpu.memory_space<vmem>>, vector<1x288x64xf32>
    %13 = vector.shape_cast %12 : vector<1x288x64xf32> to vector<288x64xf32>
    %14 = vector.shape_cast %11 : vector<288x64xf32> to vector<1x288x64xf32>
    tpu.vector_store %arg5[%c0_9, %c0_10, %c0_11], %14 {strides = array<i32>} : memref<1x288x64xf32, #tpu.memory_space<vmem>>, vector<1x288x64xf32>,
    %c0_12 = arith.constant 0 : index
    %c1 = arith.constant 1 : index
    %c0_13 = arith.constant 0 : index
    %15 = vector.load %arg2[%c0_12, %c1, %c0_13] : memref<1x326x3xf32, #tpu.memory_space<vmem>>, vector<1x288x3xf32>
    %16 = vector.shape_cast %15 : vector<1x288x3xf32> to vector<288x3xf32>
    %17 = arith.truncf %16 : vector<288x3xf32> to vector<288x3xbf16>
    %c0_14 = arith.constant 0 : index
    %c0_15 = arith.constant 0 : index
    %c0_16 = arith.constant 0 : index
    %18 = vector.load %arg5[%c0_14, %c0_15, %c0_16] : memref<1x288x64xf32, #tpu.memory_space<vmem>>, vector<1x288x64xf32>
    %19 = vector.shape_cast %18 : vector<1x288x64xf32> to vector<288x64xf32>
    %c1_17 = arith.constant 1 : index
    %c0_18 = arith.constant 0 : index
    %c0_19 = arith.constant 0 : index
    %20 = vector.load %arg3[%c1_17, %c0_18, %c0_19] : memref<9x3x64xbf16, #tpu.memory_space<vmem>>, vector<1x3x64xbf16>
    %21 = vector.shape_cast %20 : vector<1x3x64xbf16> to vector<3x64xbf16>
    %cst_20 = arith.constant dense<0.000000e+00> : vector<288x64xf32>
    %22 = tpu.matmul %17, %21, %cst_20 {dimension_numbers = #tpu.dot_dimension_numbers<[1], [0], [0], [1], [0, 0, 1, 1], [], []>} : vector<288x3xbf16>, vector<3x64xbf16>, vector<288x64xf32> -> vector<288x64xf32>
    %23 = arith.addf %19, %22 : vector<288x64xf32>
    %c0_21 = arith.constant 0 : index
    %c0_22 = arith.constant 0 : index
    %c0_23 = arith.constant 0 : index
    %24 = vector.load %arg5[%c0_21, %c0_22, %c0_23] : memref<1x288x64xf32, #tpu.memory_space<vmem>>, vector<1x288x64xf32>
    %25 = vector.shape_cast %24 : vector<1x288x64xf32> to vector<288x64xf32>
    %26 = vector.shape_cast %23 : vector<288x64xf32> to vector<1x288x64xf32>
    tpu.vector_store %arg5[%c0_21, %c0_22, %c0_23], %26 {strides = array<i32>} : memref<1x288x64xf32, #tpu.memory_space<vmem>>, vector<1x288x64xf32>,
    %c0_24 = arith.constant 0 : index
    %c2 = arith.constant 2 : index
    %c0_25 = arith.constant 0 : index
    %27 = vector.load %arg2[%c0_24, %c2, %c0_25] : memref<1x326x3xf32, #tpu.memory_space<vmem>>, vector<1x288x3xf32>
    %28 = vector.shape_cast %27 : vector<1x288x3xf32> to vector<288x3xf32>
    %29 = arith.truncf %28 : vector<288x3xf32> to vector<288x3xbf16>
    %c0_26 = arith.constant 0 : index
    %c0_27 = arith.constant 0 : index
    %c0_28 = arith.constant 0 : index
    %30 = vector.load %arg5[%c0_26, %c0_27, %c0_28] : memref<1x288x64xf32, #tpu.memory_space<vmem>>, vector<1x288x64xf32>
    %31 = vector.shape_cast %30 : vector<1x288x64xf32> to vector<288x64xf32>
    %c2_29 = arith.constant 2 : index
    %c0_30 = arith.constant 0 : index
    %c0_31 = arith.constant 0 : index
    %32 = vector.load %arg3[%c2_29, %c0_30, %c0_31] : memref<9x3x64xbf16, #tpu.memory_space<vmem>>, vector<1x3x64xbf16>
    %33 = vector.shape_cast %32 : vector<1x3x64xbf16> to vector<3x64xbf16>
    %cst_32 = arith.constant dense<0.000000e+00> : vector<288x64xf32>
    %34 = tpu.matmul %29, %33, %cst_32 {dimension_numbers = #tpu.dot_dimension_numbers<[1], [0], [0], [1], [0, 0, 1, 1], [], []>} : vector<288x3xbf16>, vector<3x64xbf16>, vector<288x64xf32> -> vector<288x64xf32>
    %35 = arith.addf %31, %34 : vector<288x64xf32>
    %c0_33 = arith.constant 0 : index
    %c0_34 = arith.constant 0 : index
    %c0_35 = arith.constant 0 : index
    %36 = vector.load %arg5[%c0_33, %c0_34, %c0_35] : memref<1x288x64xf32, #tpu.memory_space<vmem>>, vector<1x288x64xf32>
    %37 = vector.shape_cast %36 : vector<1x288x64xf32> to vector<288x64xf32>
    %38 = vector.shape_cast %35 : vector<288x64xf32> to vector<1x288x64xf32>
    tpu.vector_store %arg5[%c0_33, %c0_34, %c0_35], %38 {strides = array<i32>} : memref<1x288x64xf32, #tpu.memory_space<vmem>>, vector<1x288x64xf32>,
    %c0_36 = arith.constant 0 : index
    %c18 = arith.constant 18 : index
    %c0_37 = arith.constant 0 : index
    %39 = vector.load %arg2[%c0_36, %c18, %c0_37] : memref<1x326x3xf32, #tpu.memory_space<vmem>>, vector<1x288x3xf32>
    %40 = vector.shape_cast %39 : vector<1x288x3xf32> to vector<288x3xf32>
    %41 = arith.truncf %40 : vector<288x3xf32> to vector<288x3xbf16>
    %c0_38 = arith.constant 0 : index
    %c0_39 = arith.constant 0 : index
    %c0_40 = arith.constant 0 : index
    %42 = vector.load %arg5[%c0_38, %c0_39, %c0_40] : memref<1x288x64xf32, #tpu.memory_space<vmem>>, vector<1x288x64xf32>
    %43 = vector.shape_cast %42 : vector<1x288x64xf32> to vector<288x64xf32>
    %c3 = arith.constant 3 : index
    %c0_41 = arith.constant 0 : index
    %c0_42 = arith.constant 0 : index
    %44 = vector.load %arg3[%c3, %c0_41, %c0_42] : memref<9x3x64xbf16, #tpu.memory_space<vmem>>, vector<1x3x64xbf16>
    %45 = vector.shape_cast %44 : vector<1x3x64xbf16> to vector<3x64xbf16>
    %cst_43 = arith.constant dense<0.000000e+00> : vector<288x64xf32>
    %46 = tpu.matmul %41, %45, %cst_43 {dimension_numbers = #tpu.dot_dimension_numbers<[1], [0], [0], [1], [0, 0, 1, 1], [], []>} : vector<288x3xbf16>, vector<3x64xbf16>, vector<288x64xf32> -> vector<288x64xf32>
    %47 = arith.addf %43, %46 : vector<288x64xf32>
    %c0_44 = arith.constant 0 : index
    %c0_45 = arith.constant 0 : index
    %c0_46 = arith.constant 0 : index
    %48 = vector.load %arg5[%c0_44, %c0_45, %c0_46] : memref<1x288x64xf32, #tpu.memory_space<vmem>>, vector<1x288x64xf32>
    %49 = vector.shape_cast %48 : vector<1x288x64xf32> to vector<288x64xf32>
    %50 = vector.shape_cast %47 : vector<288x64xf32> to vector<1x288x64xf32>
    tpu.vector_store %arg5[%c0_44, %c0_45, %c0_46], %50 {strides = array<i32>} : memref<1x288x64xf32, #tpu.memory_space<vmem>>, vector<1x288x64xf32>,
    %c0_47 = arith.constant 0 : index
    %c19 = arith.constant 19 : index
    %c0_48 = arith.constant 0 : index
    %51 = vector.load %arg2[%c0_47, %c19, %c0_48] : memref<1x326x3xf32, #tpu.memory_space<vmem>>, vector<1x288x3xf32>
    %52 = vector.shape_cast %51 : vector<1x288x3xf32> to vector<288x3xf32>
    %53 = arith.truncf %52 : vector<288x3xf32> to vector<288x3xbf16>
    %c0_49 = arith.constant 0 : index
    %c0_50 = arith.constant 0 : index
    %c0_51 = arith.constant 0 : index
    %54 = vector.load %arg5[%c0_49, %c0_50, %c0_51] : memref<1x288x64xf32, #tpu.memory_space<vmem>>, vector<1x288x64xf32>
    %55 = vector.shape_cast %54 : vector<1x288x64xf32> to vector<288x64xf32>
    %c4 = arith.constant 4 : index
    %c0_52 = arith.constant 0 : index
    %c0_53 = arith.constant 0 : index
    %56 = vector.load %arg3[%c4, %c0_52, %c0_53] : memref<9x3x64xbf16, #tpu.memory_space<vmem>>, vector<1x3x64xbf16>
    %57 = vector.shape_cast %56 : vector<1x3x64xbf16> to vector<3x64xbf16>
    %cst_54 = arith.constant dense<0.000000e+00> : vector<288x64xf32>
    %58 = tpu.matmul %53, %57, %cst_54 {dimension_numbers = #tpu.dot_dimension_numbers<[1], [0], [0], [1], [0, 0, 1, 1], [], []>} : vector<288x3xbf16>, vector<3x64xbf16>, vector<288x64xf32> -> vector<288x64xf32>
    %59 = arith.addf %55, %58 : vector<288x64xf32>
    %c0_55 = arith.constant 0 : index
    %c0_56 = arith.constant 0 : index
    %c0_57 = arith.constant 0 : index
    %60 = vector.load %arg5[%c0_55, %c0_56, %c0_57] : memref<1x288x64xf32, #tpu.memory_space<vmem>>, vector<1x288x64xf32>
    %61 = vector.shape_cast %60 : vector<1x288x64xf32> to vector<288x64xf32>
    %62 = vector.shape_cast %59 : vector<288x64xf32> to vector<1x288x64xf32>
    tpu.vector_store %arg5[%c0_55, %c0_56, %c0_57], %62 {strides = array<i32>} : memref<1x288x64xf32, #tpu.memory_space<vmem>>, vector<1x288x64xf32>,
    %c0_58 = arith.constant 0 : index
    %c20 = arith.constant 20 : index
    %c0_59 = arith.constant 0 : index
    %63 = vector.load %arg2[%c0_58, %c20, %c0_59] : memref<1x326x3xf32, #tpu.memory_space<vmem>>, vector<1x288x3xf32>
    %64 = vector.shape_cast %63 : vector<1x288x3xf32> to vector<288x3xf32>
    %65 = arith.truncf %64 : vector<288x3xf32> to vector<288x3xbf16>
    %c0_60 = arith.constant 0 : index
    %c0_61 = arith.constant 0 : index
    %c0_62 = arith.constant 0 : index
    %66 = vector.load %arg5[%c0_60, %c0_61, %c0_62] : memref<1x288x64xf32, #tpu.memory_space<vmem>>, vector<1x288x64xf32>
    %67 = vector.shape_cast %66 : vector<1x288x64xf32> to vector<288x64xf32>
    %c5 = arith.constant 5 : index
    %c0_63 = arith.constant 0 : index
    %c0_64 = arith.constant 0 : index
    %68 = vector.load %arg3[%c5, %c0_63, %c0_64] : memref<9x3x64xbf16, #tpu.memory_space<vmem>>, vector<1x3x64xbf16>
    %69 = vector.shape_cast %68 : vector<1x3x64xbf16> to vector<3x64xbf16>
    %cst_65 = arith.constant dense<0.000000e+00> : vector<288x64xf32>
    %70 = tpu.matmul %65, %69, %cst_65 {dimension_numbers = #tpu.dot_dimension_numbers<[1], [0], [0], [1], [0, 0, 1, 1], [], []>} : vector<288x3xbf16>, vector<3x64xbf16>, vector<288x64xf32> -> vector<288x64xf32>
    %71 = arith.addf %67, %70 : vector<288x64xf32>
    %c0_66 = arith.constant 0 : index
    %c0_67 = arith.constant 0 : index
    %c0_68 = arith.constant 0 : index
    %72 = vector.load %arg5[%c0_66, %c0_67, %c0_68] : memref<1x288x64xf32, #tpu.memory_space<vmem>>, vector<1x288x64xf32>
    %73 = vector.shape_cast %72 : vector<1x288x64xf32> to vector<288x64xf32>
    %74 = vector.shape_cast %71 : vector<288x64xf32> to vector<1x288x64xf32>
    tpu.vector_store %arg5[%c0_66, %c0_67, %c0_68], %74 {strides = array<i32>} : memref<1x288x64xf32, #tpu.memory_space<vmem>>, vector<1x288x64xf32>,
    %c0_69 = arith.constant 0 : index
    %c36 = arith.constant 36 : index
    %c0_70 = arith.constant 0 : index
    %75 = vector.load %arg2[%c0_69, %c36, %c0_70] : memref<1x326x3xf32, #tpu.memory_space<vmem>>, vector<1x288x3xf32>
    %76 = vector.shape_cast %75 : vector<1x288x3xf32> to vector<288x3xf32>
    %77 = arith.truncf %76 : vector<288x3xf32> to vector<288x3xbf16>
    %c0_71 = arith.constant 0 : index
    %c0_72 = arith.constant 0 : index
    %c0_73 = arith.constant 0 : index
    %78 = vector.load %arg5[%c0_71, %c0_72, %c0_73] : memref<1x288x64xf32, #tpu.memory_space<vmem>>, vector<1x288x64xf32>
    %79 = vector.shape_cast %78 : vector<1x288x64xf32> to vector<288x64xf32>
    %c6 = arith.constant 6 : index
    %c0_74 = arith.constant 0 : index
    %c0_75 = arith.constant 0 : index
    %80 = vector.load %arg3[%c6, %c0_74, %c0_75] : memref<9x3x64xbf16, #tpu.memory_space<vmem>>, vector<1x3x64xbf16>
    %81 = vector.shape_cast %80 : vector<1x3x64xbf16> to vector<3x64xbf16>
    %cst_76 = arith.constant dense<0.000000e+00> : vector<288x64xf32>
    %82 = tpu.matmul %77, %81, %cst_76 {dimension_numbers = #tpu.dot_dimension_numbers<[1], [0], [0], [1], [0, 0, 1, 1], [], []>} : vector<288x3xbf16>, vector<3x64xbf16>, vector<288x64xf32> -> vector<288x64xf32>
    %83 = arith.addf %79, %82 : vector<288x64xf32>
    %c0_77 = arith.constant 0 : index
    %c0_78 = arith.constant 0 : index
    %c0_79 = arith.constant 0 : index
    %84 = vector.load %arg5[%c0_77, %c0_78, %c0_79] : memref<1x288x64xf32, #tpu.memory_space<vmem>>, vector<1x288x64xf32>
    %85 = vector.shape_cast %84 : vector<1x288x64xf32> to vector<288x64xf32>
    %86 = vector.shape_cast %83 : vector<288x64xf32> to vector<1x288x64xf32>
    tpu.vector_store %arg5[%c0_77, %c0_78, %c0_79], %86 {strides = array<i32>} : memref<1x288x64xf32, #tpu.memory_space<vmem>>, vector<1x288x64xf32>,
    %c0_80 = arith.constant 0 : index
    %c37 = arith.constant 37 : index
    %c0_81 = arith.constant 0 : index
    %87 = vector.load %arg2[%c0_80, %c37, %c0_81] : memref<1x326x3xf32, #tpu.memory_space<vmem>>, vector<1x288x3xf32>
    %88 = vector.shape_cast %87 : vector<1x288x3xf32> to vector<288x3xf32>
    %89 = arith.truncf %88 : vector<288x3xf32> to vector<288x3xbf16>
    %c0_82 = arith.constant 0 : index
    %c0_83 = arith.constant 0 : index
    %c0_84 = arith.constant 0 : index
    %90 = vector.load %arg5[%c0_82, %c0_83, %c0_84] : memref<1x288x64xf32, #tpu.memory_space<vmem>>, vector<1x288x64xf32>
    %91 = vector.shape_cast %90 : vector<1x288x64xf32> to vector<288x64xf32>
    %c7 = arith.constant 7 : index
    %c0_85 = arith.constant 0 : index
    %c0_86 = arith.constant 0 : index
    %92 = vector.load %arg3[%c7, %c0_85, %c0_86] : memref<9x3x64xbf16, #tpu.memory_space<vmem>>, vector<1x3x64xbf16>
    %93 = vector.shape_cast %92 : vector<1x3x64xbf16> to vector<3x64xbf16>
    %cst_87 = arith.constant dense<0.000000e+00> : vector<288x64xf32>
    %94 = tpu.matmul %89, %93, %cst_87 {dimension_numbers = #tpu.dot_dimension_numbers<[1], [0], [0], [1], [0, 0, 1, 1], [], []>} : vector<288x3xbf16>, vector<3x64xbf16>, vector<288x64xf32> -> vector<288x64xf32>
    %95 = arith.addf %91, %94 : vector<288x64xf32>
    %c0_88 = arith.constant 0 : index
    %c0_89 = arith.constant 0 : index
    %c0_90 = arith.constant 0 : index
    %96 = vector.load %arg5[%c0_88, %c0_89, %c0_90] : memref<1x288x64xf32, #tpu.memory_space<vmem>>, vector<1x288x64xf32>
    %97 = vector.shape_cast %96 : vector<1x288x64xf32> to vector<288x64xf32>
    %98 = vector.shape_cast %95 : vector<288x64xf32> to vector<1x288x64xf32>
    tpu.vector_store %arg5[%c0_88, %c0_89, %c0_90], %98 {strides = array<i32>} : memref<1x288x64xf32, #tpu.memory_space<vmem>>, vector<1x288x64xf32>,
    %c0_91 = arith.constant 0 : index
    %c38 = arith.constant 38 : index
    %c0_92 = arith.constant 0 : index
    %99 = vector.load %arg2[%c0_91, %c38, %c0_92] : memref<1x326x3xf32, #tpu.memory_space<vmem>>, vector<1x288x3xf32>
    %100 = vector.shape_cast %99 : vector<1x288x3xf32> to vector<288x3xf32>
    %101 = arith.truncf %100 : vector<288x3xf32> to vector<288x3xbf16>
    %c0_93 = arith.constant 0 : index
    %c0_94 = arith.constant 0 : index
    %c0_95 = arith.constant 0 : index
    %102 = vector.load %arg5[%c0_93, %c0_94, %c0_95] : memref<1x288x64xf32, #tpu.memory_space<vmem>>, vector<1x288x64xf32>
    %103 = vector.shape_cast %102 : vector<1x288x64xf32> to vector<288x64xf32>
    %c8 = arith.constant 8 : index
    %c0_96 = arith.constant 0 : index
    %c0_97 = arith.constant 0 : index
    %104 = vector.load %arg3[%c8, %c0_96, %c0_97] : memref<9x3x64xbf16, #tpu.memory_space<vmem>>, vector<1x3x64xbf16>
    %105 = vector.shape_cast %104 : vector<1x3x64xbf16> to vector<3x64xbf16>
    %cst_98 = arith.constant dense<0.000000e+00> : vector<288x64xf32>
    %106 = tpu.matmul %101, %105, %cst_98 {dimension_numbers = #tpu.dot_dimension_numbers<[1], [0], [0], [1], [0, 0, 1, 1], [], []>} : vector<288x3xbf16>, vector<3x64xbf16>, vector<288x64xf32> -> vector<288x64xf32>
    %107 = arith.addf %103, %106 : vector<288x64xf32>
    %c0_99 = arith.constant 0 : index
    %c0_100 = arith.constant 0 : index
    %c0_101 = arith.constant 0 : index
    %108 = vector.load %arg5[%c0_99, %c0_100, %c0_101] : memref<1x288x64xf32, #tpu.memory_space<vmem>>, vector<1x288x64xf32>
    %109 = vector.shape_cast %108 : vector<1x288x64xf32> to vector<288x64xf32>
    %110 = vector.shape_cast %107 : vector<288x64xf32> to vector<1x288x64xf32>
    tpu.vector_store %arg5[%c0_99, %c0_100, %c0_101], %110 {strides = array<i32>} : memref<1x288x64xf32, #tpu.memory_space<vmem>>, vector<1x288x64xf32>,
    %c0_i32_102 = arith.constant 0 : i32
    %111 = arith.cmpi eq, %arg1, %c0_i32_102 : i32
    %112 = arith.extui %111 : i1 to i32
    %c0_i32_103 = arith.constant 0 : i32
    %113 = arith.cmpi ne, %112, %c0_i32_103 : i32
    scf.if %113 {
      %c0_104 = arith.constant 0 : index
      %c0_105 = arith.constant 0 : index
      %c0_106 = arith.constant 0 : index
      %114 = vector.load %arg5[%c0_104, %c0_105, %c0_106] : memref<1x288x64xf32, #tpu.memory_space<vmem>>, vector<1x288x64xf32>
      %115 = vector.shape_cast %114 : vector<1x288x64xf32> to vector<288x64xf32>
      %c0_107 = arith.constant 0 : index
      %c0_108 = arith.constant 0 : index
      %116 = vector.load %arg4[%c0_107, %c0_108] : memref<1x64xf32, #tpu.memory_space<vmem>>, vector<1x64xf32>
      %117 = vector.broadcast %116 : vector<1x64xf32> to vector<288x64xf32>
      %118 = arith.addf %115, %117 : vector<288x64xf32>
      %cst_109 = arith.constant 0.000000e+00 : f32
      %119 = vector.broadcast %cst_109 : f32 to vector<288x64xf32>
      %120 = arith.maximumf %118, %119 : vector<288x64xf32>
      %c0_110 = arith.constant 0 : index
      %c0_111 = arith.constant 0 : index
      %c0_112 = arith.constant 0 : index
      %121 = vector.load %arg5[%c0_110, %c0_111, %c0_112] : memref<1x288x64xf32, #tpu.memory_space<vmem>>, vector<1x288x64xf32>
      %122 = vector.shape_cast %121 : vector<1x288x64xf32> to vector<288x64xf32>
      %123 = vector.shape_cast %120 : vector<288x64xf32> to vector<1x288x64xf32>
      tpu.vector_store %arg5[%c0_110, %c0_111, %c0_112], %123 {strides = array<i32>} : memref<1x288x64xf32, #tpu.memory_space<vmem>>, vector<1x288x64xf32>,
    } else {
    }
    return
  }
  func.func @transform_0(%arg0: i32, %arg1: i32) -> (i32, i32, i32) {
    %c0_i32 = arith.constant 0 : i32
    %c0_i32_0 = arith.constant 0 : i32
    return %arg0, %c0_i32, %arg1 : i32, i32, i32
  }
  func.func @transform_1(%arg0: i32, %arg1: i32) -> (i32, i32, i32) {
    %c0_i32 = arith.constant 0 : i32
    %c0_i32_0 = arith.constant 0 : i32
    %c0_i32_1 = arith.constant 0 : i32
    return %c0_i32, %arg1, %c0_i32_0 : i32, i32, i32
  }
  func.func @transform_2(%arg0: i32, %arg1: i32) -> (i32, i32) {
    %c0_i32 = arith.constant 0 : i32
    %c0_i32_0 = arith.constant 0 : i32
    %c0_i32_1 = arith.constant 0 : i32
    return %c0_i32, %c0_i32_0 : i32, i32
  }
  func.func @transform_3(%arg0: i32, %arg1: i32) -> (i32, i32, i32) {
    %c0_i32 = arith.constant 0 : i32
    %c0_i32_0 = arith.constant 0 : i32
    %c0_i32_1 = arith.constant 0 : i32
    return %arg0, %c0_i32, %c0_i32_0 : i32, i32, i32
  }
}

</mosaic_0001>

<bundles_post_ra>
// kernel: tpu_custom_call.1
= control target key start
LH: loop header
LB: loop body
LE: loop exit
PB: predicated region body
PF: predicated region fallthrough
CT: control target
= control target key end

     0   :  { %s4849_s12 = smov 0   ;;  %s4851_s13 = smov 0   ;;  %s6631_s0 = inlined_call_operand.vmem [shape: f32[2,326,3], index: 0, kind: input, shape index: {}]   ;;  %s6632_s1 = inlined_call_operand.vmem [shape: bf16[9,3,64], index: 1, kind: input, shape index: {}]   ;;  %s6633_s2 = inlined_call_operand.vmem [shape: f32[1,64], index: 2, kind: input, shape index: {}]   ;;  %s6634_s3 = inlined_call_operand.vmem [shape: f32[2,288,64], index: 3, kind: output, shape index: {}]  }
   0x1   :  { %s4853_s14 = smov 0  }
   0x2 LB: > { %s25_s15 = sadd.s32 1, %s4821_s13  ;;  %p4084_p0 = scmp.ge.s32.totalorder %s4825_s14, 1  ;;  %s4825_s14 = sphi %s4853_s14, %s13_s14   ;;  %s4821_s13 = sphi %s4851_s13, %s6636_s13   ;;  %s4817_s12 = sphi %s4849_s12, %s6635_s12  }
   0x3   : > { %p27_p1 = scmp.ge.s32.totalorder %s25_s15, 2  ;;  %p163_p2 = scmp.lt.s32.totalorder %s4825_s14, 3 }
   0x5   : > { %s6638_s15 = smov (%p27_p1, %s25_s15), 0  ;;  %p164_p3 = pnand %p4084_p0, %p163_p2 }
   0x6   : > { %v343_v0 = vld [vmem:[%s6632_s1] sm:$0x3] (!%p164_p3)  ;;  %vm399_vm0 = vcmask (!%p164_p3), 1040384   ;;  %vm400_vm1 = vcmask (!%p164_p3), 1041408   ;;  %p194_p4 = scmp.lt.s32.totalorder (!%p164_p3), %s4817_s12, 1  ;;  %v4827_v1 = vmov (!%p164_p3), 65535  }
   0x7   : > { %167 = sbr.rel (%p164_p3) target bundleno = 575 (0x23f), region = 32  ;;  %v401_v2 = vsel (!%p164_p3), %vm399_vm0, 4294967295, %v4827_v1  ;;  %v4105_v3 = vld [vmem:[%s6632_s1 + $0x2] sm:$0x3] (!%p164_p3)  ;;  %v4124_v4 = vld [vmem:[%s6632_s1 + $0x4] sm:$0x3] (!%p164_p3) }
   0x8   : > { %v4876_v5 = vsel (!%p164_p3), %vm400_vm1, %v401_v2, 0  ;;  %v4143_v9 = vld [vmem:[%s6632_s1 + $0x6] sm:$0x3] (!%p164_p3)  ;;  %v4162_v10 = vld [vmem:[%s6632_s1 + $0x8] sm:$0x3] (!%p164_p3)  ;;  %vm344_vm2 = vcmask (!%p164_p3), 23552  }
   0x9   : > { %v404_v6 = vand.u32 (!%p164_p3), %v4876_v5, %v343_v0  ;;  %v803_v7 = vand.u32 (!%p164_p3), %v4105_v3, %v4876_v5  ;;  %v1201_v8 = vand.u32 (!%p164_p3), %v4124_v4, %v4876_v5  ;;  %v4909_v27 = vand.u32 (!%p164_p3), %v4143_v9, %v4876_v5 }
   0xa   : > { %v4914_v30 = vand.u32 (!%p164_p3), %v4162_v10, %v4876_v5  ;;  %vm216_vm3 = vcmask (!%p164_p3), 523264  }
   0xb   : > { %4773 = vmatprep.subr.bf16.mxu1 (!%p164_p3), %v404_v6  ;;  %4431 = vmatprep.subr.bf16.mxu0 (!%p164_p3), %v404_v6 }
   0xc   : > { %4774 = vmatpush3.bf16.msra.mxu1 (!%p164_p3), %v404_v6  ;;  %4432 = vmatpush3.bf16.msra.mxu0 (!%p164_p3), %v404_v6 }
   0xd   : > { %4469 = vmatprep.subr.bf16.mxu1 (!%p164_p3), %v803_v7  ;;  %4507 = vmatprep.subr.bf16.mxu0 (!%p164_p3), %v1201_v8 }
   0xe   : > { %s6640_s12 = smov (!%p194_p4, %s4817_s12), 1 }
   0xf   : > { %s4775_s22 = smul.u32 328, %s6640_s12 }
  0x10   : > { %s4776_s7 = smul.u32 288, %s6640_s12 }
  0x11   : > { %s4887_s25 = scalar_lea.vmem %s6631_s0, %s4775_s22 }
  0x12   : > { %v253_v11 = vld [vmem:[%s4887_s25] sm:$0xff]  ;;  %v254_v12 = vld [vmem:[%s4887_s25 + $0x8] sm:$0xff]  ;;  %v255_v16 = vld [vmem:[%s4887_s25 + $0x10] sm:$0xff]  ;;  %s5081_s10 = scalar_lea.vmem %s6634_s3, %s4776_s7 }
  0x13   : > { %v273_v13 = vld [vmem:[%s4887_s25 + $0xa0] sm:$0xff]  ;;  %v289_v14 = vpack.c.bf16 %v254_v12, %v253_v11  ;;  %v274_v15 = vld [vmem:[%s4887_s25 + $0xa8] sm:$0xff]  ;;  %v256_v17 = vld [vmem:[%s4887_s25 + $0x18] sm:$0xff] }
  0x14   : > { %v299_v18 = vpack.c.bf16 %v274_v15, %v273_v13  ;;  %v290_v19 = vpack.c.bf16 %v256_v17, %v255_v16  ;;  %v275_v20 = vld [vmem:[%s4887_s25 + $0xb0] sm:$0xff]  ;;  %v276_v21 = vld [vmem:[%s4887_s25 + $0xb8] sm:$0xff]  ;;  %v257_v22 = vld [vmem:[%s4887_s25 + $0x20] sm:$0xff] }
  0x15   : > { %4433 = vmatprep.mubr.msk.bf16.mxu0 %vm344_vm2, %v289_v14  ;;  %v300_v23 = vpack.c.bf16 %v276_v21, %v275_v20  ;;  %v258_v24 = vld [vmem:[%s4887_s25 + $0x28] sm:$0xff]  ;;  %v277_v25 = vld [vmem:[%s4887_s25 + $0xc0] sm:$0xff]  ;;  %v259_v31 = vld [vmem:[%s4887_s25 + $0x30] sm:$0xff] }
  0x16   : > { %v278_v26 = vld [vmem:[%s4887_s25 + $0xc8] sm:$0xff]  ;;  %4453 = vmatprep.mubr.msk.bf16.mxu1 %vm344_vm2, %v299_v18  ;;  %4434 = vmatmul.mubr.msk.bf16.vlgmr.msra.gmra.mrb[0].mxu0 %vm344_vm2, %v290_v19  ;;  %v291_v28 = vpack.c.bf16 %v258_v24, %v257_v22  ;;  %v260_v32 = vld [vmem:[%s4887_s25 + $0x38] sm:$0xff]  ;;  %v279_v33 = vld [vmem:[%s4887_s25 + $0xd0] sm:$0xff] }
  0x17   : > { %v301_v29 = vpack.c.bf16 %v278_v26, %v277_v25  ;;  %4454 = vmatmul.mubr.msk.bf16.vlgmr.msra.gmra.mrb[0].mxu1 %vm344_vm2, %v300_v23  ;;  %4508 = vmatpush3.bf16.msra.mxu0 %v1201_v8  ;;  %v280_v34 = vld [vmem:[%s4887_s25 + $0xd8] sm:$0xff]  ;;  %v261_v35 = vld [vmem:[%s4887_s25 + $0x40] sm:$0xff]  ;;  %v262_v36 = vld [vmem:[%s4887_s25 + $0x48] sm:$0xff]  ;;  %v292_v39 = vpack.c.bf16 %v260_v32, %v259_v31 }
  0x18   : > { %4470 = vmatpush3.bf16.msra.mxu1 %v803_v7  ;;  %4437 = vmatprep.mubr.msk.bf16.mxu0 %vm344_vm2, %v291_v28  ;;  %v281_v37 = vld [vmem:[%s4887_s25 + $0xe0] sm:$0xff]  ;;  %v282_v38 = vld [vmem:[%s4887_s25 + $0xe8] sm:$0xff]  ;;  %v302_v40 = vpack.c.bf16 %v280_v34, %v279_v33  ;;  %v293_v41 = vpack.c.bf16 %v262_v36, %v261_v35  ;;  %v263_v43 = vld [vmem:[%s4887_s25 + $0x50] sm:$0xff] }
  0x19   : > { %4457 = vmatprep.mubr.msk.bf16.mxu1 %vm344_vm2, %v301_v29  ;;  %4545 = vmatprep.subr.bf16.mxu1 %v4909_v27  ;;  %v303_v42 = vpack.c.bf16 %v282_v38, %v281_v37  ;;  %v264_v44 = vld [vmem:[%s4887_s25 + $0x58] sm:$0xff]  ;;  %v283_v45 = vld [vmem:[%s4887_s25 + $0xf0] sm:$0xff]  ;;  %v265_v47 = vld [vmem:[%s4887_s25 + $0x60] sm:$0xff] }
  0x1a   : > { %4583 = vmatprep.subr.bf16.mxu0 %v4914_v30  ;;  %v284_v46 = vld [vmem:[%s4887_s25 + $0xf8] sm:$0xff]  ;;  %v266_v48 = vld [vmem:[%s4887_s25 + $0x68] sm:$0xff]  ;;  %v285_v49 = vld [vmem:[%s4887_s25 + $0x100] sm:$0xff]  ;;  %v294_v51 = vpack.c.bf16 %v264_v44, %v263_v43 }
  0x1b   : > { %v286_v50 = vld [vmem:[%s4887_s25 + $0x108] sm:$0xff]  ;;  %v304_v52 = vpack.c.bf16 %v284_v46, %v283_v45  ;;  %v295_v53 = vpack.c.bf16 %v266_v48, %v265_v47  ;;  %v267_v55 = vld [vmem:[%s4887_s25 + $0x70] sm:$0xff]  ;;  %v268_v56 = vld [vmem:[%s4887_s25 + $0x78] sm:$0xff] }
  0x1c   : > { %v305_v54 = vpack.c.bf16 %v286_v50, %v285_v49  ;;  %v287_v57 = vld [vmem:[%s4887_s25 + $0x110] sm:$0xff]  ;;  %v288_v58 = vld [vmem:[%s4887_s25 + $0x118] sm:$0xff]  ;;  %v269_v59 = vld [vmem:[%s4887_s25 + $0x80] sm:$0xff]  ;;  %v296_v63 = vpack.c.bf16 %v268_v56, %v267_v55 }
  0x1d   : > { %v270_v60 = vld [vmem:[%s4887_s25 + $0x88] sm:$0xff]  ;;  %v306_v0 = vpack.c.bf16 %v288_v58, %v287_v57  ;;  %v271_v3 = vld [vmem:[%s4887_s25 + $0x90] sm:$0xff]  ;;  %v272_v4 = vld [vmem:[%s4887_s25 + $0x98] sm:$0xff] }
  0x1e   : > { %4438 = vmatmul.mubr.msk.bf16.gmra.mrb[4].mxu0 %vm344_vm2, %v292_v39  ;;  %v656_v61 = vld [vmem:[%s4887_s25 + $0x1] sm:$0xff]  ;;  %v657_v62 = vld [vmem:[%s4887_s25 + $0x9] sm:$0xff]  ;;  %v297_v1 = vpack.c.bf16 %v270_v60, %v269_v59  ;;  %v658_v6 = vld [vmem:[%s4887_s25 + $0x11] sm:$0xff]  ;;  %v298_v12 = vpack.c.bf16 %v272_v4, %v271_v3 }
  0x1f   : > { %4458 = vmatmul.mubr.msk.bf16.gmra.mrb[4].mxu1 %vm344_vm2, %v302_v40  ;;  %4441 = vmatprep.mubr.msk.bf16.mxu0 %vm344_vm2, %v293_v41  ;;  %v692_v2 = vpack.c.bf16 %v657_v62, %v656_v61  ;;  %v659_v7 = vld [vmem:[%s4887_s25 + $0x19] sm:$0xff]  ;;  %v1054_v8 = vld [vmem:[%s4887_s25 + $0x2] sm:$0xff]  ;;  %v1055_v9 = vld [vmem:[%s4887_s25 + $0xa] sm:$0xff] }
  0x20   : > { %4461 = vmatprep.mubr.msk.bf16.mxu1 %vm344_vm2, %v303_v42  ;;  %v660_v10 = vld [vmem:[%s4887_s25 + $0x21] sm:$0xff]  ;;  %v661_v11 = vld [vmem:[%s4887_s25 + $0x29] sm:$0xff]  ;;  %v693_v14 = vpack.c.bf16 %v659_v7, %v658_v6  ;;  %v1090_v15 = vpack.c.bf16 %v1055_v9, %v1054_v8  ;;  %v1056_v18 = vld [vmem:[%s4887_s25 + $0x12] sm:$0xff] }
  0x21   : > { %v4181_v13 = vld [vmem:[%s6632_s1 + $0xa] sm:$0x3]  ;;  %v694_v16 = vpack.c.bf16 %v661_v11, %v660_v10  ;;  %v1057_v19 = vld [vmem:[%s4887_s25 + $0x1a] sm:$0xff]  ;;  %v662_v20 = vld [vmem:[%s4887_s25 + $0x31] sm:$0xff] }
  0x22   : > { %v4969_v17 = vand.u32 %v4181_v13, %v4876_v5  ;;  %v663_v21 = vld [vmem:[%s4887_s25 + $0x39] sm:$0xff]  ;;  %v664_v22 = vld [vmem:[%s4887_s25 + $0x41] sm:$0xff]  ;;  %v665_v23 = vld [vmem:[%s4887_s25 + $0x49] sm:$0xff]  ;;  %v4985_v26 = vpack.c.bf16 %v1057_v19, %v1056_v18 }
  0x23   : > { %v1058_v24 = vld [vmem:[%s4887_s25 + $0x22] sm:$0xff]  ;;  %v1059_v25 = vld [vmem:[%s4887_s25 + $0x2a] sm:$0xff]  ;;  %v695_v28 = vpack.c.bf16 %v663_v21, %v662_v20  ;;  %v696_v29 = vpack.c.bf16 %v665_v23, %v664_v22  ;;  %v1060_v34 = vld [vmem:[%s4887_s25 + $0x32] sm:$0xff] }
  0x24   : > { %v4990_v31 = vpack.c.bf16 %v1059_v25, %v1058_v24  ;;  %v666_v33 = vld [vmem:[%s4887_s25 + $0x51] sm:$0xff]  ;;  %v1061_v35 = vld [vmem:[%s4887_s25 + $0x3a] sm:$0xff]  ;;  %v1062_v37 = vld [vmem:[%s4887_s25 + $0x42] sm:$0xff] }
  0x25   : > { %v667_v36 = vld [vmem:[%s4887_s25 + $0x59] sm:$0xff]  ;;  %v1063_v38 = vld [vmem:[%s4887_s25 + $0x4a] sm:$0xff]  ;;  %v668_v39 = vld [vmem:[%s4887_s25 + $0x61] sm:$0xff] }
  0x26   : > { %4442 = vmatmul.mubr.msk.bf16.gmra.mrb[8].mxu0 %vm344_vm2, %v294_v51  ;;  %v669_v40 = vld [vmem:[%s4887_s25 + $0x69] sm:$0xff]  ;;  %v697_v41 = vpack.c.bf16 %v667_v36, %v666_v33  ;;  %v5013_v42 = vpack.c.bf16 %v1063_v38, %v1062_v37  ;;  %v670_v44 = vld [vmem:[%s4887_s25 + $0x71] sm:$0xff]  ;;  %v1065_v46 = vld [vmem:[%s4887_s25 + $0x5a] sm:$0xff]  ;;  %v4828_v33 = vmov 0.0  }
  0x27   : > { %4462 = vmatmul.mubr.msk.bf16.gmra.mrb[8].mxu1 %vm344_vm2, %v304_v52  ;;  %4445 = vmatprep.mubr.msk.bf16.mxu0 %vm344_vm2, %v295_v53  ;;  %v698_v43 = vpack.c.bf16 %v669_v40, %v668_v39  ;;  %v1064_v45 = vld [vmem:[%s4887_s25 + $0x52] sm:$0xff]  ;;  %v1066_v48 = vld [vmem:[%s4887_s25 + $0x62] sm:$0xff]  ;;  %v1067_v49 = vld [vmem:[%s4887_s25 + $0x6a] sm:$0xff]  ;;  %219 = vst.msk [vmem:[%s5081_s10 + $0x10] sm:$0xff] %vm216_vm3, %v4828_v33 }
  0x28   : > { %4465 = vmatprep.mubr.msk.bf16.mxu1 %vm344_vm2, %v305_v54  ;;  %v671_v47 = vld [vmem:[%s4887_s25 + $0x79] sm:$0xff]  ;;  %v672_v50 = vld [vmem:[%s4887_s25 + $0x81] sm:$0xff]  ;;  %v673_v51 = vld [vmem:[%s4887_s25 + $0x89] sm:$0xff]  ;;  %v5029_v52 = vpack.c.bf16 %v1065_v46, %v1064_v45  ;;  %v5031_v54 = vpack.c.bf16 %v1067_v49, %v1066_v48  ;;  %217 = vst.msk [vmem:[%s5081_s10] sm:$0xff] %vm216_vm3, %v4828_v33 }
  0x29   : > { %v699_v53 = vpack.c.bf16 %v671_v47, %v670_v44  ;;  %v700_v55 = vpack.c.bf16 %v673_v51, %v672_v50  ;;  %v674_v56 = vld [vmem:[%s4887_s25 + $0x91] sm:$0xff]  ;;  %v1069_v58 = vld [vmem:[%s4887_s25 + $0x7a] sm:$0xff]  ;;  %v1070_v60 = vld [vmem:[%s4887_s25 + $0x82] sm:$0xff]  ;;  %218 = vst.msk [vmem:[%s5081_s10 + $0x8] sm:$0xff] %vm216_vm3, %v4828_v33 }
  0x2a   : > { %v1068_v57 = vld [vmem:[%s4887_s25 + $0x72] sm:$0xff]  ;;  %v1071_v61 = vld [vmem:[%s4887_s25 + $0x8a] sm:$0xff]  ;;  %v676_v62 = vld [vmem:[%s4887_s25 + $0xa1] sm:$0xff]  ;;  %220 = vst.msk [vmem:[%s5081_s10 + $0x18] sm:$0xff] %vm216_vm3, %v4828_v33 }
  0x2b   : > { %v675_v59 = vld [vmem:[%s4887_s25 + $0x99] sm:$0xff]  ;;  %v678_v4 = vld [vmem:[%s4887_s25 + $0xb1] sm:$0xff]  ;;  %v1074_v9 = vld [vmem:[%s4887_s25 + $0xa2] sm:$0xff]  ;;  %221 = vst.msk [vmem:[%s5081_s10 + $0x20] sm:$0xff] %vm216_vm3, %v4828_v33 }
  0x2c   : > { %v1072_v6 = vld [vmem:[%s4887_s25 + $0x92] sm:$0xff]  ;;  %v1073_v7 = vld [vmem:[%s4887_s25 + $0x9a] sm:$0xff]  ;;  %v1075_v10 = vld [vmem:[%s4887_s25 + $0xaa] sm:$0xff]  ;;  %222 = vst.msk [vmem:[%s5081_s10 + $0x28] sm:$0xff] %vm216_vm3, %v4828_v33 }
  0x2d   : > { %v679_v8 = vld [vmem:[%s4887_s25 + $0xb9] sm:$0xff]  ;;  %v680_v11 = vld [vmem:[%s4887_s25 + $0xc1] sm:$0xff]  ;;  %v5065_v13 = vpack.c.bf16 %v1073_v7, %v1072_v6  ;;  %v682_v18 = vld [vmem:[%s4887_s25 + $0xd1] sm:$0xff]  ;;  %223 = vst.msk [vmem:[%s5081_s10 + $0x30] sm:$0xff] %vm216_vm3, %v4828_v33 }
  0x2e   : > { %4446 = vmatmul.mubr.msk.bf16.gmra.mrb[12].mxu0 %vm344_vm2, %v296_v63  ;;  %v677_v63 = vld [vmem:[%s4887_s25 + $0xa9] sm:$0xff]  ;;  %v1076_v19 = vld [vmem:[%s4887_s25 + $0xb2] sm:$0xff]  ;;  %v1077_v20 = vld [vmem:[%s4887_s25 + $0xba] sm:$0xff]  ;;  %224 = vst.msk [vmem:[%s5081_s10 + $0x38] sm:$0xff] %vm216_vm3, %v4828_v33 }
  0x2f   : > { %4466 = vmatmul.mubr.msk.bf16.gmra.mrb[12].mxu1 %vm344_vm2, %v306_v0  ;;  %4449 = vmatprep.mubr.msk.bf16.mxu0 %vm344_vm2, %v297_v1  ;;  %v5047_v0 = vpack.c.bf16 %v1069_v58, %v1068_v57  ;;  %v701_v1 = vpack.c.bf16 %v675_v59, %v674_v56  ;;  %v702_v3 = vpack.c.bf16 %v677_v63, %v676_v62  ;;  %v683_v21 = vld [vmem:[%s4887_s25 + $0xd9] sm:$0xff]  ;;  %v1078_v22 = vld [vmem:[%s4887_s25 + $0xc2] sm:$0xff]  ;;  %v1079_v23 = vld [vmem:[%s4887_s25 + $0xca] sm:$0xff] }
  0x30   : > { %4471 = vmatprep.mubr.msk.bf16.mxu1 %vm344_vm2, %v692_v2  ;;  %v5049_v2 = vpack.c.bf16 %v1071_v61, %v1070_v60  ;;  %v684_v24 = vld [vmem:[%s4887_s25 + $0xe1] sm:$0xff]  ;;  %v685_v25 = vld [vmem:[%s4887_s25 + $0xe9] sm:$0xff]  ;;  %225 = vst.msk [vmem:[%s5081_s10 + $0x40] sm:$0xff] %vm216_vm3, %v4828_v33  ;;  %226 = vst.msk [vmem:[%s5081_s10 + $0x48] sm:$0xff] %vm216_vm3, %v4828_v33 }
  0x31   : > { %227 = vst.msk [vmem:[%s5081_s10 + $0x50] sm:$0xff] %vm216_vm3, %v4828_v33  ;;  %228 = vst.msk [vmem:[%s5081_s10 + $0x58] sm:$0xff] %vm216_vm3, %v4828_v33  ;;  %v1080_v36 = vld [vmem:[%s4887_s25 + $0xd2] sm:$0xff]  ;;  %v1081_v37 = vld [vmem:[%s4887_s25 + $0xda] sm:$0xff] }
  0x32   : > { %229 = vst.msk [vmem:[%s5081_s10 + $0x60] sm:$0xff] %vm216_vm3, %v4828_v33  ;;  %230 = vst.msk [vmem:[%s5081_s10 + $0x68] sm:$0xff] %vm216_vm3, %v4828_v33  ;;  %v687_v38 = vld [vmem:[%s4887_s25 + $0xf9] sm:$0xff]  ;;  %v1082_v39 = vld [vmem:[%s4887_s25 + $0xe2] sm:$0xff]  ;;  %v5179_v44 = vpack.c.bf16 %v1081_v37, %v1080_v36 }
  0x33   : > { %231 = vst.msk [vmem:[%s5081_s10 + $0x70] sm:$0xff] %vm216_vm3, %v4828_v33  ;;  %232 = vst.msk [vmem:[%s5081_s10 + $0x78] sm:$0xff] %vm216_vm3, %v4828_v33  ;;  %v1083_v40 = vld [vmem:[%s4887_s25 + $0xea] sm:$0xff]  ;;  %v1084_v49 = vld [vmem:[%s4887_s25 + $0xf2] sm:$0xff] }
  0x34   : > { %233 = vst.msk [vmem:[%s5081_s10 + $0x80] sm:$0xff] %vm216_vm3, %v4828_v33  ;;  %234 = vst.msk [vmem:[%s5081_s10 + $0x88] sm:$0xff] %vm216_vm3, %v4828_v33  ;;  %v5181_v46 = vpack.c.bf16 %v1083_v40, %v1082_v39  ;;  %v690_v48 = vld [vmem:[%s4887_s25 + $0x111] sm:$0xff]  ;;  %v1085_v50 = vld [vmem:[%s4887_s25 + $0xfa] sm:$0xff] }
  0x35   : > { %235 = vst.msk [vmem:[%s5081_s10 + $0x90] sm:$0xff] %vm216_vm3, %v4828_v33  ;;  %236 = vst.msk [vmem:[%s5081_s10 + $0x98] sm:$0xff] %vm216_vm3, %v4828_v33  ;;  %v691_v51 = vld [vmem:[%s4887_s25 + $0x119] sm:$0xff]  ;;  %v5195_v56 = vpack.c.bf16 %v1085_v50, %v1084_v49  ;;  %v1853_v6 = vld [vmem:[%s4887_s25 + $0x2b] sm:$0xff] }
  0x36   : > { %4450 = vmatmul.mubr.msk.bf16.gmra.mrb[16].mxu0 %vm344_vm2, %v298_v12  ;;  %v681_v12 = vld [vmem:[%s4887_s25 + $0xc9] sm:$0xff]  ;;  %237 = vst.msk [vmem:[%s5081_s10 + $0xa0] sm:$0xff] %vm216_vm3, %v4828_v33  ;;  %238 = vst.msk [vmem:[%s5081_s10 + $0xa8] sm:$0xff] %vm216_vm3, %v4828_v33  ;;  %v709_v57 = vpack.c.bf16 %v691_v51, %v690_v48  ;;  %v1088_v59 = vld [vmem:[%s4887_s25 + $0x112] sm:$0xff] }
  0x37   : > { %4472 = vmatmul.mubr.msk.bf16.vlgmr.msra.gmra.mrb[16].mxu1 %vm344_vm2, %v693_v14  ;;  %4509 = vmatprep.mubr.msk.bf16.mxu0 %vm344_vm2, %v1090_v15  ;;  %v703_v14 = vpack.c.bf16 %v679_v8, %v678_v4  ;;  %v5067_v15 = vpack.c.bf16 %v1075_v10, %v1074_v9  ;;  %239 = vst.msk [vmem:[%s5081_s10 + $0xb0] sm:$0xff] %vm216_vm3, %v4828_v33  ;;  %240 = vst.msk [vmem:[%s5081_s10 + $0xb8] sm:$0xff] %vm216_vm3, %v4828_v33  ;;  %v1089_v60 = vld [vmem:[%s4887_s25 + $0x11a] sm:$0xff]  ;;  %v1877_v39 = vld [vmem:[%s4887_s25 + $0xeb] sm:$0xff] }
  0x38   : > { %4546 = vmatpush3.bf16.msra.mxu1 %v4909_v27  ;;  %4475 = vmatprep.mubr.msk.bf16.mxu1 %vm344_vm2, %v694_v16  ;;  %v4200_v27 = vld [vmem:[%s6632_s1 + $0xc] sm:$0x3]  ;;  %v704_v16 = vpack.c.bf16 %v681_v12, %v680_v11  ;;  %241 = vst.msk [vmem:[%s5081_s10 + $0xc0] sm:$0xff] %vm216_vm3, %v4828_v33  ;;  %242 = vst.msk [vmem:[%s5081_s10 + $0xc8] sm:$0xff] %vm216_vm3, %v4828_v33  ;;  %v1850_v61 = vld [vmem:[%s4887_s25 + $0x13] sm:$0xff]  ;;  %v5210_v63 = vpack.c.bf16 %v1089_v60, %v1088_v59 }
  0x39   : > { %4621 = vmatprep.subr.bf16.mxu1 %v4969_v17  ;;  %v4993_v32 = vand.u32 %v4200_v27, %v4876_v5  ;;  %v5089_v27 = vpack.c.bf16 %v1077_v20, %v1076_v19  ;;  %243 = vst.msk [vmem:[%s5081_s10 + $0xd0] sm:$0xff] %vm216_vm3, %v4828_v33  ;;  %244 = vst.msk [vmem:[%s5081_s10 + $0xd8] sm:$0xff] %vm216_vm3, %v4828_v33  ;;  %v1851_v62 = vld [vmem:[%s4887_s25 + $0x1b] sm:$0xff]  ;;  %v1854_v7 = vld [vmem:[%s4887_s25 + $0x33] sm:$0xff] }
  0x3a   : > { %245 = vst.msk [vmem:[%s5081_s10 + $0xe0] sm:$0xff] %vm216_vm3, %v4828_v33  ;;  %246 = vst.msk [vmem:[%s5081_s10 + $0xe8] sm:$0xff] %vm216_vm3, %v4828_v33  ;;  %v1855_v8 = vld [vmem:[%s4887_s25 + $0x3b] sm:$0xff]  ;;  %v1878_v40 = vld [vmem:[%s4887_s25 + $0xf3] sm:$0xff] }
  0x3b   : > { %247 = vst.msk [vmem:[%s5081_s10 + $0xf0] sm:$0xff] %vm216_vm3, %v4828_v33  ;;  %248 = vst.msk [vmem:[%s5081_s10 + $0xf8] sm:$0xff] %vm216_vm3, %v4828_v33  ;;  %v1888_v10 = vpack.c.bf16 %v1855_v8, %v1854_v7  ;;  %v1859_v12 = vld [vmem:[%s4887_s25 + $0x5b] sm:$0xff]  ;;  %v1487_v48 = vld [vmem:[%s4887_s25 + $0x12a] sm:$0xff] }
  0x3c   : > { %249 = vst.msk [vmem:[%s5081_s10 + $0x100] sm:$0xff] %vm216_vm3, %v4828_v33  ;;  %250 = vst.msk [vmem:[%s5081_s10 + $0x108] sm:$0xff] %vm216_vm3, %v4828_v33  ;;  %v1875_v36 = vld [vmem:[%s4887_s25 + $0xdb] sm:$0xff]  ;;  %v1882_v49 = vld [vmem:[%s4887_s25 + $0x113] sm:$0xff] }
  0x3d   : > { %251 = vst.msk [vmem:[%s5081_s10 + $0x110] sm:$0xff] %vm216_vm3, %v4828_v33  ;;  %252 = vst.msk [vmem:[%s5081_s10 + $0x118] sm:$0xff] %vm216_vm3, %v4828_v33  ;;  %v1883_v50 = vld [vmem:[%s4887_s25 + $0x11b] sm:$0xff]  ;;  %v1884_v59 = vld [vmem:[%s4887_s25 + $0x123] sm:$0xff] }
  0x3e   : > { %4510 = vmatmul.mubr.msk.bf16.vlgmr.msra.gmra.mrb[20].mxu0 %vm344_vm2, %v4985_v26  ;;  %v2248_v51 = vld [vmem:[%s4887_s25 + $0x14] sm:$0xff]  ;;  %v1885_v60 = vld [vmem:[%s4887_s25 + $0x12b] sm:$0xff] }
  0x3f   : > { %4476 = vmatmul.mubr.msk.bf16.gmra.mrb[20].mxu1 %vm344_vm2, %v695_v28  ;;  %4584 = vmatpush3.bf16.msra.mxu0 %v4914_v30  ;;  %v5011_v30 = vpack.c.bf16 %v1061_v35, %v1060_v34  ;;  %v705_v28 = vpack.c.bf16 %v683_v21, %v682_v18  ;;  %v706_v34 = vpack.c.bf16 %v685_v25, %v684_v24  ;;  %v686_v35 = vld [vmem:[%s4887_s25 + $0xf1] sm:$0xff]  ;;  %v1863_v18 = vld [vmem:[%s4887_s25 + $0x7b] sm:$0xff]  ;;  %v2254_v7 = vld [vmem:[%s4887_s25 + $0x44] sm:$0xff] }
  0x40   : > { %4479 = vmatprep.mubr.msk.bf16.mxu1 %vm344_vm2, %v696_v29  ;;  %4513 = vmatprep.mubr.msk.bf16.mxu0 %vm344_vm2, %v4990_v31  ;;  %v5091_v29 = vpack.c.bf16 %v1079_v23, %v1078_v22  ;;  %v707_v45 = vpack.c.bf16 %v687_v38, %v686_v35  ;;  %v1865_v21 = vld [vmem:[%s4887_s25 + $0x8b] sm:$0xff]  ;;  %v1867_v22 = vld [vmem:[%s4887_s25 + $0x9b] sm:$0xff] }
  0x41   : > { %4659 = vmatprep.subr.bf16.mxu0 %v4993_v32  ;;  %v1869_v25 = vld [vmem:[%s4887_s25 + $0xab] sm:$0xff] }
  0x42   : > { %v1873_v35 = vld [vmem:[%s4887_s25 + $0xcb] sm:$0xff] }
  0x43   : > { %v2255_v8 = vld [vmem:[%s4887_s25 + $0x4c] sm:$0xff] }
  0x46   : > { %4514 = vmatmul.mubr.msk.bf16.gmra.mrb[24].mxu0 %vm344_vm2, %v5011_v30 }
  0x47   : > { %4480 = vmatmul.mubr.msk.bf16.gmra.mrb[24].mxu1 %vm344_vm2, %v697_v41  ;;  %4517 = vmatprep.mubr.msk.bf16.mxu0 %vm344_vm2, %v5013_v42  ;;  %v688_v41 = vld [vmem:[%s4887_s25 + $0x101] sm:$0xff] }
  0x48   : > { %4483 = vmatprep.mubr.msk.bf16.mxu1 %vm344_vm2, %v698_v43  ;;  %v689_v43 = vld [vmem:[%s4887_s25 + $0x109] sm:$0xff] }
  0x49   : > { %v708_v47 = vpack.c.bf16 %v689_v43, %v688_v41  ;;  %v1879_v41 = vld [vmem:[%s4887_s25 + $0xfb] sm:$0xff] }
  0x4e   : > { %4518 = vmatmul.mubr.msk.bf16.gmra.mrb[28].mxu0 %vm344_vm2, %v5029_v52 }
  0x4f   : > { %4484 = vmatmul.mubr.msk.bf16.gmra.mrb[28].mxu1 %vm344_vm2, %v699_v53  ;;  %4521 = vmatprep.mubr.msk.bf16.mxu0 %vm344_vm2, %v5031_v54  ;;  %v1086_v53 = vld [vmem:[%s4887_s25 + $0x102] sm:$0xff] }
  0x50   : > { %4487 = vmatprep.mubr.msk.bf16.mxu1 %vm344_vm2, %v700_v55  ;;  %v1087_v55 = vld [vmem:[%s4887_s25 + $0x10a] sm:$0xff] }
  0x51   : > { %v5197_v58 = vpack.c.bf16 %v1087_v55, %v1086_v53  ;;  %v2249_v53 = vld [vmem:[%s4887_s25 + $0x1c] sm:$0xff] }
  0x56   : > { %4522 = vmatmul.mubr.msk.bf16.gmra.mrb[32].mxu0 %vm344_vm2, %v5047_v0 }
  0x57   : > { %4488 = vmatmul.mubr.msk.bf16.gmra.mrb[32].mxu1 %vm344_vm2, %v701_v1  ;;  %4525 = vmatprep.mubr.msk.bf16.mxu0 %vm344_vm2, %v5049_v2  ;;  %v4219_v1 = vld [vmem:[%s6632_s1 + $0xe] sm:$0x3] }
  0x58   : > { %4491 = vmatprep.mubr.msk.bf16.mxu1 %vm344_vm2, %v702_v3  ;;  %v1886_v3 = vpack.c.bf16 %v1851_v62, %v1850_v61  ;;  %v5216_v4 = vand.u32 %v4219_v1, %v4876_v5  ;;  %v2250_v61 = vld [vmem:[%s4887_s25 + $0x24] sm:$0xff]  ;;  %v2251_v62 = vld [vmem:[%s4887_s25 + $0x2c] sm:$0xff]  ;;  %v2253_v1 = vld [vmem:[%s4887_s25 + $0x3c] sm:$0xff] }
  0x5e   : > { %4526 = vmatmul.mubr.msk.bf16.gmra.mrb[36].mxu0 %vm344_vm2, %v5065_v13 }
  0x5f   : > { %4492 = vmatmul.mubr.msk.bf16.gmra.mrb[36].mxu1 %vm344_vm2, %v703_v14  ;;  %4529 = vmatprep.mubr.msk.bf16.mxu0 %vm344_vm2, %v5067_v15 }
  0x60   : > { %4495 = vmatprep.mubr.msk.bf16.mxu1 %vm344_vm2, %v704_v16 }
  0x66   : > { %4530 = vmatmul.mubr.msk.bf16.gmra.mrb[40].mxu0 %vm344_vm2, %v5089_v27 }
  0x67   : > { %4496 = vmatmul.mubr.msk.bf16.gmra.mrb[40].mxu1 %vm344_vm2, %v705_v28  ;;  %4533 = vmatprep.mubr.msk.bf16.mxu0 %vm344_vm2, %v5091_v29  ;;  %v1871_v28 = vld [vmem:[%s4887_s25 + $0xbb] sm:$0xff] }
  0x68   : > { %4499 = vmatprep.mubr.msk.bf16.mxu1 %vm344_vm2, %v706_v34 }
  0x6e   : > { %4534 = vmatmul.mubr.msk.bf16.gmra.mrb[44].mxu0 %vm344_vm2, %v5179_v44 }
  0x6f   : > { %4500 = vmatmul.mubr.msk.bf16.gmra.mrb[44].mxu1 %vm344_vm2, %v707_v45  ;;  %4537 = vmatprep.mubr.msk.bf16.mxu0 %vm344_vm2, %v5181_v46  ;;  %v1486_v45 = vld [vmem:[%s4887_s25 + $0x122] sm:$0xff] }
  0x70   : > { %4503 = vmatprep.mubr.msk.bf16.mxu1 %vm344_vm2, %v708_v47  ;;  %v1881_v47 = vld [vmem:[%s4887_s25 + $0x10b] sm:$0xff] }
  0x76   : > { %4538 = vmatmul.mubr.msk.bf16.gmra.mrb[48].mxu0 %vm344_vm2, %v5195_v56 }
  0x77   : > { %4504 = vmatmul.mubr.msk.bf16.gmra.mrb[48].mxu1 %vm344_vm2, %v709_v57  ;;  %4541 = vmatprep.mubr.msk.bf16.mxu0 %vm344_vm2, %v5197_v58  ;;  %v1902_v57 = vpack.c.bf16 %v1883_v50, %v1882_v49 }
  0x78   : > { %4547 = vmatprep.mubr.msk.bf16.mxu1 %vm344_vm2, %v4985_v26  ;;  %v1852_v26 = vld [vmem:[%s4887_s25 + $0x23] sm:$0xff] }
  0x79   : > { %v1887_v9 = vpack.c.bf16 %v1853_v6, %v1852_v26  ;;  %v2285_v26 = vpack.c.bf16 %v2251_v62, %v2250_v61  ;;  %v311_v61 = vld [vmem:[%s5081_s10 + $0x20] sm:$0xff] }
  0x7a   : > { %v2274_v62 = vld [vmem:[%s4887_s25 + $0xe4] sm:$0xff] }
  0x7e   : > { %4542 = vmatmul.mubr.msk.bf16.gmra.mrb[52].mxu0 %vm344_vm2, %v5210_v63 }
  0x7f   : > { %4548 = vmatmul.mubr.msk.bf16.vlgmr.msra.gmra.mrb[52].mxu1 %vm344_vm2, %v4990_v31  ;;  %4585 = vmatprep.mubr.msk.bf16.mxu0 %vm344_vm2, %v1886_v3  ;;  %v4238_v31 = vld [vmem:[%s6632_s1 + $0x10] sm:$0x3]  ;;  %v1903_v3 = vpack.c.bf16 %v1885_v60, %v1884_v59  ;;  %v331_v60 = vld [vmem:[%s5081_s10 + $0xc0] sm:$0xff] }
  0x80   : > { %4622 = vmatpush3.bf16.msra.mxu1 %v4969_v17  ;;  %4551 = vmatprep.mubr.msk.bf16.mxu1 %vm344_vm2, %v5011_v30  ;;  %v5235_v11 = vand.u32 %v4238_v31, %v4876_v5  ;;  %v1856_v17 = vld [vmem:[%s4887_s25 + $0x43] sm:$0xff]  ;;  %v1857_v30 = vld [vmem:[%s4887_s25 + $0x4b] sm:$0xff]  ;;  %v1858_v5 = vld [vmem:[%s4887_s25 + $0x53] sm:$0xff] }
  0x81   : > { %4697 = vmatprep.subr.bf16.mxu1 %v5216_v4  ;;  %v1889_v14 = vpack.c.bf16 %v1857_v30, %v1856_v17  ;;  %v1890_v16 = vpack.c.bf16 %v1859_v12, %v1858_v5  ;;  %v2257_v31 = vld [vmem:[%s4887_s25 + $0x5c] sm:$0xff]  ;;  %v2259_v30 = vld [vmem:[%s4887_s25 + $0x6c] sm:$0xff]  ;;  %v2260_v5 = vld [vmem:[%s4887_s25 + $0x74] sm:$0xff] }
  0x82   : > { %v2261_v12 = vld [vmem:[%s4887_s25 + $0x7c] sm:$0xff]  ;;  %v333_v59 = vld [vmem:[%s5081_s10 + $0xd0] sm:$0xff] }
  0x86   : > { %4586 = vmatmul.mubr.msk.bf16.vlgmr.msra.gmra.mrb[56].mxu0 %vm344_vm2, %v1887_v9  ;;  %v2256_v9 = vld [vmem:[%s4887_s25 + $0x54] sm:$0xff] }
  0x87   : > { %4552 = vmatmul.mubr.msk.bf16.gmra.mrb[56].mxu1 %vm344_vm2, %v5013_v42  ;;  %4660 = vmatpush3.bf16.msra.mxu0 %v4993_v32  ;;  %v1860_v32 = vld [vmem:[%s4887_s25 + $0x63] sm:$0xff]  ;;  %v1861_v42 = vld [vmem:[%s4887_s25 + $0x6b] sm:$0xff]  ;;  %v2288_v17 = vpack.c.bf16 %v2257_v31, %v2256_v9  ;;  %v334_v31 = vld [vmem:[%s5081_s10 + $0xd8] sm:$0xff] }
  0x88   : > { %4555 = vmatprep.mubr.msk.bf16.mxu1 %vm344_vm2, %v5029_v52  ;;  %4589 = vmatprep.mubr.msk.bf16.mxu0 %vm344_vm2, %v1888_v10  ;;  %v1862_v52 = vld [vmem:[%s4887_s25 + $0x73] sm:$0xff]  ;;  %v1891_v19 = vpack.c.bf16 %v1861_v42, %v1860_v32  ;;  %v2287_v10 = vpack.c.bf16 %v2255_v8, %v2254_v7 }
  0x89   : > { %4735 = vmatprep.subr.bf16.mxu0 %v5235_v11  ;;  %v1892_v20 = vpack.c.bf16 %v1863_v18, %v1862_v52  ;;  %v2263_v32 = vld [vmem:[%s4887_s25 + $0x8c] sm:$0xff]  ;;  %v2264_v42 = vld [vmem:[%s4887_s25 + $0x94] sm:$0xff]  ;;  %v2265_v52 = vld [vmem:[%s4887_s25 + $0x9c] sm:$0xff] }
  0x8e   : > { %4590 = vmatmul.mubr.msk.bf16.gmra.mrb[60].mxu0 %vm344_vm2, %v1889_v14 }
  0x8f   : > { %4556 = vmatmul.mubr.msk.bf16.gmra.mrb[60].mxu1 %vm344_vm2, %v5031_v54  ;;  %4593 = vmatprep.mubr.msk.bf16.mxu0 %vm344_vm2, %v1890_v16  ;;  %v1864_v54 = vld [vmem:[%s4887_s25 + $0x83] sm:$0xff]  ;;  %v2290_v16 = vpack.c.bf16 %v2261_v12, %v2260_v5 }
  0x90   : > { %4559 = vmatprep.mubr.msk.bf16.mxu1 %vm344_vm2, %v5047_v0  ;;  %v1866_v0 = vld [vmem:[%s4887_s25 + $0x93] sm:$0xff]  ;;  %v1893_v23 = vpack.c.bf16 %v1865_v21, %v1864_v54  ;;  %v332_v12 = vld [vmem:[%s5081_s10 + $0xc8] sm:$0xff] }
  0x91   : > { %v1894_v24 = vpack.c.bf16 %v1867_v22, %v1866_v0  ;;  %v2267_v54 = vld [vmem:[%s4887_s25 + $0xac] sm:$0xff]  ;;  %v2268_v21 = vld [vmem:[%s4887_s25 + $0xb4] sm:$0xff]  ;;  %v2269_v0 = vld [vmem:[%s4887_s25 + $0xbc] sm:$0xff] }
  0x96   : > { %4594 = vmatmul.mubr.msk.bf16.gmra.mrb[64].mxu0 %vm344_vm2, %v1891_v19  ;;  %v2292_v19 = vpack.c.bf16 %v2265_v52, %v2264_v42 }
  0x97   : > { %4560 = vmatmul.mubr.msk.bf16.gmra.mrb[64].mxu1 %vm344_vm2, %v5049_v2  ;;  %4597 = vmatprep.mubr.msk.bf16.mxu0 %vm344_vm2, %v1892_v20  ;;  %v1868_v2 = vld [vmem:[%s4887_s25 + $0xa3] sm:$0xff] }
  0x98   : > { %4563 = vmatprep.mubr.msk.bf16.mxu1 %vm344_vm2, %v5065_v13  ;;  %v1870_v13 = vld [vmem:[%s4887_s25 + $0xb3] sm:$0xff]  ;;  %v1895_v33 = vpack.c.bf16 %v1869_v25, %v1868_v2  ;;  %v2266_v20 = vld [vmem:[%s4887_s25 + $0xa4] sm:$0xff] }
  0x99   : > { %v1896_v34 = vpack.c.bf16 %v1871_v28, %v1870_v13  ;;  %v2293_v22 = vpack.c.bf16 %v2267_v54, %v2266_v20  ;;  %v329_v2 = vld [vmem:[%s5081_s10 + $0xb0] sm:$0xff]  ;;  %v327_v25 = vld [vmem:[%s5081_s10 + $0xa0] sm:$0xff] }
  0x9a   : > { %v307_v13 = vld [vmem:[%s5081_s10] sm:$0xff] }
  0x9b   : > { %v2270_v28 = vld [vmem:[%s4887_s25 + $0xc4] sm:$0xff] }
  0x9e   : > { %4598 = vmatmul.mubr.msk.bf16.gmra.mrb[68].mxu0 %vm344_vm2, %v1893_v23  ;;  %v2294_v23 = vpack.c.bf16 %v2269_v0, %v2268_v21  ;;  %v317_v21 = vld [vmem:[%s5081_s10 + $0x50] sm:$0xff] }
  0x9f   : > { %4564 = vmatmul.mubr.msk.bf16.gmra.mrb[68].mxu1 %vm344_vm2, %v5067_v15  ;;  %4601 = vmatprep.mubr.msk.bf16.mxu0 %vm344_vm2, %v1894_v24  ;;  %v1872_v15 = vld [vmem:[%s4887_s25 + $0xc3] sm:$0xff]  ;;  %v309_v24 = vld [vmem:[%s5081_s10 + $0x10] sm:$0xff] }
  0xa0   : > { %4567 = vmatprep.mubr.msk.bf16.mxu1 %vm344_vm2, %v5089_v27  ;;  %v1874_v27 = vld [vmem:[%s4887_s25 + $0xd3] sm:$0xff]  ;;  %v1897_v37 = vpack.c.bf16 %v1873_v35, %v1872_v15 }
  0xa1   : > { %v1898_v38 = vpack.c.bf16 %v1875_v36, %v1874_v27  ;;  %v310_v15 = vld [vmem:[%s5081_s10 + $0x18] sm:$0xff]  ;;  %v337_v0 = vld [vmem:[%s5081_s10 + $0xf0] sm:$0xff] }
  0xa2   : > { %v2272_v35 = vld [vmem:[%s4887_s25 + $0xd4] sm:$0xff]  ;;  %v2273_v27 = vld [vmem:[%s4887_s25 + $0xdc] sm:$0xff] }
  0xa6   : > { %4602 = vmatmul.mubr.msk.bf16.gmra.mrb[72].mxu0 %vm344_vm2, %v1895_v33  ;;  %v2271_v33 = vld [vmem:[%s4887_s25 + $0xcc] sm:$0xff] }
  0xa7   : > { %4568 = vmatmul.mubr.msk.bf16.gmra.mrb[72].mxu1 %vm344_vm2, %v5091_v29  ;;  %4605 = vmatprep.mubr.msk.bf16.mxu0 %vm344_vm2, %v1896_v34  ;;  %v1876_v29 = vld [vmem:[%s4887_s25 + $0xe3] sm:$0xff] }
  0xa8   : > { %4571 = vmatprep.mubr.msk.bf16.mxu1 %vm344_vm2, %v5179_v44  ;;  %v1899_v43 = vpack.c.bf16 %v1877_v39, %v1876_v29  ;;  %v1900_v44 = vpack.c.bf16 %v1879_v41, %v1878_v40  ;;  %v330_v29 = vld [vmem:[%s5081_s10 + $0xb8] sm:$0xff]  ;;  %v308_v39 = vld [vmem:[%s5081_s10 + $0x8] sm:$0xff] }
  0xae   : > { %4606 = vmatmul.mubr.msk.bf16.gmra.mrb[76].mxu0 %vm344_vm2, %v1897_v37 }
  0xaf   : > { %4572 = vmatmul.mubr.msk.bf16.gmra.mrb[76].mxu1 %vm344_vm2, %v5181_v46  ;;  %4609 = vmatprep.mubr.msk.bf16.mxu0 %vm344_vm2, %v1898_v38  ;;  %v1880_v46 = vld [vmem:[%s4887_s25 + $0x103] sm:$0xff] }
  0xb0   : > { %4575 = vmatprep.mubr.msk.bf16.mxu1 %vm344_vm2, %v5195_v56  ;;  %v1901_v55 = vpack.c.bf16 %v1881_v47, %v1880_v46  ;;  %v1505_v56 = vpack.c.bf16 %v1487_v48, %v1486_v45  ;;  %v328_v45 = vld [vmem:[%s5081_s10 + $0xa8] sm:$0xff]  ;;  %v2295_v46 = vpack.c.bf16 %v2271_v33, %v2270_v28  ;;  %v2280_v28 = vld [vmem:[%s4887_s25 + $0x114] sm:$0xff]  ;;  %v2281_v33 = vld [vmem:[%s4887_s25 + $0x11c] sm:$0xff] }
  0xb6   : > { %4610 = vmatmul.mubr.msk.bf16.gmra.mrb[80].mxu0 %vm344_vm2, %v1899_v43 }
  0xb7   : > { %4576 = vmatmul.mubr.msk.bf16.gmra.mrb[80].mxu1 %vm344_vm2, %v5197_v58  ;;  %4613 = vmatprep.mubr.msk.bf16.mxu0 %vm344_vm2, %v1900_v44  ;;  %v2284_v58 = vpack.c.bf16 %v2249_v53, %v2248_v51  ;;  %v2296_v51 = vpack.c.bf16 %v2273_v27, %v2272_v35  ;;  %v338_v27 = vld [vmem:[%s5081_s10 + $0xf8] sm:$0xff] }
  0xb8   : > { %4579 = vmatprep.mubr.msk.bf16.mxu1 %vm344_vm2, %v5210_v63  ;;  %v2252_v63 = vld [vmem:[%s4887_s25 + $0x34] sm:$0xff] }
  0xb9   : > { %v2286_v6 = vpack.c.bf16 %v2253_v1, %v2252_v63  ;;  %v2275_v63 = vld [vmem:[%s4887_s25 + $0xec] sm:$0xff] }
  0xbe   : > { %4614 = vmatmul.mubr.msk.bf16.gmra.mrb[84].mxu0 %vm344_vm2, %v1901_v55 }
  0xbf   : > { %4580 = vmatmul.mubr.msk.bf16.gmra.mrb[84].mxu1 %vm344_vm2, %v1505_v56  ;;  %4617 = vmatprep.mubr.msk.bf16.mxu0 %vm344_vm2, %v1902_v57 }
  0xc0   : > { %4623 = vmatprep.mubr.msk.bf16.mxu1 %vm344_vm2, %v2284_v58  ;;  %v313_v58 = vld [vmem:[%s5081_s10 + $0x30] sm:$0xff] }
  0xc6   : > { %4618 = vmatmul.mubr.msk.bf16.gmra.mrb[88].mxu0 %vm344_vm2, %v1903_v3  ;;  %v314_v3 = vld [vmem:[%s5081_s10 + $0x38] sm:$0xff] }
  0xc7   : > { %4624 = vmatmul.mubr.msk.bf16.vlgmr.msra.gmra.mrb[88].mxu1 %vm344_vm2, %v2285_v26  ;;  %4661 = vmatprep.mubr.msk.bf16.mxu0 %vm344_vm2, %v2285_v26  ;;  %v2276_v26 = vld [vmem:[%s4887_s25 + $0xf4] sm:$0xff] }
  0xc8   : > { %4698 = vmatpush3.bf16.msra.mxu1 %v5216_v4  ;;  %4627 = vmatprep.mubr.msk.bf16.mxu1 %vm344_vm2, %v2286_v6  ;;  %v2258_v4 = vld [vmem:[%s4887_s25 + $0x64] sm:$0xff] }
  0xc9   : > { %v2289_v14 = vpack.c.bf16 %v2259_v30, %v2258_v4 }
  0xce   : > { %4662 = vmatmul.mubr.msk.bf16.vlgmr.msra.gmra.mrb[92].mxu0 %vm344_vm2, %v2286_v6  ;;  %v2277_v6 = vld [vmem:[%s4887_s25 + $0xfc] sm:$0xff] }
  0xcf   : > { %4628 = vmatmul.mubr.msk.bf16.gmra.mrb[92].mxu1 %vm344_vm2, %v2287_v10  ;;  %4736 = vmatpush3.bf16.msra.mxu0 %v5235_v11  ;;  %v2262_v11 = vld [vmem:[%s4887_s25 + $0x84] sm:$0xff]  ;;  %v2298_v52 = vpack.c.bf16 %v2277_v6, %v2276_v26  ;;  %v342_v6 = vld [vmem:[%s5081_s10 + $0x118] sm:$0xff] }
  0xd0   : > { %4631 = vmatprep.mubr.msk.bf16.mxu1 %vm344_vm2, %v2288_v17  ;;  %4665 = vmatprep.mubr.msk.bf16.mxu0 %vm344_vm2, %v2287_v10  ;;  %v2291_v18 = vpack.c.bf16 %v2263_v32, %v2262_v11  ;;  %v312_v10 = vld [vmem:[%s5081_s10 + $0x28] sm:$0xff] }
  0xd6   : > { %4666 = vmatmul.mubr.msk.bf16.gmra.mrb[96].mxu0 %vm344_vm2, %v2288_v17 }
  0xd7   : > { %4632 = vmatmul.mubr.msk.bf16.gmra.mrb[96].mxu1 %vm344_vm2, %v2289_v14  ;;  %4669 = vmatprep.mubr.msk.bf16.mxu0 %vm344_vm2, %v2289_v14  ;;  %v2297_v14 = vpack.c.bf16 %v2275_v63, %v2274_v62  ;;  %v3044_v62 = vld [vmem:[%s4887_s25 + $0x25] sm:$0xff]  ;;  %v3045_v63 = vld [vmem:[%s4887_s25 + $0x2d] sm:$0xff] }
  0xd8   : > { %4635 = vmatprep.mubr.msk.bf16.mxu1 %vm344_vm2, %v2290_v16 }
  0xde   : > { %4670 = vmatmul.mubr.msk.bf16.gmra.mrb[100].mxu0 %vm344_vm2, %v2290_v16 }
  0xdf   : > { %4636 = vmatmul.mubr.msk.bf16.gmra.mrb[100].mxu1 %vm344_vm2, %v2291_v18  ;;  %4673 = vmatprep.mubr.msk.bf16.mxu0 %vm344_vm2, %v2291_v18 }
  0xe0   : > { %4639 = vmatprep.mubr.msk.bf16.mxu1 %vm344_vm2, %v2292_v19 }
  0xe6   : > { %4674 = vmatmul.mubr.msk.bf16.gmra.mrb[104].mxu0 %vm344_vm2, %v2292_v19 }
  0xe7   : > { %4640 = vmatmul.mubr.msk.bf16.gmra.mrb[104].mxu1 %vm344_vm2, %v2293_v22  ;;  %4677 = vmatprep.mubr.msk.bf16.mxu0 %vm344_vm2, %v2293_v22  ;;  %v335_v22 = vld [vmem:[%s5081_s10 + $0xe0] sm:$0xff] }
  0xe8   : > { %4643 = vmatprep.mubr.msk.bf16.mxu1 %vm344_vm2, %v2294_v23 }
  0xe9   : > { %v4435_v34 = vpop.f32.mrb[0].mxu0 }
  0xea   : > { %v585_v36 = vadd.f32 %v4435_v34, %v309_v24  ;;  %v4455_v37 = vpop.f32.mrb[0].mxu1  ;;  %v440_v38 = vpop.f32.mrb[1].mxu0  ;;  %v2278_v24 = vld [vmem:[%s4887_s25 + $0x104] sm:$0xff] }
  0xeb   : > { %v605_v40 = vadd.f32 %v4455_v37, %v329_v2  ;;  %v583_v41 = vadd.f32 %v440_v38, %v307_v13  ;;  %v520_v43 = vpop.f32.mrb[1].mxu1  ;;  %v4436_v44 = vpop.f32.mrb[2].mxu0  ;;  %v2279_v2 = vld [vmem:[%s4887_s25 + $0x10c] sm:$0xff]  ;;  %v318_v13 = vld [vmem:[%s5081_s10 + $0x58] sm:$0xff] }
  0xec   : > { %622 = vst.msk [vmem:[%s5081_s10 + $0x10] sm:$0xff] %vm216_vm3, %v585_v36  ;;  %v603_v47 = vadd.f32 %v520_v43, %v327_v25  ;;  %v586_v48 = vadd.f32 %v4436_v44, %v310_v15  ;;  %v4456_v49 = vpop.f32.mrb[2].mxu1  ;;  %v443_v50 = vpop.f32.mrb[3].mxu0  ;;  %v316_v36 = vld [vmem:[%s5081_s10 + $0x48] sm:$0xff] }
  0xed   : > { %642 = vst.msk [vmem:[%s5081_s10 + $0xb0] sm:$0xff] %vm216_vm3, %v605_v40  ;;  %620 = vst.msk [vmem:[%s5081_s10] sm:$0xff] %vm216_vm3, %v583_v41  ;;  %v606_v53 = vadd.f32 %v4456_v49, %v330_v29  ;;  %v584_v55 = vadd.f32 %v443_v50, %v308_v39  ;;  %v523_v56 = vpop.f32.mrb[3].mxu1  ;;  %v336_v40 = vld [vmem:[%s5081_s10 + $0xe8] sm:$0xff]  ;;  %v2299_v41 = vpack.c.bf16 %v2279_v2, %v2278_v24  ;;  %v326_v2 = vld [vmem:[%s5081_s10 + $0x98] sm:$0xff] }
  0xee   : > { %640 = vst.msk [vmem:[%s5081_s10 + $0xa0] sm:$0xff] %vm216_vm3, %v603_v47  ;;  %623 = vst.msk [vmem:[%s5081_s10 + $0x18] sm:$0xff] %vm216_vm3, %v586_v48  ;;  %v604_v57 = vadd.f32 %v523_v56, %v328_v45  ;;  %4678 = vmatmul.mubr.msk.bf16.gmra.mrb[108].mxu0 %vm344_vm2, %v2294_v23  ;;  %v315_v23 = vld [vmem:[%s5081_s10 + $0x40] sm:$0xff]  ;;  %v2300_v47 = vpack.c.bf16 %v2281_v33, %v2280_v28 }
  0xef   : > { %643 = vst.msk [vmem:[%s5081_s10 + $0xb8] sm:$0xff] %vm216_vm3, %v606_v53  ;;  %621 = vst.msk [vmem:[%s5081_s10 + $0x8] sm:$0xff] %vm216_vm3, %v584_v55  ;;  %4644 = vmatmul.mubr.msk.bf16.gmra.mrb[108].mxu1 %vm344_vm2, %v2295_v46  ;;  %4681 = vmatprep.mubr.msk.bf16.mxu0 %vm344_vm2, %v2295_v46  ;;  %v321_v53 = vld [vmem:[%s5081_s10 + $0x70] sm:$0xff]  ;;  %v339_v56 = vld [vmem:[%s5081_s10 + $0x100] sm:$0xff] }
  0xf0   : > { %641 = vst.msk [vmem:[%s5081_s10 + $0xa8] sm:$0xff] %vm216_vm3, %v604_v57  ;;  %4647 = vmatprep.mubr.msk.bf16.mxu1 %vm344_vm2, %v2296_v51  ;;  %v341_v55 = vld [vmem:[%s5081_s10 + $0x110] sm:$0xff]  ;;  %v319_v57 = vld [vmem:[%s5081_s10 + $0x60] sm:$0xff] }
  0xf1   : > { %v4439_v1 = vpop.f32.mrb[4].mxu0 }
  0xf2   : > { %v589_v7 = vadd.f32 %v4439_v1, %v313_v58  ;;  %v4459_v8 = vpop.f32.mrb[4].mxu1  ;;  %v456_v9 = vpop.f32.mrb[5].mxu0  ;;  %v2282_v58 = vld [vmem:[%s4887_s25 + $0x124] sm:$0xff] }
  0xf3   : > { %v609_v17 = vadd.f32 %v4459_v8, %v333_v59  ;;  %v587_v4 = vadd.f32 %v456_v9, %v311_v61  ;;  %v536_v30 = vpop.f32.mrb[5].mxu1  ;;  %v4440_v5 = vpop.f32.mrb[6].mxu0  ;;  %v2283_v59 = vld [vmem:[%s4887_s25 + $0x12c] sm:$0xff]  ;;  %v322_v61 = vld [vmem:[%s5081_s10 + $0x78] sm:$0xff] }
  0xf4   : > { %626 = vst.msk [vmem:[%s5081_s10 + $0x30] sm:$0xff] %vm216_vm3, %v589_v7  ;;  %v607_v16 = vadd.f32 %v536_v30, %v331_v60  ;;  %v590_v11 = vadd.f32 %v4440_v5, %v314_v3  ;;  %v4460_v32 = vpop.f32.mrb[6].mxu1  ;;  %v459_v42 = vpop.f32.mrb[7].mxu0  ;;  %v320_v7 = vld [vmem:[%s5081_s10 + $0x68] sm:$0xff]  ;;  %v712_v33 = vld [vmem:[%s5081_s10 + $0x10] sm:$0xff] }
  0xf5   : > { %646 = vst.msk [vmem:[%s5081_s10 + $0xd0] sm:$0xff] %vm216_vm3, %v609_v17  ;;  %624 = vst.msk [vmem:[%s5081_s10 + $0x20] sm:$0xff] %vm216_vm3, %v587_v4  ;;  %v610_v18 = vadd.f32 %v4460_v32, %v334_v31  ;;  %v588_v19 = vadd.f32 %v459_v42, %v312_v10  ;;  %v539_v20 = vpop.f32.mrb[7].mxu1  ;;  %v340_v17 = vld [vmem:[%s5081_s10 + $0x108] sm:$0xff]  ;;  %v2301_v4 = vpack.c.bf16 %v2283_v59, %v2282_v58  ;;  %v3445_v58 = vld [vmem:[%s4887_s25 + $0x3e] sm:$0xff] }
  0xf6   : > { %644 = vst.msk [vmem:[%s5081_s10 + $0xc0] sm:$0xff] %vm216_vm3, %v607_v16  ;;  %627 = vst.msk [vmem:[%s5081_s10 + $0x38] sm:$0xff] %vm216_vm3, %v590_v11  ;;  %v608_v54 = vadd.f32 %v539_v20, %v332_v12  ;;  %4682 = vmatmul.mubr.msk.bf16.gmra.mrb[112].mxu0 %vm344_vm2, %v2296_v51  ;;  %v3080_v16 = vpack.c.bf16 %v3045_v63, %v3044_v62  ;;  %v2680_v20 = vld [vmem:[%s4887_s25 + $0x134] sm:$0xff]  ;;  %v3051_v59 = vld [vmem:[%s4887_s25 + $0x5d] sm:$0xff] }
  0xf7   : > { %647 = vst.msk [vmem:[%s5081_s10 + $0xd8] sm:$0xff] %vm216_vm3, %v610_v18  ;;  %625 = vst.msk [vmem:[%s5081_s10 + $0x28] sm:$0xff] %vm216_vm3, %v588_v19  ;;  %4648 = vmatmul.mubr.msk.bf16.gmra.mrb[112].mxu1 %vm344_vm2, %v2297_v14  ;;  %4685 = vmatprep.mubr.msk.bf16.mxu0 %vm344_vm2, %v2297_v14  ;;  %v325_v18 = vld [vmem:[%s5081_s10 + $0x90] sm:$0xff]  ;;  %v323_v19 = vld [vmem:[%s5081_s10 + $0x80] sm:$0xff] }
  0xf8   : > { %645 = vst.msk [vmem:[%s5081_s10 + $0xc8] sm:$0xff] %vm216_vm3, %v608_v54  ;;  %4651 = vmatprep.mubr.msk.bf16.mxu1 %vm344_vm2, %v2298_v52  ;;  %v2681_v54 = vld [vmem:[%s4887_s25 + $0x13c] sm:$0xff]  ;;  %v3052_v63 = vld [vmem:[%s4887_s25 + $0x65] sm:$0xff] }
  0xf9   : > { %v4443_v25 = vpop.f32.mrb[8].mxu0 }
  0xfa   : > { %v593_v34 = vadd.f32 %v4443_v25, %v317_v21  ;;  %v4463_v15 = vpop.f32.mrb[8].mxu1  ;;  %v472_v35 = vpop.f32.mrb[9].mxu0  ;;  %v3046_v21 = vld [vmem:[%s4887_s25 + $0x35] sm:$0xff]  ;;  %v3048_v25 = vld [vmem:[%s4887_s25 + $0x45] sm:$0xff] }
  0xfb   : > { %v613_v37 = vadd.f32 %v4463_v15, %v337_v0  ;;  %v591_v38 = vadd.f32 %v472_v35, %v315_v23  ;;  %v552_v29 = vpop.f32.mrb[9].mxu1  ;;  %v4444_v39 = vpop.f32.mrb[10].mxu0  ;;  %v3047_v0 = vld [vmem:[%s4887_s25 + $0x3d] sm:$0xff]  ;;  %v3443_v23 = vld [vmem:[%s4887_s25 + $0x2e] sm:$0xff] }
  0xfc   : > { %630 = vst.msk [vmem:[%s5081_s10 + $0x50] sm:$0xff] %vm216_vm3, %v593_v34  ;;  %v611_v43 = vadd.f32 %v552_v29, %v335_v22  ;;  %v594_v44 = vadd.f32 %v4444_v39, %v318_v13  ;;  %v4464_v45 = vpop.f32.mrb[10].mxu1  ;;  %v475_v46 = vpop.f32.mrb[11].mxu0  ;;  %v3442_v22 = vld [vmem:[%s4887_s25 + $0x26] sm:$0xff] }
  0xfd   : > { %650 = vst.msk [vmem:[%s5081_s10 + $0xf0] sm:$0xff] %vm216_vm3, %v613_v37  ;;  %628 = vst.msk [vmem:[%s5081_s10 + $0x40] sm:$0xff] %vm216_vm3, %v591_v38  ;;  %v614_v48 = vadd.f32 %v4464_v45, %v338_v27  ;;  %v592_v49 = vadd.f32 %v475_v46, %v316_v36  ;;  %v555_v50 = vpop.f32.mrb[11].mxu1  ;;  %v3049_v13 = vld [vmem:[%s4887_s25 + $0x4d] sm:$0xff]  ;;  %v2699_v27 = vpack.c.bf16 %v2681_v54, %v2680_v20  ;;  %v710_v38 = vld [vmem:[%s5081_s10] sm:$0xff] }
  0xfe   : > { %648 = vst.msk [vmem:[%s5081_s10 + $0xe0] sm:$0xff] %vm216_vm3, %v611_v43  ;;  %631 = vst.msk [vmem:[%s5081_s10 + $0x58] sm:$0xff] %vm216_vm3, %v594_v44  ;;  %v612_v51 = vadd.f32 %v555_v50, %v336_v40  ;;  %4686 = vmatmul.mubr.msk.bf16.gmra.mrb[116].mxu0 %vm344_vm2, %v2298_v52  ;;  %v324_v35 = vld [vmem:[%s5081_s10 + $0x88] sm:$0xff]  ;;  %v3081_v40 = vpack.c.bf16 %v3047_v0, %v3046_v21  ;;  %v713_v45 = vld [vmem:[%s5081_s10 + $0x18] sm:$0xff] }
  0xff   : > { %651 = vst.msk [vmem:[%s5081_s10 + $0xf8] sm:$0xff] %vm216_vm3, %v614_v48  ;;  %629 = vst.msk [vmem:[%s5081_s10 + $0x48] sm:$0xff] %vm216_vm3, %v592_v49  ;;  %4652 = vmatmul.mubr.msk.bf16.gmra.mrb[116].mxu1 %vm344_vm2, %v2299_v41  ;;  %4689 = vmatprep.mubr.msk.bf16.mxu0 %vm344_vm2, %v2299_v41  ;;  %v3478_v41 = vpack.c.bf16 %v3443_v23, %v3442_v22  ;;  %v3082_v48 = vpack.c.bf16 %v3049_v13, %v3048_v25  ;;  %v3054_v0 = vld [vmem:[%s4887_s25 + $0x75] sm:$0xff]  ;;  %v3055_v13 = vld [vmem:[%s4887_s25 + $0x7d] sm:$0xff] }
 0x100   : > { %649 = vst.msk [vmem:[%s5081_s10 + $0xe8] sm:$0xff] %vm216_vm3, %v612_v51  ;;  %4655 = vmatprep.mubr.msk.bf16.mxu1 %vm344_vm2, %v2300_v47  ;;  %v711_v51 = vld [vmem:[%s5081_s10 + $0x8] sm:$0xff] }
 0x101   : > { %v4447_v60 = vpop.f32.mrb[12].mxu0 }
 0x102   : > { %v597_v1 = vadd.f32 %v4447_v60, %v321_v53  ;;  %v4467_v3 = vpop.f32.mrb[12].mxu1  ;;  %v488_v26 = vpop.f32.mrb[13].mxu0  ;;  %v3446_v60 = vld [vmem:[%s4887_s25 + $0x46] sm:$0xff] }
 0x103   : > { %v617_v8 = vadd.f32 %v4467_v3, %v341_v55  ;;  %v595_v9 = vadd.f32 %v488_v26, %v319_v57  ;;  %v568_v31 = vpop.f32.mrb[13].mxu1  ;;  %v4448_v10 = vpop.f32.mrb[14].mxu0  ;;  %v3444_v57 = vld [vmem:[%s4887_s25 + $0x36] sm:$0xff] }
 0x104   : > { %634 = vst.msk [vmem:[%s5081_s10 + $0x70] sm:$0xff] %vm216_vm3, %v597_v1  ;;  %v615_v30 = vadd.f32 %v568_v31, %v339_v56  ;;  %v598_v5 = vadd.f32 %v4448_v10, %v322_v61  ;;  %v4468_v12 = vpop.f32.mrb[14].mxu1  ;;  %v491_v14 = vpop.f32.mrb[15].mxu0  ;;  %v3050_v56 = vld [vmem:[%s4887_s25 + $0x55] sm:$0xff]  ;;  %v3053_v1 = vld [vmem:[%s4887_s25 + $0x6d] sm:$0xff] }
 0x105   : > { %654 = vst.msk [vmem:[%s5081_s10 + $0x110] sm:$0xff] %vm216_vm3, %v617_v8  ;;  %632 = vst.msk [vmem:[%s5081_s10 + $0x60] sm:$0xff] %vm216_vm3, %v595_v9  ;;  %v618_v11 = vadd.f32 %v4468_v12, %v342_v6  ;;  %v596_v32 = vadd.f32 %v491_v14, %v320_v7  ;;  %v571_v42 = vpop.f32.mrb[15].mxu1  ;;  %v3447_v61 = vld [vmem:[%s4887_s25 + $0x4e] sm:$0xff]  ;;  %v3479_v7 = vpack.c.bf16 %v3445_v58, %v3444_v57  ;;  %v714_v9 = vld [vmem:[%s5081_s10 + $0x20] sm:$0xff] }
 0x106   : > { %652 = vst.msk [vmem:[%s5081_s10 + $0x100] sm:$0xff] %vm216_vm3, %v615_v30  ;;  %635 = vst.msk [vmem:[%s5081_s10 + $0x78] sm:$0xff] %vm216_vm3, %v598_v5  ;;  %v616_v52 = vadd.f32 %v571_v42, %v340_v17  ;;  %4690 = vmatmul.mubr.msk.bf16.gmra.mrb[120].mxu0 %vm344_vm2, %v2300_v47  ;;  %v716_v3 = vld [vmem:[%s5081_s10 + $0x30] sm:$0xff]  ;;  %v3083_v17 = vpack.c.bf16 %v3051_v59, %v3050_v56  ;;  %v717_v12 = vld [vmem:[%s5081_s10 + $0x38] sm:$0xff] }
 0x107   : > { %655 = vst.msk [vmem:[%s5081_s10 + $0x118] sm:$0xff] %vm216_vm3, %v618_v11  ;;  %633 = vst.msk [vmem:[%s5081_s10 + $0x68] sm:$0xff] %vm216_vm3, %v596_v32  ;;  %4656 = vmatmul.mubr.msk.bf16.gmra.mrb[120].mxu1 %vm344_vm2, %v2301_v4  ;;  %4693 = vmatprep.mubr.msk.bf16.mxu0 %vm344_vm2, %v2301_v4  ;;  %v3480_v4 = vpack.c.bf16 %v3447_v61, %v3446_v60  ;;  %v3084_v11 = vpack.c.bf16 %v3053_v1, %v3052_v63  ;;  %v719_v56 = vld [vmem:[%s5081_s10 + $0x48] sm:$0xff]  ;;  %v3058_v61 = vld [vmem:[%s4887_s25 + $0x95] sm:$0xff] }
 0x108   : > { %653 = vst.msk [vmem:[%s5081_s10 + $0x108] sm:$0xff] %vm216_vm3, %v616_v52  ;;  %4699 = vmatprep.mubr.msk.bf16.mxu1 %vm344_vm2, %v3080_v16  ;;  %v3452_v1 = vld [vmem:[%s4887_s25 + $0x76] sm:$0xff] }
 0x109   : > { %v4451_v24 = vpop.f32.mrb[16].mxu0 }
 0x10a   : > { %v601_v28 = vadd.f32 %v4451_v24, %v325_v18  ;;  %v4473_v34 = vpop.f32.mrb[16].mxu1  ;;  %v504_v15 = vpop.f32.mrb[17].mxu0  ;;  %v715_v18 = vld [vmem:[%s5081_s10 + $0x28] sm:$0xff]  ;;  %v3448_v24 = vld [vmem:[%s4887_s25 + $0x56] sm:$0xff] }
 0x10b   : > { %v984_v36 = vadd.f32 %v4473_v34, %v712_v33  ;;  %v599_v37 = vadd.f32 %v504_v15, %v323_v19  ;;  %v839_v29 = vpop.f32.mrb[17].mxu1  ;;  %v4452_v39 = vpop.f32.mrb[18].mxu0  ;;  %v3451_v33 = vld [vmem:[%s4887_s25 + $0x6e] sm:$0xff]  ;;  %v3056_v15 = vld [vmem:[%s4887_s25 + $0x85] sm:$0xff] }
 0x10c   : > { %638 = vst.msk [vmem:[%s5081_s10 + $0x90] sm:$0xff] %vm216_vm3, %v601_v28  ;;  %v982_v43 = vadd.f32 %v839_v29, %v710_v38  ;;  %v602_v44 = vadd.f32 %v4452_v39, %v326_v2  ;;  %v4474_v46 = vpop.f32.mrb[18].mxu1  ;;  %v507_v47 = vpop.f32.mrb[19].mxu0  ;;  %v3449_v2 = vld [vmem:[%s4887_s25 + $0x5e] sm:$0xff]  ;;  %v3450_v28 = vld [vmem:[%s4887_s25 + $0x66] sm:$0xff] }
 0x10d   : > { %1020 = vst.msk [vmem:[%s5081_s10 + $0x10] sm:$0xff] %vm216_vm3, %v984_v36  ;;  %636 = vst.msk [vmem:[%s5081_s10 + $0x80] sm:$0xff] %vm216_vm3, %v599_v37  ;;  %v985_v49 = vadd.f32 %v4474_v46, %v713_v45  ;;  %v600_v50 = vadd.f32 %v507_v47, %v324_v35  ;;  %v842_v53 = vpop.f32.mrb[19].mxu1  ;;  %v3057_v35 = vld [vmem:[%s4887_s25 + $0x8d] sm:$0xff]  ;;  %v3481_v38 = vpack.c.bf16 %v3449_v2, %v3448_v24  ;;  %v718_v39 = vld [vmem:[%s5081_s10 + $0x40] sm:$0xff] }
 0x10e   : > { %1018 = vst.msk [vmem:[%s5081_s10] sm:$0xff] %vm216_vm3, %v982_v43  ;;  %639 = vst.msk [vmem:[%s5081_s10 + $0x98] sm:$0xff] %vm216_vm3, %v602_v44  ;;  %v983_v55 = vadd.f32 %v842_v53, %v711_v51  ;;  %4694 = vmatmul.mubr.msk.bf16.gmra.mrb[124].mxu0 %vm344_vm2, %v2699_v27  ;;  %v720_v27 = vld [vmem:[%s5081_s10 + $0x50] sm:$0xff]  ;;  %v3085_v43 = vpack.c.bf16 %v3055_v13, %v3054_v0  ;;  %v3482_v44 = vpack.c.bf16 %v3451_v33, %v3450_v28  ;;  %v721_v47 = vld [vmem:[%s5081_s10 + $0x58] sm:$0xff] }
 0x10f   : > { %1021 = vst.msk [vmem:[%s5081_s10 + $0x18] sm:$0xff] %vm216_vm3, %v985_v49  ;;  %637 = vst.msk [vmem:[%s5081_s10 + $0x88] sm:$0xff] %vm216_vm3, %v600_v50  ;;  %4700 = vmatmul.mubr.msk.bf16.vlgmr.msra.gmra.mrb[124].mxu1 %vm344_vm2, %v3081_v40  ;;  %4737 = vmatprep.mubr.msk.bf16.mxu0 %vm344_vm2, %v3478_v41  ;;  %v3086_v50 = vpack.c.bf16 %v3057_v35, %v3056_v15  ;;  %v723_v24 = vld [vmem:[%s5081_s10 + $0x68] sm:$0xff]  ;;  %v3062_v33 = vld [vmem:[%s4887_s25 + $0xb5] sm:$0xff] }
 0x110   : > { %1019 = vst.msk [vmem:[%s5081_s10 + $0x8] sm:$0xff] %vm216_vm3, %v983_v55  ;;  %4703 = vmatprep.mubr.msk.bf16.mxu1 %vm344_vm2, %v3082_v48  ;;  %v3456_v35 = vld [vmem:[%s4887_s25 + $0x96] sm:$0xff] }
 0x111   : > { %v4511_v62 = vpop.f32.mrb[20].mxu0 }
 0x112   : > { %v4477_v26 = vpop.f32.mrb[20].mxu1  ;;  %v1237_v6 = vpop.f32.mrb[21].mxu0 }
 0x113   : > { %v988_v8 = vadd.f32 %v4477_v26, %v716_v3  ;;  %v855_v31 = vpop.f32.mrb[21].mxu1  ;;  %v4512_v10 = vpop.f32.mrb[22].mxu0  ;;  %v3453_v3 = vld [vmem:[%s4887_s25 + $0x7e] sm:$0xff] }
 0x114   : > { %v1110_v30 = vld [vmem:[%s5081_s10 + $0x10] sm:$0xff]  ;;  %v986_v5 = vadd.f32 %v855_v31, %v714_v9  ;;  %v4478_v14 = vpop.f32.mrb[22].mxu1  ;;  %v1240_v16 = vpop.f32.mrb[23].mxu0  ;;  %v3060_v31 = vld [vmem:[%s4887_s25 + $0xa5] sm:$0xff] }
 0x115   : > { %1024 = vst.msk [vmem:[%s5081_s10 + $0x30] sm:$0xff] %vm216_vm3, %v988_v8  ;;  %v1382_v32 = vadd.f32 %v4511_v62, %v1110_v30  ;;  %v1108_v42 = vld [vmem:[%s5081_s10] sm:$0xff]  ;;  %v989_v52 = vadd.f32 %v4478_v14, %v717_v12  ;;  %v858_v19 = vpop.f32.mrb[23].mxu1  ;;  %v3455_v8 = vld [vmem:[%s4887_s25 + $0x8e] sm:$0xff] }
 0x116   : > { %1022 = vst.msk [vmem:[%s5081_s10 + $0x20] sm:$0xff] %vm216_vm3, %v986_v5  ;;  %v1380_v20 = vadd.f32 %v1237_v6, %v1108_v42  ;;  %v1111_v54 = vld [vmem:[%s5081_s10 + $0x18] sm:$0xff]  ;;  %v987_v21 = vadd.f32 %v858_v19, %v715_v18  ;;  %4738 = vmatmul.mubr.msk.bf16.vlgmr.msra.gmra.mrb[128].mxu0 %vm344_vm2, %v3479_v7  ;;  %v3454_v7 = vld [vmem:[%s4887_s25 + $0x86] sm:$0xff]  ;;  %v3483_v5 = vpack.c.bf16 %v3453_v3, %v3452_v1 }
 0x117   : > { %1418 = vst.msk [vmem:[%s5081_s10 + $0x10] sm:$0xff] %vm216_vm3, %v1382_v32  ;;  %1025 = vst.msk [vmem:[%s5081_s10 + $0x38] sm:$0xff] %vm216_vm3, %v989_v52  ;;  %v1383_v22 = vadd.f32 %v4512_v10, %v1111_v54  ;;  %v1109_v23 = vld [vmem:[%s5081_s10 + $0x8] sm:$0xff]  ;;  %4704 = vmatmul.mubr.msk.bf16.gmra.mrb[128].mxu1 %vm344_vm2, %v3083_v17  ;;  %4741 = vmatprep.mubr.msk.bf16.mxu0 %vm344_vm2, %v3480_v4  ;;  %v3059_v6 = vld [vmem:[%s4887_s25 + $0x9d] sm:$0xff]  ;;  %v3484_v42 = vpack.c.bf16 %v3455_v8, %v3454_v7 }
 0x118   : > { %1416 = vst.msk [vmem:[%s5081_s10] sm:$0xff] %vm216_vm3, %v1380_v20  ;;  %1023 = vst.msk [vmem:[%s5081_s10 + $0x28] sm:$0xff] %vm216_vm3, %v987_v21  ;;  %v1381_v25 = vadd.f32 %v1240_v16, %v1109_v23  ;;  %4707 = vmatprep.mubr.msk.bf16.mxu1 %vm344_vm2, %v3084_v11  ;;  %v3061_v10 = vld [vmem:[%s4887_s25 + $0xad] sm:$0xff]  ;;  %v722_v14 = vld [vmem:[%s5081_s10 + $0x60] sm:$0xff]  ;;  %v3087_v32 = vpack.c.bf16 %v3059_v6, %v3058_v61 }
 0x119   : > { %1419 = vst.msk [vmem:[%s5081_s10 + $0x18] sm:$0xff] %vm216_vm3, %v1383_v22  ;;  %v4515_v34 = vpop.f32.mrb[24].mxu0  ;;  %v724_v17 = vld [vmem:[%s5081_s10 + $0x70] sm:$0xff]  ;;  %v725_v19 = vld [vmem:[%s5081_s10 + $0x78] sm:$0xff]  ;;  %v3088_v21 = vpack.c.bf16 %v3061_v10, %v3060_v31  ;;  %v727_v1 = vld [vmem:[%s5081_s10 + $0x88] sm:$0xff] }
 0x11a   : > { %1417 = vst.msk [vmem:[%s5081_s10 + $0x8] sm:$0xff] %vm216_vm3, %v1381_v25  ;;  %v4481_v36 = vpop.f32.mrb[24].mxu1  ;;  %v1253_v37 = vpop.f32.mrb[25].mxu0  ;;  %v3066_v8 = vld [vmem:[%s4887_s25 + $0xd5] sm:$0xff] }
 0x11b   : > { %v992_v29 = vadd.f32 %v4481_v36, %v720_v27  ;;  %v871_v40 = vpop.f32.mrb[25].mxu1  ;;  %v4516_v41 = vpop.f32.mrb[26].mxu0  ;;  %v3457_v27 = vld [vmem:[%s4887_s25 + $0x9e] sm:$0xff]  ;;  %v3460_v10 = vld [vmem:[%s4887_s25 + $0xb6] sm:$0xff] }
 0x11c   : > { %v1114_v45 = vld [vmem:[%s5081_s10 + $0x30] sm:$0xff]  ;;  %v990_v46 = vadd.f32 %v871_v40, %v718_v39  ;;  %v4482_v48 = vpop.f32.mrb[26].mxu1  ;;  %v1256_v49 = vpop.f32.mrb[27].mxu0  ;;  %v3064_v40 = vld [vmem:[%s4887_s25 + $0xc5] sm:$0xff] }
 0x11d   : > { %1028 = vst.msk [vmem:[%s5081_s10 + $0x50] sm:$0xff] %vm216_vm3, %v992_v29  ;;  %v1386_v51 = vadd.f32 %v4515_v34, %v1114_v45  ;;  %v1112_v53 = vld [vmem:[%s5081_s10 + $0x20] sm:$0xff]  ;;  %v993_v55 = vadd.f32 %v4482_v48, %v721_v47  ;;  %v874_v57 = vpop.f32.mrb[27].mxu1  ;;  %v3459_v29 = vld [vmem:[%s4887_s25 + $0xae] sm:$0xff] }
 0x11e   : > { %1026 = vst.msk [vmem:[%s5081_s10 + $0x40] sm:$0xff] %vm216_vm3, %v990_v46  ;;  %v1384_v58 = vadd.f32 %v1253_v37, %v1112_v53  ;;  %v1115_v59 = vld [vmem:[%s5081_s10 + $0x38] sm:$0xff]  ;;  %v991_v60 = vadd.f32 %v874_v57, %v719_v56  ;;  %4742 = vmatmul.mubr.msk.bf16.gmra.mrb[132].mxu0 %vm344_vm2, %v3481_v38  ;;  %v3458_v38 = vld [vmem:[%s4887_s25 + $0xa6] sm:$0xff]  ;;  %v3485_v46 = vpack.c.bf16 %v3457_v27, %v3456_v35 }
 0x11f   : > { %1422 = vst.msk [vmem:[%s5081_s10 + $0x30] sm:$0xff] %vm216_vm3, %v1386_v51  ;;  %1029 = vst.msk [vmem:[%s5081_s10 + $0x58] sm:$0xff] %vm216_vm3, %v993_v55  ;;  %v1387_v62 = vadd.f32 %v4516_v41, %v1115_v59  ;;  %v1113_v63 = vld [vmem:[%s5081_s10 + $0x28] sm:$0xff]  ;;  %4708 = vmatmul.mubr.msk.bf16.gmra.mrb[132].mxu1 %vm344_vm2, %v3085_v43  ;;  %4745 = vmatprep.mubr.msk.bf16.mxu0 %vm344_vm2, %v3482_v44  ;;  %v3063_v37 = vld [vmem:[%s4887_s25 + $0xbd] sm:$0xff]  ;;  %v3486_v53 = vpack.c.bf16 %v3459_v29, %v3458_v38 }
 0x120   : > { %1420 = vst.msk [vmem:[%s5081_s10 + $0x20] sm:$0xff] %vm216_vm3, %v1384_v58  ;;  %1027 = vst.msk [vmem:[%s5081_s10 + $0x48] sm:$0xff] %vm216_vm3, %v991_v60  ;;  %v1385_v26 = vadd.f32 %v1256_v49, %v1113_v63  ;;  %4711 = vmatprep.mubr.msk.bf16.mxu1 %vm344_vm2, %v3086_v50  ;;  %v3065_v41 = vld [vmem:[%s4887_s25 + $0xcd] sm:$0xff]  ;;  %v726_v48 = vld [vmem:[%s5081_s10 + $0x80] sm:$0xff]  ;;  %v3089_v51 = vpack.c.bf16 %v3063_v37, %v3062_v33 }
 0x121   : > { %1423 = vst.msk [vmem:[%s5081_s10 + $0x38] sm:$0xff] %vm216_vm3, %v1387_v62  ;;  %v4519_v9 = vpop.f32.mrb[28].mxu0  ;;  %v728_v43 = vld [vmem:[%s5081_s10 + $0x90] sm:$0xff]  ;;  %v729_v57 = vld [vmem:[%s5081_s10 + $0x98] sm:$0xff]  ;;  %v3090_v60 = vpack.c.bf16 %v3065_v41, %v3064_v40  ;;  %v731_v35 = vld [vmem:[%s5081_s10 + $0xa8] sm:$0xff] }
 0x122   : > { %1421 = vst.msk [vmem:[%s5081_s10 + $0x28] sm:$0xff] %vm216_vm3, %v1385_v26  ;;  %v4485_v4 = vpop.f32.mrb[28].mxu1  ;;  %v1269_v30 = vpop.f32.mrb[29].mxu0  ;;  %v3070_v29 = vld [vmem:[%s4887_s25 + $0xf5] sm:$0xff] }
 0x123   : > { %v996_v12 = vadd.f32 %v4485_v4, %v724_v17  ;;  %v887_v16 = vpop.f32.mrb[29].mxu1  ;;  %v4520_v11 = vpop.f32.mrb[30].mxu0  ;;  %v3461_v17 = vld [vmem:[%s4887_s25 + $0xbe] sm:$0xff]  ;;  %v3464_v41 = vld [vmem:[%s4887_s25 + $0xd6] sm:$0xff] }
 0x124   : > { %v1118_v52 = vld [vmem:[%s5081_s10 + $0x50] sm:$0xff]  ;;  %v994_v18 = vadd.f32 %v887_v16, %v722_v14  ;;  %v4486_v20 = vpop.f32.mrb[30].mxu1  ;;  %v1272_v54 = vpop.f32.mrb[31].mxu0  ;;  %v3068_v16 = vld [vmem:[%s4887_s25 + $0xe5] sm:$0xff] }
 0x125   : > { %1032 = vst.msk [vmem:[%s5081_s10 + $0x70] sm:$0xff] %vm216_vm3, %v996_v12  ;;  %v1390_v0 = vadd.f32 %v4519_v9, %v1118_v52  ;;  %v1116_v22 = vld [vmem:[%s5081_s10 + $0x40] sm:$0xff]  ;;  %v997_v23 = vadd.f32 %v4486_v20, %v725_v19  ;;  %v890_v2 = vpop.f32.mrb[31].mxu1  ;;  %v3463_v12 = vld [vmem:[%s4887_s25 + $0xce] sm:$0xff] }
 0x126   : > { %1030 = vst.msk [vmem:[%s5081_s10 + $0x60] sm:$0xff] %vm216_vm3, %v994_v18  ;;  %v1388_v25 = vadd.f32 %v1269_v30, %v1116_v22  ;;  %v1119_v13 = vld [vmem:[%s5081_s10 + $0x58] sm:$0xff]  ;;  %v995_v28 = vadd.f32 %v890_v2, %v723_v24  ;;  %4746 = vmatmul.mubr.msk.bf16.gmra.mrb[136].mxu0 %vm344_vm2, %v3483_v5  ;;  %v3462_v5 = vld [vmem:[%s4887_s25 + $0xc6] sm:$0xff]  ;;  %v3487_v18 = vpack.c.bf16 %v3461_v17, %v3460_v10 }
 0x127   : > { %1426 = vst.msk [vmem:[%s5081_s10 + $0x50] sm:$0xff] %vm216_vm3, %v1390_v0  ;;  %1033 = vst.msk [vmem:[%s5081_s10 + $0x78] sm:$0xff] %vm216_vm3, %v997_v23  ;;  %v1391_v34 = vadd.f32 %v4520_v11, %v1119_v13  ;;  %v1117_v15 = vld [vmem:[%s5081_s10 + $0x48] sm:$0xff]  ;;  %4712 = vmatmul.mubr.msk.bf16.gmra.mrb[136].mxu1 %vm344_vm2, %v3087_v32  ;;  %4749 = vmatprep.mubr.msk.bf16.mxu0 %vm344_vm2, %v3484_v42  ;;  %v3067_v30 = vld [vmem:[%s4887_s25 + $0xdd] sm:$0xff]  ;;  %v3488_v22 = vpack.c.bf16 %v3463_v12, %v3462_v5 }
 0x128   : > { %1424 = vst.msk [vmem:[%s5081_s10 + $0x40] sm:$0xff] %vm216_vm3, %v1388_v25  ;;  %1031 = vst.msk [vmem:[%s5081_s10 + $0x68] sm:$0xff] %vm216_vm3, %v995_v28  ;;  %v1389_v36 = vadd.f32 %v1272_v54, %v1117_v15  ;;  %4715 = vmatprep.mubr.msk.bf16.mxu1 %vm344_vm2, %v3088_v21  ;;  %v3069_v11 = vld [vmem:[%s4887_s25 + $0xed] sm:$0xff]  ;;  %v730_v20 = vld [vmem:[%s5081_s10 + $0xa0] sm:$0xff]  ;;  %v3091_v0 = vpack.c.bf16 %v3067_v30, %v3066_v8 }
 0x129   : > { %1427 = vst.msk [vmem:[%s5081_s10 + $0x58] sm:$0xff] %vm216_vm3, %v1391_v34  ;;  %v4523_v39 = vpop.f32.mrb[32].mxu0  ;;  %v732_v32 = vld [vmem:[%s5081_s10 + $0xb0] sm:$0xff]  ;;  %v733_v2 = vld [vmem:[%s5081_s10 + $0xb8] sm:$0xff]  ;;  %v3092_v28 = vpack.c.bf16 %v3069_v11, %v3068_v16  ;;  %v735_v10 = vld [vmem:[%s5081_s10 + $0xc8] sm:$0xff] }
 0x12a   : > { %1425 = vst.msk [vmem:[%s5081_s10 + $0x48] sm:$0xff] %vm216_vm3, %v1389_v36  ;;  %v4489_v44 = vpop.f32.mrb[32].mxu1  ;;  %v1285_v45 = vpop.f32.mrb[33].mxu0  ;;  %v3074_v12 = vld [vmem:[%s4887_s25 + $0x115] sm:$0xff] }
 0x12b   : > { %v1000_v47 = vadd.f32 %v4489_v44, %v728_v43  ;;  %v903_v49 = vpop.f32.mrb[33].mxu1  ;;  %v4524_v50 = vpop.f32.mrb[34].mxu0  ;;  %v3465_v43 = vld [vmem:[%s4887_s25 + $0xde] sm:$0xff]  ;;  %v3468_v11 = vld [vmem:[%s4887_s25 + $0xf6] sm:$0xff] }
 0x12c   : > { %v1122_v55 = vld [vmem:[%s5081_s10 + $0x70] sm:$0xff]  ;;  %v998_v56 = vadd.f32 %v903_v49, %v726_v48  ;;  %v4490_v58 = vpop.f32.mrb[34].mxu1  ;;  %v1288_v59 = vpop.f32.mrb[35].mxu0  ;;  %v3072_v49 = vld [vmem:[%s4887_s25 + $0x105] sm:$0xff] }
 0x12d   : > { %1036 = vst.msk [vmem:[%s5081_s10 + $0x90] sm:$0xff] %vm216_vm3, %v1000_v47  ;;  %v1394_v61 = vadd.f32 %v4523_v39, %v1122_v55  ;;  %v1120_v62 = vld [vmem:[%s5081_s10 + $0x60] sm:$0xff]  ;;  %v1001_v63 = vadd.f32 %v4490_v58, %v729_v57  ;;  %v906_v3 = vpop.f32.mrb[35].mxu1  ;;  %v3467_v47 = vld [vmem:[%s4887_s25 + $0xee] sm:$0xff] }
 0x12e   : > { %1034 = vst.msk [vmem:[%s5081_s10 + $0x80] sm:$0xff] %vm216_vm3, %v998_v56  ;;  %v1392_v26 = vadd.f32 %v1285_v45, %v1120_v62  ;;  %v1123_v6 = vld [vmem:[%s5081_s10 + $0x78] sm:$0xff]  ;;  %v999_v7 = vadd.f32 %v906_v3, %v727_v1  ;;  %4750 = vmatmul.mubr.msk.bf16.gmra.mrb[140].mxu0 %vm344_vm2, %v3485_v46  ;;  %v3466_v46 = vld [vmem:[%s4887_s25 + $0xe6] sm:$0xff]  ;;  %v3489_v56 = vpack.c.bf16 %v3465_v43, %v3464_v41 }
 0x12f   : > { %1430 = vst.msk [vmem:[%s5081_s10 + $0x70] sm:$0xff] %vm216_vm3, %v1394_v61  ;;  %1037 = vst.msk [vmem:[%s5081_s10 + $0x98] sm:$0xff] %vm216_vm3, %v1001_v63  ;;  %v1395_v9 = vadd.f32 %v4524_v50, %v1123_v6  ;;  %v1121_v31 = vld [vmem:[%s5081_s10 + $0x68] sm:$0xff]  ;;  %4716 = vmatmul.mubr.msk.bf16.gmra.mrb[140].mxu1 %vm344_vm2, %v3089_v51  ;;  %4753 = vmatprep.mubr.msk.bf16.mxu0 %vm344_vm2, %v3486_v53  ;;  %v3071_v45 = vld [vmem:[%s4887_s25 + $0xfd] sm:$0xff]  ;;  %v3490_v62 = vpack.c.bf16 %v3467_v47, %v3466_v46 }
 0x130   : > { %1428 = vst.msk [vmem:[%s5081_s10 + $0x60] sm:$0xff] %vm216_vm3, %v1392_v26  ;;  %1035 = vst.msk [vmem:[%s5081_s10 + $0x88] sm:$0xff] %vm216_vm3, %v999_v7  ;;  %v1393_v4 = vadd.f32 %v1288_v59, %v1121_v31  ;;  %4719 = vmatprep.mubr.msk.bf16.mxu1 %vm344_vm2, %v3090_v60  ;;  %v3073_v50 = vld [vmem:[%s4887_s25 + $0x10d] sm:$0xff]  ;;  %v734_v58 = vld [vmem:[%s5081_s10 + $0xc0] sm:$0xff]  ;;  %v3093_v61 = vpack.c.bf16 %v3071_v45, %v3070_v29 }
 0x131   : > { %1431 = vst.msk [vmem:[%s5081_s10 + $0x78] sm:$0xff] %vm216_vm3, %v1395_v9  ;;  %v4527_v14 = vpop.f32.mrb[36].mxu0  ;;  %v736_v51 = vld [vmem:[%s5081_s10 + $0xd0] sm:$0xff]  ;;  %v737_v3 = vld [vmem:[%s5081_s10 + $0xd8] sm:$0xff]  ;;  %v3094_v7 = vpack.c.bf16 %v3073_v50, %v3072_v49  ;;  %v739_v41 = vld [vmem:[%s5081_s10 + $0xe8] sm:$0xff] }
 0x132   : > { %1429 = vst.msk [vmem:[%s5081_s10 + $0x68] sm:$0xff] %vm216_vm3, %v1393_v4  ;;  %v4493_v42 = vpop.f32.mrb[36].mxu1  ;;  %v1301_v52 = vpop.f32.mrb[37].mxu0  ;;  %v3078_v47 = vld [vmem:[%s4887_s25 + $0x135] sm:$0xff] }
 0x133   : > { %v1004_v19 = vadd.f32 %v4493_v42, %v732_v32  ;;  %v919_v54 = vpop.f32.mrb[37].mxu1  ;;  %v4528_v21 = vpop.f32.mrb[38].mxu0  ;;  %v3469_v32 = vld [vmem:[%s4887_s25 + $0xfe] sm:$0xff]  ;;  %v3472_v50 = vld [vmem:[%s4887_s25 + $0x116] sm:$0xff] }
 0x134   : > { %v1126_v23 = vld [vmem:[%s5081_s10 + $0x90] sm:$0xff]  ;;  %v1002_v24 = vadd.f32 %v919_v54, %v730_v20  ;;  %v4494_v25 = vpop.f32.mrb[38].mxu1  ;;  %v1304_v13 = vpop.f32.mrb[39].mxu0  ;;  %v3076_v54 = vld [vmem:[%s4887_s25 + $0x125] sm:$0xff] }
 0x135   : > { %1040 = vst.msk [vmem:[%s5081_s10 + $0xb0] sm:$0xff] %vm216_vm3, %v1004_v19  ;;  %v1398_v33 = vadd.f32 %v4527_v14, %v1126_v23  ;;  %v1124_v34 = vld [vmem:[%s5081_s10 + $0x80] sm:$0xff]  ;;  %v1005_v15 = vadd.f32 %v4494_v25, %v733_v2  ;;  %v922_v27 = vpop.f32.mrb[39].mxu1  ;;  %v3471_v19 = vld [vmem:[%s4887_s25 + $0x10e] sm:$0xff] }
 0x136   : > { %1038 = vst.msk [vmem:[%s5081_s10 + $0xa0] sm:$0xff] %vm216_vm3, %v1002_v24  ;;  %v1396_v36 = vadd.f32 %v1301_v52, %v1124_v34  ;;  %v1127_v37 = vld [vmem:[%s5081_s10 + $0x98] sm:$0xff]  ;;  %v1003_v38 = vadd.f32 %v922_v27, %v731_v35  ;;  %4754 = vmatmul.mubr.msk.bf16.gmra.mrb[144].mxu0 %vm344_vm2, %v3487_v18  ;;  %v3470_v18 = vld [vmem:[%s4887_s25 + $0x106] sm:$0xff]  ;;  %v3491_v24 = vpack.c.bf16 %v3469_v32, %v3468_v11 }
 0x137   : > { %1434 = vst.msk [vmem:[%s5081_s10 + $0x90] sm:$0xff] %vm216_vm3, %v1398_v33  ;;  %1041 = vst.msk [vmem:[%s5081_s10 + $0xb8] sm:$0xff] %vm216_vm3, %v1005_v15  ;;  %v1399_v39 = vadd.f32 %v4528_v21, %v1127_v37  ;;  %v1125_v40 = vld [vmem:[%s5081_s10 + $0x88] sm:$0xff]  ;;  %4720 = vmatmul.mubr.msk.bf16.gmra.mrb[144].mxu1 %vm344_vm2, %v3091_v0  ;;  %4757 = vmatprep.mubr.msk.bf16.mxu0 %vm344_vm2, %v3488_v22  ;;  %v3075_v52 = vld [vmem:[%s4887_s25 + $0x11d] sm:$0xff]  ;;  %v3492_v34 = vpack.c.bf16 %v3471_v19, %v3470_v18 }
 0x138   : > { %1432 = vst.msk [vmem:[%s5081_s10 + $0x80] sm:$0xff] %vm216_vm3, %v1396_v36  ;;  %1039 = vst.msk [vmem:[%s5081_s10 + $0xa8] sm:$0xff] %vm216_vm3, %v1003_v38  ;;  %v1397_v44 = vadd.f32 %v1304_v13, %v1125_v40  ;;  %4723 = vmatprep.mubr.msk.bf16.mxu1 %vm344_vm2, %v3092_v28  ;;  %v3077_v21 = vld [vmem:[%s4887_s25 + $0x12d] sm:$0xff]  ;;  %v738_v25 = vld [vmem:[%s5081_s10 + $0xe0] sm:$0xff]  ;;  %v3095_v33 = vpack.c.bf16 %v3075_v52, %v3074_v12 }
 0x139   : > { %1435 = vst.msk [vmem:[%s5081_s10 + $0x98] sm:$0xff] %vm216_vm3, %v1399_v39  ;;  %v4531_v48 = vpop.f32.mrb[40].mxu0  ;;  %v740_v0 = vld [vmem:[%s5081_s10 + $0xf0] sm:$0xff]  ;;  %v741_v27 = vld [vmem:[%s5081_s10 + $0xf8] sm:$0xff]  ;;  %v3096_v38 = vpack.c.bf16 %v3077_v21, %v3076_v54  ;;  %v743_v12 = vld [vmem:[%s5081_s10 + $0x108] sm:$0xff] }
 0x13a   : > { %1433 = vst.msk [vmem:[%s5081_s10 + $0x88] sm:$0xff] %vm216_vm3, %v1397_v44  ;;  %v4497_v53 = vpop.f32.mrb[40].mxu1  ;;  %v1317_v55 = vpop.f32.mrb[41].mxu0  ;;  %v3476_v18 = vld [vmem:[%s4887_s25 + $0x136] sm:$0xff]  ;;  %v3477_v19 = vld [vmem:[%s4887_s25 + $0x13e] sm:$0xff] }
 0x13b   : > { %v1008_v57 = vadd.f32 %v4497_v53, %v736_v51  ;;  %v935_v59 = vpop.f32.mrb[41].mxu1  ;;  %v4532_v60 = vpop.f32.mrb[42].mxu0  ;;  %v3473_v51 = vld [vmem:[%s4887_s25 + $0x11e] sm:$0xff]  ;;  %v1508_v21 = vld [vmem:[%s5081_s10 + $0x10] sm:$0xff] }
 0x13c   : > { %v1130_v63 = vld [vmem:[%s5081_s10 + $0xb0] sm:$0xff]  ;;  %v1006_v1 = vadd.f32 %v935_v59, %v734_v58  ;;  %v4498_v26 = vpop.f32.mrb[42].mxu1  ;;  %v1320_v6 = vpop.f32.mrb[43].mxu0 }
 0x13d   : > { %1044 = vst.msk [vmem:[%s5081_s10 + $0xd0] sm:$0xff] %vm216_vm3, %v1008_v57  ;;  %v1402_v8 = vadd.f32 %v4531_v48, %v1130_v63  ;;  %v1128_v9 = vld [vmem:[%s5081_s10 + $0xa0] sm:$0xff]  ;;  %v1009_v31 = vadd.f32 %v4498_v26, %v737_v3  ;;  %v938_v17 = vpop.f32.mrb[43].mxu1  ;;  %v3475_v57 = vld [vmem:[%s4887_s25 + $0x12e] sm:$0xff] }
 0x13e   : > { %1042 = vst.msk [vmem:[%s5081_s10 + $0xc0] sm:$0xff] %vm216_vm3, %v1006_v1  ;;  %v1400_v4 = vadd.f32 %v1317_v55, %v1128_v9  ;;  %v1131_v30 = vld [vmem:[%s5081_s10 + $0xb8] sm:$0xff]  ;;  %v1007_v5 = vadd.f32 %v938_v17, %v735_v10  ;;  %4758 = vmatmul.mubr.msk.bf16.gmra.mrb[148].mxu0 %vm344_vm2, %v3489_v56  ;;  %v3474_v56 = vld [vmem:[%s4887_s25 + $0x126] sm:$0xff]  ;;  %v744_v59 = vld [vmem:[%s5081_s10 + $0x110] sm:$0xff] }
 0x13f   : > { %1438 = vst.msk [vmem:[%s5081_s10 + $0xb0] sm:$0xff] %vm216_vm3, %v1402_v8  ;;  %1045 = vst.msk [vmem:[%s5081_s10 + $0xd8] sm:$0xff] %vm216_vm3, %v1009_v31  ;;  %v1403_v14 = vadd.f32 %v4532_v60, %v1131_v30  ;;  %v1129_v16 = vld [vmem:[%s5081_s10 + $0xa8] sm:$0xff]  ;;  %4724 = vmatmul.mubr.msk.bf16.gmra.mrb[148].mxu1 %vm344_vm2, %v3093_v61  ;;  %4761 = vmatprep.mubr.msk.bf16.mxu0 %vm344_vm2, %v3490_v62  ;;  %v3079_v55 = vld [vmem:[%s4887_s25 + $0x13d] sm:$0xff]  ;;  %v3493_v62 = vpack.c.bf16 %v3473_v51, %v3472_v50 }
 0x140   : > { %1436 = vst.msk [vmem:[%s5081_s10 + $0xa0] sm:$0xff] %vm216_vm3, %v1400_v4  ;;  %1043 = vst.msk [vmem:[%s5081_s10 + $0xc8] sm:$0xff] %vm216_vm3, %v1007_v5  ;;  %v1401_v42 = vadd.f32 %v1320_v6, %v1129_v16  ;;  %4727 = vmatprep.mubr.msk.bf16.mxu1 %vm344_vm2, %v3094_v7  ;;  %v742_v1 = vld [vmem:[%s5081_s10 + $0x100] sm:$0xff]  ;;  %v3097_v6 = vpack.c.bf16 %v3079_v55, %v3078_v47  ;;  %v3494_v7 = vpack.c.bf16 %v3475_v57, %v3474_v56  ;;  %v745_v31 = vld [vmem:[%s5081_s10 + $0x118] sm:$0xff] }
 0x141   : > { %1439 = vst.msk [vmem:[%s5081_s10 + $0xb8] sm:$0xff] %vm216_vm3, %v1403_v14  ;;  %v4535_v20 = vpop.f32.mrb[44].mxu0  ;;  %v1512_v47 = vld [vmem:[%s5081_s10 + $0x30] sm:$0xff]  ;;  %v1510_v51 = vld [vmem:[%s5081_s10 + $0x20] sm:$0xff] }
 0x142   : > { %1437 = vst.msk [vmem:[%s5081_s10 + $0xa8] sm:$0xff] %vm216_vm3, %v1401_v42  ;;  %v4501_v22 = vpop.f32.mrb[44].mxu1  ;;  %v1333_v23 = vpop.f32.mrb[45].mxu0 }
 0x143   : > { %v1012_v2 = vadd.f32 %v4501_v22, %v740_v0  ;;  %v951_v13 = vpop.f32.mrb[45].mxu1  ;;  %v4536_v28 = vpop.f32.mrb[46].mxu0 }
 0x144   : > { %v1134_v15 = vld [vmem:[%s5081_s10 + $0xd0] sm:$0xff]  ;;  %v1010_v35 = vadd.f32 %v951_v13, %v738_v25  ;;  %v4502_v36 = vpop.f32.mrb[46].mxu1  ;;  %v1336_v37 = vpop.f32.mrb[47].mxu0 }
 0x145   : > { %1048 = vst.msk [vmem:[%s5081_s10 + $0xf0] sm:$0xff] %vm216_vm3, %v1012_v2  ;;  %v1406_v29 = vadd.f32 %v4535_v20, %v1134_v15  ;;  %v1132_v39 = vld [vmem:[%s5081_s10 + $0xc0] sm:$0xff]  ;;  %v1013_v40 = vadd.f32 %v4502_v36, %v741_v27  ;;  %v954_v43 = vpop.f32.mrb[47].mxu1 }
 0x146   : > { %1046 = vst.msk [vmem:[%s5081_s10 + $0xe0] sm:$0xff] %vm216_vm3, %v1010_v35  ;;  %v1404_v44 = vadd.f32 %v1333_v23, %v1132_v39  ;;  %v1135_v45 = vld [vmem:[%s5081_s10 + $0xd8] sm:$0xff]  ;;  %v1011_v46 = vadd.f32 %v954_v43, %v739_v41  ;;  %4762 = vmatmul.mubr.msk.bf16.gmra.mrb[152].mxu0 %vm344_vm2, %v3491_v24  ;;  %v3495_v23 = vpack.c.bf16 %v3477_v19, %v3476_v18  ;;  %v1506_v2 = vld [vmem:[%s5081_s10] sm:$0xff] }
 0x147   : > { %1442 = vst.msk [vmem:[%s5081_s10 + $0xd0] sm:$0xff] %vm216_vm3, %v1406_v29  ;;  %1049 = vst.msk [vmem:[%s5081_s10 + $0xf8] sm:$0xff] %vm216_vm3, %v1013_v40  ;;  %v1407_v48 = vadd.f32 %v4536_v28, %v1135_v45  ;;  %v1133_v49 = vld [vmem:[%s5081_s10 + $0xc8] sm:$0xff]  ;;  %4728 = vmatmul.mubr.msk.bf16.gmra.mrb[152].mxu1 %vm344_vm2, %v3095_v33  ;;  %4765 = vmatprep.mubr.msk.bf16.mxu0 %vm344_vm2, %v3492_v34  ;;  %v1509_v34 = vld [vmem:[%s5081_s10 + $0x18] sm:$0xff] }
 0x148   : > { %1440 = vst.msk [vmem:[%s5081_s10 + $0xc0] sm:$0xff] %vm216_vm3, %v1404_v44  ;;  %1047 = vst.msk [vmem:[%s5081_s10 + $0xe8] sm:$0xff] %vm216_vm3, %v1011_v46  ;;  %v1405_v53 = vadd.f32 %v1336_v37, %v1133_v49  ;;  %4731 = vmatprep.mubr.msk.bf16.mxu1 %vm344_vm2, %v3096_v38  ;;  %v1507_v38 = vld [vmem:[%s5081_s10 + $0x8] sm:$0xff] }
 0x149   : > { %1443 = vst.msk [vmem:[%s5081_s10 + $0xd8] sm:$0xff] %vm216_vm3, %v1407_v48  ;;  %v4539_v58 = vpop.f32.mrb[48].mxu0 }
 0x14a   : > { %1441 = vst.msk [vmem:[%s5081_s10 + $0xc8] sm:$0xff] %vm216_vm3, %v1405_v53  ;;  %v4505_v60 = vpop.f32.mrb[48].mxu1  ;;  %v1349_v61 = vpop.f32.mrb[49].mxu0 }
 0x14b   : > { %v1016_v63 = vadd.f32 %v4505_v60, %v744_v59  ;;  %v967_v3 = vpop.f32.mrb[49].mxu1  ;;  %v4540_v26 = vpop.f32.mrb[50].mxu0 }
 0x14c   : > { %v1138_v8 = vld [vmem:[%s5081_s10 + $0xf0] sm:$0xff]  ;;  %v1014_v9 = vadd.f32 %v967_v3, %v742_v1  ;;  %v4506_v10 = vpop.f32.mrb[50].mxu1  ;;  %v1352_v17 = vpop.f32.mrb[51].mxu0  ;;  %v1511_v1 = vld [vmem:[%s5081_s10 + $0x28] sm:$0xff] }
 0x14d   : > { %1052 = vst.msk [vmem:[%s5081_s10 + $0x110] sm:$0xff] %vm216_vm3, %v1016_v63  ;;  %v1410_v4 = vadd.f32 %v4539_v58, %v1138_v8  ;;  %v1136_v30 = vld [vmem:[%s5081_s10 + $0xe0] sm:$0xff]  ;;  %v1017_v5 = vadd.f32 %v4506_v10, %v745_v31  ;;  %v970_v14 = vpop.f32.mrb[51].mxu1  ;;  %v1513_v58 = vld [vmem:[%s5081_s10 + $0x38] sm:$0xff] }
 0x14e   : > { %1050 = vst.msk [vmem:[%s5081_s10 + $0x100] sm:$0xff] %vm216_vm3, %v1014_v9  ;;  %v1408_v16 = vadd.f32 %v1349_v61, %v1136_v30  ;;  %v1139_v11 = vld [vmem:[%s5081_s10 + $0xf8] sm:$0xff]  ;;  %v1015_v32 = vadd.f32 %v970_v14, %v743_v12  ;;  %4766 = vmatmul.mubr.msk.bf16.gmra.mrb[156].mxu0 %vm344_vm2, %v3493_v62  ;;  %v1514_v12 = vld [vmem:[%s5081_s10 + $0x40] sm:$0xff] }
 0x14f   : > { %1446 = vst.msk [vmem:[%s5081_s10 + $0xf0] sm:$0xff] %vm216_vm3, %v1410_v4  ;;  %1053 = vst.msk [vmem:[%s5081_s10 + $0x118] sm:$0xff] %vm216_vm3, %v1017_v5  ;;  %v1411_v42 = vadd.f32 %v4540_v26, %v1139_v11  ;;  %v1137_v52 = vld [vmem:[%s5081_s10 + $0xe8] sm:$0xff]  ;;  %4732 = vmatmul.mubr.msk.bf16.gmra.mrb[156].mxu1 %vm344_vm2, %v3097_v6  ;;  %4769 = vmatprep.mubr.msk.bf16.mxu0 %vm344_vm2, %v3494_v7 }
 0x150   : > { %1444 = vst.msk [vmem:[%s5081_s10 + $0xe0] sm:$0xff] %vm216_vm3, %v1408_v16  ;;  %1051 = vst.msk [vmem:[%s5081_s10 + $0x108] sm:$0xff] %vm216_vm3, %v1015_v32  ;;  %v1409_v20 = vadd.f32 %v1352_v17, %v1137_v52  ;;  %v1516_v17 = vld [vmem:[%s5081_s10 + $0x50] sm:$0xff] }
 0x151   : > { %1447 = vst.msk [vmem:[%s5081_s10 + $0xf8] sm:$0xff] %vm216_vm3, %v1411_v42  ;;  %v4543_v54 = vpop.f32.mrb[52].mxu0  ;;  %v1517_v42 = vld [vmem:[%s5081_s10 + $0x58] sm:$0xff] }
 0x152   : > { %1445 = vst.msk [vmem:[%s5081_s10 + $0xe8] sm:$0xff] %vm216_vm3, %v1409_v20  ;;  %v4549_v0 = vpop.f32.mrb[52].mxu1  ;;  %v1365_v22 = vpop.f32.mrb[53].mxu0 }
 0x153   : > { %v1780_v24 = vadd.f32 %v4549_v0, %v1508_v21  ;;  %v1635_v25 = vpop.f32.mrb[53].mxu1  ;;  %v4544_v13 = vpop.f32.mrb[54].mxu0  ;;  %v1515_v21 = vld [vmem:[%s5081_s10 + $0x48] sm:$0xff] }
 0x154   : > { %v1142_v28 = vld [vmem:[%s5081_s10 + $0x110] sm:$0xff]  ;;  %v1778_v33 = vadd.f32 %v1635_v25, %v1506_v2  ;;  %v4550_v15 = vpop.f32.mrb[54].mxu1  ;;  %v1368_v35 = vpop.f32.mrb[55].mxu0 }
 0x155   : > { %v1414_v27 = vadd.f32 %v4543_v54, %v1142_v28  ;;  %1816 = vst.msk [vmem:[%s5081_s10 + $0x10] sm:$0xff] %vm216_vm3, %v1780_v24  ;;  %v1140_v36 = vld [vmem:[%s5081_s10 + $0x100] sm:$0xff]  ;;  %v1781_v37 = vadd.f32 %v4550_v15, %v1509_v34  ;;  %v1638_v29 = vpop.f32.mrb[55].mxu1 }
 0x156   : > { %v1412_v39 = vadd.f32 %v1365_v22, %v1140_v36  ;;  %1814 = vst.msk [vmem:[%s5081_s10] sm:$0xff] %vm216_vm3, %v1778_v33  ;;  %v1143_v40 = vld [vmem:[%s5081_s10 + $0x118] sm:$0xff]  ;;  %v1779_v41 = vadd.f32 %v1638_v29, %v1507_v38  ;;  %4770 = vmatmul.mubr.msk.bf16.gmra.mrb[160].mxu0 %vm344_vm2, %v3495_v23  ;;  %v1520_v33 = vld [vmem:[%s5081_s10 + $0x70] sm:$0xff] }
 0x157   : > { %1450 = vst.msk [vmem:[%s5081_s10 + $0x110] sm:$0xff] %vm216_vm3, %v1414_v27  ;;  %v1415_v43 = vadd.f32 %v4544_v13, %v1143_v40  ;;  %1817 = vst.msk [vmem:[%s5081_s10 + $0x18] sm:$0xff] %vm216_vm3, %v1781_v37  ;;  %v1141_v44 = vld [vmem:[%s5081_s10 + $0x108] sm:$0xff]  ;;  %v1518_v27 = vld [vmem:[%s5081_s10 + $0x60] sm:$0xff] }
 0x158   : > { %1448 = vst.msk [vmem:[%s5081_s10 + $0x100] sm:$0xff] %vm216_vm3, %v1412_v39  ;;  %v1413_v45 = vadd.f32 %v1368_v35, %v1141_v44  ;;  %1815 = vst.msk [vmem:[%s5081_s10 + $0x8] sm:$0xff] %vm216_vm3, %v1779_v41  ;;  %v1521_v39 = vld [vmem:[%s5081_s10 + $0x78] sm:$0xff] }
 0x159   : > { %1451 = vst.msk [vmem:[%s5081_s10 + $0x118] sm:$0xff] %vm216_vm3, %v1415_v43  ;;  %v4587_v46 = vpop.f32.mrb[56].mxu0 }
 0x15a   : > { %1449 = vst.msk [vmem:[%s5081_s10 + $0x108] sm:$0xff] %vm216_vm3, %v1413_v45  ;;  %v4553_v48 = vpop.f32.mrb[56].mxu1  ;;  %v2033_v49 = vpop.f32.mrb[57].mxu0 }
 0x15b   : > { %v1784_v50 = vadd.f32 %v4553_v48, %v1512_v47  ;;  %v1651_v53 = vpop.f32.mrb[57].mxu1  ;;  %v4588_v55 = vpop.f32.mrb[58].mxu0 }
 0x15c   : > { %v1906_v56 = vld [vmem:[%s5081_s10 + $0x10] sm:$0xff]  ;;  %v1782_v57 = vadd.f32 %v1651_v53, %v1510_v51  ;;  %v4554_v59 = vpop.f32.mrb[58].mxu1  ;;  %v2036_v60 = vpop.f32.mrb[59].mxu0 }
 0x15d   : > { %1820 = vst.msk [vmem:[%s5081_s10 + $0x30] sm:$0xff] %vm216_vm3, %v1784_v50  ;;  %v2178_v61 = vadd.f32 %v4587_v46, %v1906_v56  ;;  %v1904_v62 = vld [vmem:[%s5081_s10] sm:$0xff]  ;;  %v1785_v63 = vadd.f32 %v4554_v59, %v1513_v58  ;;  %v1654_v3 = vpop.f32.mrb[59].mxu1  ;;  %v1519_v46 = vld [vmem:[%s5081_s10 + $0x68] sm:$0xff] }
 0x15e   : > { %1818 = vst.msk [vmem:[%s5081_s10 + $0x20] sm:$0xff] %vm216_vm3, %v1782_v57  ;;  %v2176_v26 = vadd.f32 %v2033_v49, %v1904_v62  ;;  %v1907_v6 = vld [vmem:[%s5081_s10 + $0x18] sm:$0xff]  ;;  %v1783_v7 = vadd.f32 %v1654_v3, %v1511_v1  ;;  %v1524_v57 = vld [vmem:[%s5081_s10 + $0x90] sm:$0xff] }
 0x15f   : > { %2214 = vst.msk [vmem:[%s5081_s10 + $0x10] sm:$0xff] %vm216_vm3, %v2178_v61  ;;  %1821 = vst.msk [vmem:[%s5081_s10 + $0x38] sm:$0xff] %vm216_vm3, %v1785_v63  ;;  %v2179_v8 = vadd.f32 %v4588_v55, %v1907_v6  ;;  %v1905_v9 = vld [vmem:[%s5081_s10 + $0x8] sm:$0xff]  ;;  %v1522_v61 = vld [vmem:[%s5081_s10 + $0x80] sm:$0xff] }
 0x160   : > { %2212 = vst.msk [vmem:[%s5081_s10] sm:$0xff] %vm216_vm3, %v2176_v26  ;;  %1819 = vst.msk [vmem:[%s5081_s10 + $0x28] sm:$0xff] %vm216_vm3, %v1783_v7  ;;  %v2177_v31 = vadd.f32 %v2036_v60, %v1905_v9  ;;  %v1525_v26 = vld [vmem:[%s5081_s10 + $0x98] sm:$0xff] }
 0x161   : > { %2215 = vst.msk [vmem:[%s5081_s10 + $0x18] sm:$0xff] %vm216_vm3, %v2179_v8  ;;  %v4591_v10 = vpop.f32.mrb[60].mxu0 }
 0x162   : > { %2213 = vst.msk [vmem:[%s5081_s10 + $0x8] sm:$0xff] %vm216_vm3, %v2177_v31  ;;  %v4557_v4 = vpop.f32.mrb[60].mxu1  ;;  %v2049_v30 = vpop.f32.mrb[61].mxu0 }
 0x163   : > { %v1788_v5 = vadd.f32 %v4557_v4, %v1516_v17  ;;  %v1667_v14 = vpop.f32.mrb[61].mxu1  ;;  %v4592_v16 = vpop.f32.mrb[62].mxu0 }
 0x164   : > { %v1910_v11 = vld [vmem:[%s5081_s10 + $0x30] sm:$0xff]  ;;  %v1786_v32 = vadd.f32 %v1667_v14, %v1514_v12  ;;  %v4558_v52 = vpop.f32.mrb[62].mxu1  ;;  %v2052_v18 = vpop.f32.mrb[63].mxu0 }
 0x165   : > { %1824 = vst.msk [vmem:[%s5081_s10 + $0x50] sm:$0xff] %vm216_vm3, %v1788_v5  ;;  %v2182_v19 = vadd.f32 %v4591_v10, %v1910_v11  ;;  %v1908_v20 = vld [vmem:[%s5081_s10 + $0x20] sm:$0xff]  ;;  %v1789_v54 = vadd.f32 %v4558_v52, %v1517_v42  ;;  %v1670_v0 = vpop.f32.mrb[63].mxu1  ;;  %v1523_v10 = vld [vmem:[%s5081_s10 + $0x88] sm:$0xff] }
 0x166   : > { %1822 = vst.msk [vmem:[%s5081_s10 + $0x40] sm:$0xff] %vm216_vm3, %v1786_v32  ;;  %v2180_v22 = vadd.f32 %v2049_v30, %v1908_v20  ;;  %v1911_v23 = vld [vmem:[%s5081_s10 + $0x38] sm:$0xff]  ;;  %v1787_v24 = vadd.f32 %v1670_v0, %v1515_v21  ;;  %v1528_v32 = vld [vmem:[%s5081_s10 + $0xb0] sm:$0xff] }
 0x167   : > { %2218 = vst.msk [vmem:[%s5081_s10 + $0x30] sm:$0xff] %vm216_vm3, %v2182_v19  ;;  %1825 = vst.msk [vmem:[%s5081_s10 + $0x58] sm:$0xff] %vm216_vm3, %v1789_v54  ;;  %v2183_v2 = vadd.f32 %v4592_v16, %v1911_v23  ;;  %v1909_v25 = vld [vmem:[%s5081_s10 + $0x28] sm:$0xff]  ;;  %v1526_v19 = vld [vmem:[%s5081_s10 + $0xa0] sm:$0xff] }
 0x168   : > { %2216 = vst.msk [vmem:[%s5081_s10 + $0x20] sm:$0xff] %vm216_vm3, %v2180_v22  ;;  %1823 = vst.msk [vmem:[%s5081_s10 + $0x48] sm:$0xff] %vm216_vm3, %v1787_v24  ;;  %v2181_v13 = vadd.f32 %v2052_v18, %v1909_v25  ;;  %v1529_v22 = vld [vmem:[%s5081_s10 + $0xb8] sm:$0xff] }
 0x169   : > { %2219 = vst.msk [vmem:[%s5081_s10 + $0x38] sm:$0xff] %vm216_vm3, %v2183_v2  ;;  %v4595_v28 = vpop.f32.mrb[64].mxu0 }
 0x16a   : > { %2217 = vst.msk [vmem:[%s5081_s10 + $0x28] sm:$0xff] %vm216_vm3, %v2181_v13  ;;  %v4561_v34 = vpop.f32.mrb[64].mxu1  ;;  %v2065_v15 = vpop.f32.mrb[65].mxu0 }
 0x16b   : > { %v1792_v35 = vadd.f32 %v4561_v34, %v1520_v33  ;;  %v1683_v36 = vpop.f32.mrb[65].mxu1  ;;  %v4596_v37 = vpop.f32.mrb[66].mxu0 }
 0x16c   : > { %v1914_v38 = vld [vmem:[%s5081_s10 + $0x50] sm:$0xff]  ;;  %v1790_v29 = vadd.f32 %v1683_v36, %v1518_v27  ;;  %v4562_v40 = vpop.f32.mrb[66].mxu1  ;;  %v2068_v41 = vpop.f32.mrb[67].mxu0 }
 0x16d   : > { %1828 = vst.msk [vmem:[%s5081_s10 + $0x70] sm:$0xff] %vm216_vm3, %v1792_v35  ;;  %v2186_v43 = vadd.f32 %v4595_v28, %v1914_v38  ;;  %v1912_v44 = vld [vmem:[%s5081_s10 + $0x40] sm:$0xff]  ;;  %v1793_v45 = vadd.f32 %v4562_v40, %v1521_v39  ;;  %v1686_v47 = vpop.f32.mrb[67].mxu1  ;;  %v1527_v28 = vld [vmem:[%s5081_s10 + $0xa8] sm:$0xff] }
 0x16e   : > { %1826 = vst.msk [vmem:[%s5081_s10 + $0x60] sm:$0xff] %vm216_vm3, %v1790_v29  ;;  %v2184_v48 = vadd.f32 %v2065_v15, %v1912_v44  ;;  %v1915_v49 = vld [vmem:[%s5081_s10 + $0x58] sm:$0xff]  ;;  %v1791_v50 = vadd.f32 %v1686_v47, %v1519_v46  ;;  %v1532_v29 = vld [vmem:[%s5081_s10 + $0xd0] sm:$0xff] }
 0x16f   : > { %2222 = vst.msk [vmem:[%s5081_s10 + $0x50] sm:$0xff] %vm216_vm3, %v2186_v43  ;;  %1829 = vst.msk [vmem:[%s5081_s10 + $0x78] sm:$0xff] %vm216_vm3, %v1793_v45  ;;  %v2187_v51 = vadd.f32 %v4596_v37, %v1915_v49  ;;  %v1913_v53 = vld [vmem:[%s5081_s10 + $0x48] sm:$0xff]  ;;  %v1530_v43 = vld [vmem:[%s5081_s10 + $0xc0] sm:$0xff] }
 0x170   : > { %2220 = vst.msk [vmem:[%s5081_s10 + $0x40] sm:$0xff] %vm216_vm3, %v2184_v48  ;;  %1827 = vst.msk [vmem:[%s5081_s10 + $0x68] sm:$0xff] %vm216_vm3, %v1791_v50  ;;  %v2185_v55 = vadd.f32 %v2068_v41, %v1913_v53  ;;  %v1533_v48 = vld [vmem:[%s5081_s10 + $0xd8] sm:$0xff] }
 0x171   : > { %2223 = vst.msk [vmem:[%s5081_s10 + $0x58] sm:$0xff] %vm216_vm3, %v2187_v51  ;;  %v4599_v56 = vpop.f32.mrb[68].mxu0 }
 0x172   : > { %2221 = vst.msk [vmem:[%s5081_s10 + $0x48] sm:$0xff] %vm216_vm3, %v2185_v55  ;;  %v4565_v58 = vpop.f32.mrb[68].mxu1  ;;  %v2081_v59 = vpop.f32.mrb[69].mxu0 }
 0x173   : > { %v1796_v60 = vadd.f32 %v4565_v58, %v1524_v57  ;;  %v1699_v62 = vpop.f32.mrb[69].mxu1  ;;  %v4600_v63 = vpop.f32.mrb[70].mxu0 }
 0x174   : > { %v1918_v1 = vld [vmem:[%s5081_s10 + $0x70] sm:$0xff]  ;;  %v1794_v3 = vadd.f32 %v1699_v62, %v1522_v61  ;;  %v4566_v6 = vpop.f32.mrb[70].mxu1  ;;  %v2084_v7 = vpop.f32.mrb[71].mxu0 }
 0x175   : > { %1832 = vst.msk [vmem:[%s5081_s10 + $0x90] sm:$0xff] %vm216_vm3, %v1796_v60  ;;  %v2190_v8 = vadd.f32 %v4599_v56, %v1918_v1  ;;  %v1916_v9 = vld [vmem:[%s5081_s10 + $0x60] sm:$0xff]  ;;  %v1797_v31 = vadd.f32 %v4566_v6, %v1525_v26  ;;  %v1702_v17 = vpop.f32.mrb[71].mxu1  ;;  %v1531_v56 = vld [vmem:[%s5081_s10 + $0xc8] sm:$0xff] }
 0x176   : > { %1830 = vst.msk [vmem:[%s5081_s10 + $0x80] sm:$0xff] %vm216_vm3, %v1794_v3  ;;  %v2188_v4 = vadd.f32 %v2081_v59, %v1916_v9  ;;  %v1919_v30 = vld [vmem:[%s5081_s10 + $0x78] sm:$0xff]  ;;  %v1795_v5 = vadd.f32 %v1702_v17, %v1523_v10  ;;  %v1536_v3 = vld [vmem:[%s5081_s10 + $0xf0] sm:$0xff] }
 0x177   : > { %2226 = vst.msk [vmem:[%s5081_s10 + $0x70] sm:$0xff] %vm216_vm3, %v2190_v8  ;;  %1833 = vst.msk [vmem:[%s5081_s10 + $0x98] sm:$0xff] %vm216_vm3, %v1797_v31  ;;  %v2191_v12 = vadd.f32 %v4600_v63, %v1919_v30  ;;  %v1917_v14 = vld [vmem:[%s5081_s10 + $0x68] sm:$0xff]  ;;  %v1534_v8 = vld [vmem:[%s5081_s10 + $0xe0] sm:$0xff] }
 0x178   : > { %2224 = vst.msk [vmem:[%s5081_s10 + $0x60] sm:$0xff] %vm216_vm3, %v2188_v4  ;;  %1831 = vst.msk [vmem:[%s5081_s10 + $0x88] sm:$0xff] %vm216_vm3, %v1795_v5  ;;  %v2189_v16 = vadd.f32 %v2084_v7, %v1917_v14  ;;  %v1537_v4 = vld [vmem:[%s5081_s10 + $0xf8] sm:$0xff] }
 0x179   : > { %2227 = vst.msk [vmem:[%s5081_s10 + $0x78] sm:$0xff] %vm216_vm3, %v2191_v12  ;;  %v4603_v11 = vpop.f32.mrb[72].mxu0 }
 0x17a   : > { %2225 = vst.msk [vmem:[%s5081_s10 + $0x68] sm:$0xff] %vm216_vm3, %v2189_v16  ;;  %v4569_v42 = vpop.f32.mrb[72].mxu1  ;;  %v2097_v52 = vpop.f32.mrb[73].mxu0 }
 0x17b   : > { %v1800_v18 = vadd.f32 %v4569_v42, %v1528_v32  ;;  %v1715_v20 = vpop.f32.mrb[73].mxu1  ;;  %v4604_v54 = vpop.f32.mrb[74].mxu0 }
 0x17c   : > { %v1922_v21 = vld [vmem:[%s5081_s10 + $0x90] sm:$0xff]  ;;  %v1798_v0 = vadd.f32 %v1715_v20, %v1526_v19  ;;  %v4570_v23 = vpop.f32.mrb[74].mxu1  ;;  %v2100_v24 = vpop.f32.mrb[75].mxu0 }
 0x17d   : > { %1836 = vst.msk [vmem:[%s5081_s10 + $0xb0] sm:$0xff] %vm216_vm3, %v1800_v18  ;;  %v2194_v2 = vadd.f32 %v4603_v11, %v1922_v21  ;;  %v1920_v25 = vld [vmem:[%s5081_s10 + $0x80] sm:$0xff]  ;;  %v1801_v13 = vadd.f32 %v4570_v23, %v1529_v22  ;;  %v1718_v33 = vpop.f32.mrb[75].mxu1  ;;  %v1535_v11 = vld [vmem:[%s5081_s10 + $0xe8] sm:$0xff] }
 0x17e   : > { %1834 = vst.msk [vmem:[%s5081_s10 + $0xa0] sm:$0xff] %vm216_vm3, %v1798_v0  ;;  %v2192_v34 = vadd.f32 %v2097_v52, %v1920_v25  ;;  %v1923_v15 = vld [vmem:[%s5081_s10 + $0x98] sm:$0xff]  ;;  %v1799_v35 = vadd.f32 %v1718_v33, %v1527_v28  ;;  %v1540_v0 = vld [vmem:[%s5081_s10 + $0x110] sm:$0xff] }
 0x17f   : > { %2230 = vst.msk [vmem:[%s5081_s10 + $0x90] sm:$0xff] %vm216_vm3, %v2194_v2  ;;  %1837 = vst.msk [vmem:[%s5081_s10 + $0xb8] sm:$0xff] %vm216_vm3, %v1801_v13  ;;  %v2195_v27 = vadd.f32 %v4604_v54, %v1923_v15  ;;  %v1921_v36 = vld [vmem:[%s5081_s10 + $0x88] sm:$0xff]  ;;  %v1538_v2 = vld [vmem:[%s5081_s10 + $0x100] sm:$0xff] }
 0x180   : > { %2228 = vst.msk [vmem:[%s5081_s10 + $0x80] sm:$0xff] %vm216_vm3, %v2192_v34  ;;  %1835 = vst.msk [vmem:[%s5081_s10 + $0xa8] sm:$0xff] %vm216_vm3, %v1799_v35  ;;  %v2193_v37 = vadd.f32 %v2100_v24, %v1921_v36  ;;  %v1541_v34 = vld [vmem:[%s5081_s10 + $0x118] sm:$0xff] }
 0x181   : > { %2231 = vst.msk [vmem:[%s5081_s10 + $0x98] sm:$0xff] %vm216_vm3, %v2195_v27  ;;  %v4607_v38 = vpop.f32.mrb[76].mxu0 }
 0x182   : > { %2229 = vst.msk [vmem:[%s5081_s10 + $0x88] sm:$0xff] %vm216_vm3, %v2193_v37  ;;  %v4573_v39 = vpop.f32.mrb[76].mxu1  ;;  %v2113_v40 = vpop.f32.mrb[77].mxu0 }
 0x183   : > { %v1804_v41 = vadd.f32 %v4573_v39, %v1532_v29  ;;  %v1731_v44 = vpop.f32.mrb[77].mxu1  ;;  %v4608_v45 = vpop.f32.mrb[78].mxu0 }
 0x184   : > { %v1926_v46 = vld [vmem:[%s5081_s10 + $0xb0] sm:$0xff]  ;;  %v1802_v47 = vadd.f32 %v1731_v44, %v1530_v43  ;;  %v4574_v49 = vpop.f32.mrb[78].mxu1  ;;  %v2116_v50 = vpop.f32.mrb[79].mxu0 }
 0x185   : > { %1840 = vst.msk [vmem:[%s5081_s10 + $0xd0] sm:$0xff] %vm216_vm3, %v1804_v41  ;;  %v2198_v51 = vadd.f32 %v4607_v38, %v1926_v46  ;;  %v1924_v53 = vld [vmem:[%s5081_s10 + $0xa0] sm:$0xff]  ;;  %v1805_v55 = vadd.f32 %v4574_v49, %v1533_v48  ;;  %v1734_v57 = vpop.f32.mrb[79].mxu1  ;;  %v1539_v38 = vld [vmem:[%s5081_s10 + $0x108] sm:$0xff] }
 0x186   : > { %1838 = vst.msk [vmem:[%s5081_s10 + $0xc0] sm:$0xff] %vm216_vm3, %v1802_v47  ;;  %v2196_v58 = vadd.f32 %v2113_v40, %v1924_v53  ;;  %v1927_v59 = vld [vmem:[%s5081_s10 + $0xb8] sm:$0xff]  ;;  %v1803_v60 = vadd.f32 %v1734_v57, %v1531_v56  ;;  %v2304_v47 = vld [vmem:[%s5081_s10 + $0x10] sm:$0xff] }
 0x187   : > { %2234 = vst.msk [vmem:[%s5081_s10 + $0xb0] sm:$0xff] %vm216_vm3, %v2198_v51  ;;  %1841 = vst.msk [vmem:[%s5081_s10 + $0xd8] sm:$0xff] %vm216_vm3, %v1805_v55  ;;  %v2199_v61 = vadd.f32 %v4608_v45, %v1927_v59  ;;  %v1925_v62 = vld [vmem:[%s5081_s10 + $0xa8] sm:$0xff]  ;;  %v2302_v51 = vld [vmem:[%s5081_s10] sm:$0xff] }
 0x188   : > { %2232 = vst.msk [vmem:[%s5081_s10 + $0xa0] sm:$0xff] %vm216_vm3, %v2196_v58  ;;  %1839 = vst.msk [vmem:[%s5081_s10 + $0xc8] sm:$0xff] %vm216_vm3, %v1803_v60  ;;  %v2197_v63 = vadd.f32 %v2116_v50, %v1925_v62  ;;  %v2305_v58 = vld [vmem:[%s5081_s10 + $0x18] sm:$0xff] }
 0x189   : > { %2235 = vst.msk [vmem:[%s5081_s10 + $0xb8] sm:$0xff] %vm216_vm3, %v2199_v61  ;;  %v4611_v1 = vpop.f32.mrb[80].mxu0 }
 0x18a   : > { %2233 = vst.msk [vmem:[%s5081_s10 + $0xa8] sm:$0xff] %vm216_vm3, %v2197_v63  ;;  %v4577_v26 = vpop.f32.mrb[80].mxu1  ;;  %v2129_v6 = vpop.f32.mrb[81].mxu0 }
 0x18b   : > { %v1808_v7 = vadd.f32 %v4577_v26, %v1536_v3  ;;  %v1747_v9 = vpop.f32.mrb[81].mxu1  ;;  %v4612_v31 = vpop.f32.mrb[82].mxu0 }
 0x18c   : > { %v1930_v10 = vld [vmem:[%s5081_s10 + $0xd0] sm:$0xff]  ;;  %v1806_v17 = vadd.f32 %v1747_v9, %v1534_v8  ;;  %v4578_v30 = vpop.f32.mrb[82].mxu1  ;;  %v2132_v5 = vpop.f32.mrb[83].mxu0 }
 0x18d   : > { %1844 = vst.msk [vmem:[%s5081_s10 + $0xf0] sm:$0xff] %vm216_vm3, %v1808_v7  ;;  %v2202_v12 = vadd.f32 %v4611_v1, %v1930_v10  ;;  %v1928_v14 = vld [vmem:[%s5081_s10 + $0xc0] sm:$0xff]  ;;  %v1809_v16 = vadd.f32 %v4578_v30, %v1537_v4  ;;  %v1750_v32 = vpop.f32.mrb[83].mxu1  ;;  %v2303_v1 = vld [vmem:[%s5081_s10 + $0x8] sm:$0xff] }
 0x18e   : > { %1842 = vst.msk [vmem:[%s5081_s10 + $0xe0] sm:$0xff] %vm216_vm3, %v1806_v17  ;;  %v2200_v42 = vadd.f32 %v2129_v6, %v1928_v14  ;;  %v1931_v52 = vld [vmem:[%s5081_s10 + $0xd8] sm:$0xff]  ;;  %v1807_v18 = vadd.f32 %v1750_v32, %v1535_v11  ;;  %v2308_v17 = vld [vmem:[%s5081_s10 + $0x30] sm:$0xff] }
 0x18f   : > { %2238 = vst.msk [vmem:[%s5081_s10 + $0xd0] sm:$0xff] %vm216_vm3, %v2202_v12  ;;  %1845 = vst.msk [vmem:[%s5081_s10 + $0xf8] sm:$0xff] %vm216_vm3, %v1809_v16  ;;  %v2203_v19 = vadd.f32 %v4612_v31, %v1931_v52  ;;  %v1929_v20 = vld [vmem:[%s5081_s10 + $0xc8] sm:$0xff]  ;;  %v2306_v12 = vld [vmem:[%s5081_s10 + $0x20] sm:$0xff] }
 0x190   : > { %2236 = vst.msk [vmem:[%s5081_s10 + $0xc0] sm:$0xff] %vm216_vm3, %v2200_v42  ;;  %1843 = vst.msk [vmem:[%s5081_s10 + $0xe8] sm:$0xff] %vm216_vm3, %v1807_v18  ;;  %v2201_v54 = vadd.f32 %v2132_v5, %v1929_v20  ;;  %v2309_v42 = vld [vmem:[%s5081_s10 + $0x38] sm:$0xff] }
 0x191   : > { %2239 = vst.msk [vmem:[%s5081_s10 + $0xd8] sm:$0xff] %vm216_vm3, %v2203_v19  ;;  %v4615_v21 = vpop.f32.mrb[84].mxu0 }
 0x192   : > { %2237 = vst.msk [vmem:[%s5081_s10 + $0xc8] sm:$0xff] %vm216_vm3, %v2201_v54  ;;  %v4581_v22 = vpop.f32.mrb[84].mxu1  ;;  %v2145_v23 = vpop.f32.mrb[85].mxu0 }
 0x193   : > { %v1812_v24 = vadd.f32 %v4581_v22, %v1540_v0  ;;  %v1763_v25 = vpop.f32.mrb[85].mxu1  ;;  %v4616_v13 = vpop.f32.mrb[86].mxu0 }
 0x194   : > { %v1934_v28 = vld [vmem:[%s5081_s10 + $0xf0] sm:$0xff]  ;;  %v1810_v33 = vadd.f32 %v1763_v25, %v1538_v2  ;;  %v4582_v15 = vpop.f32.mrb[86].mxu1  ;;  %v2148_v35 = vpop.f32.mrb[87].mxu0 }
 0x195   : > { %1848 = vst.msk [vmem:[%s5081_s10 + $0x110] sm:$0xff] %vm216_vm3, %v1812_v24  ;;  %v2206_v27 = vadd.f32 %v4615_v21, %v1934_v28  ;;  %v1932_v36 = vld [vmem:[%s5081_s10 + $0xe0] sm:$0xff]  ;;  %v1813_v37 = vadd.f32 %v4582_v15, %v1541_v34  ;;  %v1766_v29 = vpop.f32.mrb[87].mxu1  ;;  %v2307_v21 = vld [vmem:[%s5081_s10 + $0x28] sm:$0xff] }
 0x196   : > { %1846 = vst.msk [vmem:[%s5081_s10 + $0x100] sm:$0xff] %vm216_vm3, %v1810_v33  ;;  %v2204_v39 = vadd.f32 %v2145_v23, %v1932_v36  ;;  %v1935_v40 = vld [vmem:[%s5081_s10 + $0xf8] sm:$0xff]  ;;  %v1811_v41 = vadd.f32 %v1766_v29, %v1539_v38  ;;  %v2312_v33 = vld [vmem:[%s5081_s10 + $0x50] sm:$0xff] }
 0x197   : > { %2242 = vst.msk [vmem:[%s5081_s10 + $0xf0] sm:$0xff] %vm216_vm3, %v2206_v27  ;;  %1849 = vst.msk [vmem:[%s5081_s10 + $0x118] sm:$0xff] %vm216_vm3, %v1813_v37  ;;  %v2207_v43 = vadd.f32 %v4616_v13, %v1935_v40  ;;  %v1933_v44 = vld [vmem:[%s5081_s10 + $0xe8] sm:$0xff]  ;;  %v2310_v27 = vld [vmem:[%s5081_s10 + $0x40] sm:$0xff] }
 0x198   : > { %2240 = vst.msk [vmem:[%s5081_s10 + $0xe0] sm:$0xff] %vm216_vm3, %v2204_v39  ;;  %1847 = vst.msk [vmem:[%s5081_s10 + $0x108] sm:$0xff] %vm216_vm3, %v1811_v41  ;;  %v2205_v45 = vadd.f32 %v2148_v35, %v1933_v44  ;;  %v2313_v39 = vld [vmem:[%s5081_s10 + $0x58] sm:$0xff] }
 0x199   : > { %2243 = vst.msk [vmem:[%s5081_s10 + $0xf8] sm:$0xff] %vm216_vm3, %v2207_v43  ;;  %v4619_v46 = vpop.f32.mrb[88].mxu0 }
 0x19a   : > { %2241 = vst.msk [vmem:[%s5081_s10 + $0xe8] sm:$0xff] %vm216_vm3, %v2205_v45  ;;  %v4625_v48 = vpop.f32.mrb[88].mxu1  ;;  %v2161_v49 = vpop.f32.mrb[89].mxu0 }
 0x19b   : > { %v2576_v50 = vadd.f32 %v4625_v48, %v2304_v47  ;;  %v2431_v53 = vpop.f32.mrb[89].mxu1  ;;  %v4620_v55 = vpop.f32.mrb[90].mxu0 }
 0x19c   : > { %v1938_v56 = vld [vmem:[%s5081_s10 + $0x110] sm:$0xff]  ;;  %v2574_v57 = vadd.f32 %v2431_v53, %v2302_v51  ;;  %v4626_v59 = vpop.f32.mrb[90].mxu1  ;;  %v2164_v60 = vpop.f32.mrb[91].mxu0 }
 0x19d   : > { %v2210_v61 = vadd.f32 %v4619_v46, %v1938_v56  ;;  %2612 = vst.msk [vmem:[%s5081_s10 + $0x10] sm:$0xff] %vm216_vm3, %v2576_v50  ;;  %v1936_v62 = vld [vmem:[%s5081_s10 + $0x100] sm:$0xff]  ;;  %v2577_v63 = vadd.f32 %v4626_v59, %v2305_v58  ;;  %v2434_v3 = vpop.f32.mrb[91].mxu1  ;;  %v2311_v46 = vld [vmem:[%s5081_s10 + $0x48] sm:$0xff] }
 0x19e   : > { %v2208_v26 = vadd.f32 %v2161_v49, %v1936_v62  ;;  %2610 = vst.msk [vmem:[%s5081_s10] sm:$0xff] %vm216_vm3, %v2574_v57  ;;  %v1939_v6 = vld [vmem:[%s5081_s10 + $0x118] sm:$0xff]  ;;  %v2575_v7 = vadd.f32 %v2434_v3, %v2303_v1  ;;  %v2316_v57 = vld [vmem:[%s5081_s10 + $0x70] sm:$0xff] }
 0x19f   : > { %2246 = vst.msk [vmem:[%s5081_s10 + $0x110] sm:$0xff] %vm216_vm3, %v2210_v61  ;;  %v2211_v8 = vadd.f32 %v4620_v55, %v1939_v6  ;;  %2613 = vst.msk [vmem:[%s5081_s10 + $0x18] sm:$0xff] %vm216_vm3, %v2577_v63  ;;  %v1937_v9 = vld [vmem:[%s5081_s10 + $0x108] sm:$0xff]  ;;  %v2314_v61 = vld [vmem:[%s5081_s10 + $0x60] sm:$0xff] }
 0x1a0   : > { %2244 = vst.msk [vmem:[%s5081_s10 + $0x100] sm:$0xff] %vm216_vm3, %v2208_v26  ;;  %v2209_v31 = vadd.f32 %v2164_v60, %v1937_v9  ;;  %2611 = vst.msk [vmem:[%s5081_s10 + $0x8] sm:$0xff] %vm216_vm3, %v2575_v7  ;;  %v2317_v26 = vld [vmem:[%s5081_s10 + $0x78] sm:$0xff] }
 0x1a1   : > { %2247 = vst.msk [vmem:[%s5081_s10 + $0x118] sm:$0xff] %vm216_vm3, %v2211_v8  ;;  %v4663_v10 = vpop.f32.mrb[92].mxu0 }
 0x1a2   : > { %2245 = vst.msk [vmem:[%s5081_s10 + $0x108] sm:$0xff] %vm216_vm3, %v2209_v31  ;;  %v4629_v4 = vpop.f32.mrb[92].mxu1  ;;  %v2829_v30 = vpop.f32.mrb[93].mxu0 }
 0x1a3   : > { %v2580_v5 = vadd.f32 %v4629_v4, %v2308_v17  ;;  %v2447_v14 = vpop.f32.mrb[93].mxu1  ;;  %v4664_v16 = vpop.f32.mrb[94].mxu0 }
 0x1a4   : > { %v2702_v11 = vld [vmem:[%s5081_s10 + $0x10] sm:$0xff]  ;;  %v2578_v32 = vadd.f32 %v2447_v14, %v2306_v12  ;;  %v4630_v52 = vpop.f32.mrb[94].mxu1  ;;  %v2832_v18 = vpop.f32.mrb[95].mxu0 }
 0x1a5   : > { %2616 = vst.msk [vmem:[%s5081_s10 + $0x30] sm:$0xff] %vm216_vm3, %v2580_v5  ;;  %v2974_v19 = vadd.f32 %v4663_v10, %v2702_v11  ;;  %v2700_v20 = vld [vmem:[%s5081_s10] sm:$0xff]  ;;  %v2581_v54 = vadd.f32 %v4630_v52, %v2309_v42  ;;  %v2450_v0 = vpop.f32.mrb[95].mxu1  ;;  %v2315_v10 = vld [vmem:[%s5081_s10 + $0x68] sm:$0xff] }
 0x1a6   : > { %2614 = vst.msk [vmem:[%s5081_s10 + $0x20] sm:$0xff] %vm216_vm3, %v2578_v32  ;;  %v2972_v22 = vadd.f32 %v2829_v30, %v2700_v20  ;;  %v2703_v23 = vld [vmem:[%s5081_s10 + $0x18] sm:$0xff]  ;;  %v2579_v24 = vadd.f32 %v2450_v0, %v2307_v21  ;;  %v2320_v32 = vld [vmem:[%s5081_s10 + $0x90] sm:$0xff] }
 0x1a7   : > { %3010 = vst.msk [vmem:[%s5081_s10 + $0x10] sm:$0xff] %vm216_vm3, %v2974_v19  ;;  %2617 = vst.msk [vmem:[%s5081_s10 + $0x38] sm:$0xff] %vm216_vm3, %v2581_v54  ;;  %v2975_v2 = vadd.f32 %v4664_v16, %v2703_v23  ;;  %v2701_v25 = vld [vmem:[%s5081_s10 + $0x8] sm:$0xff]  ;;  %v2318_v19 = vld [vmem:[%s5081_s10 + $0x80] sm:$0xff] }
 0x1a8   : > { %3008 = vst.msk [vmem:[%s5081_s10] sm:$0xff] %vm216_vm3, %v2972_v22  ;;  %2615 = vst.msk [vmem:[%s5081_s10 + $0x28] sm:$0xff] %vm216_vm3, %v2579_v24  ;;  %v2973_v13 = vadd.f32 %v2832_v18, %v2701_v25  ;;  %v2321_v22 = vld [vmem:[%s5081_s10 + $0x98] sm:$0xff] }
 0x1a9   : > { %3011 = vst.msk [vmem:[%s5081_s10 + $0x18] sm:$0xff] %vm216_vm3, %v2975_v2  ;;  %v4667_v28 = vpop.f32.mrb[96].mxu0 }
 0x1aa   : > { %3009 = vst.msk [vmem:[%s5081_s10 + $0x8] sm:$0xff] %vm216_vm3, %v2973_v13  ;;  %v4633_v34 = vpop.f32.mrb[96].mxu1  ;;  %v2845_v15 = vpop.f32.mrb[97].mxu0 }
 0x1ab   : > { %v2584_v35 = vadd.f32 %v4633_v34, %v2312_v33  ;;  %v2463_v36 = vpop.f32.mrb[97].mxu1  ;;  %v4668_v37 = vpop.f32.mrb[98].mxu0 }
 0x1ac   : > { %v2706_v38 = vld [vmem:[%s5081_s10 + $0x30] sm:$0xff]  ;;  %v2582_v29 = vadd.f32 %v2463_v36, %v2310_v27  ;;  %v4634_v40 = vpop.f32.mrb[98].mxu1  ;;  %v2848_v41 = vpop.f32.mrb[99].mxu0 }
 0x1ad   : > { %2620 = vst.msk [vmem:[%s5081_s10 + $0x50] sm:$0xff] %vm216_vm3, %v2584_v35  ;;  %v2978_v43 = vadd.f32 %v4667_v28, %v2706_v38  ;;  %v2704_v44 = vld [vmem:[%s5081_s10 + $0x20] sm:$0xff]  ;;  %v2585_v45 = vadd.f32 %v4634_v40, %v2313_v39  ;;  %v2466_v47 = vpop.f32.mrb[99].mxu1  ;;  %v2319_v28 = vld [vmem:[%s5081_s10 + $0x88] sm:$0xff] }
 0x1ae   : > { %2618 = vst.msk [vmem:[%s5081_s10 + $0x40] sm:$0xff] %vm216_vm3, %v2582_v29  ;;  %v2976_v48 = vadd.f32 %v2845_v15, %v2704_v44  ;;  %v2707_v49 = vld [vmem:[%s5081_s10 + $0x38] sm:$0xff]  ;;  %v2583_v50 = vadd.f32 %v2466_v47, %v2311_v46  ;;  %v2324_v29 = vld [vmem:[%s5081_s10 + $0xb0] sm:$0xff] }
 0x1af   : > { %3014 = vst.msk [vmem:[%s5081_s10 + $0x30] sm:$0xff] %vm216_vm3, %v2978_v43  ;;  %2621 = vst.msk [vmem:[%s5081_s10 + $0x58] sm:$0xff] %vm216_vm3, %v2585_v45  ;;  %v2979_v51 = vadd.f32 %v4668_v37, %v2707_v49  ;;  %v2705_v53 = vld [vmem:[%s5081_s10 + $0x28] sm:$0xff]  ;;  %v2322_v43 = vld [vmem:[%s5081_s10 + $0xa0] sm:$0xff] }
 0x1b0   : > { %3012 = vst.msk [vmem:[%s5081_s10 + $0x20] sm:$0xff] %vm216_vm3, %v2976_v48  ;;  %2619 = vst.msk [vmem:[%s5081_s10 + $0x48] sm:$0xff] %vm216_vm3, %v2583_v50  ;;  %v2977_v55 = vadd.f32 %v2848_v41, %v2705_v53  ;;  %v2325_v48 = vld [vmem:[%s5081_s10 + $0xb8] sm:$0xff] }
 0x1b1   : > { %3015 = vst.msk [vmem:[%s5081_s10 + $0x38] sm:$0xff] %vm216_vm3, %v2979_v51  ;;  %v4671_v56 = vpop.f32.mrb[100].mxu0 }
 0x1b2   : > { %3013 = vst.msk [vmem:[%s5081_s10 + $0x28] sm:$0xff] %vm216_vm3, %v2977_v55  ;;  %v4637_v58 = vpop.f32.mrb[100].mxu1  ;;  %v2861_v59 = vpop.f32.mrb[101].mxu0 }
 0x1b3   : > { %v2588_v60 = vadd.f32 %v4637_v58, %v2316_v57  ;;  %v2479_v62 = vpop.f32.mrb[101].mxu1  ;;  %v4672_v63 = vpop.f32.mrb[102].mxu0 }
 0x1b4   : > { %v2710_v1 = vld [vmem:[%s5081_s10 + $0x50] sm:$0xff]  ;;  %v2586_v3 = vadd.f32 %v2479_v62, %v2314_v61  ;;  %v4638_v6 = vpop.f32.mrb[102].mxu1  ;;  %v2864_v7 = vpop.f32.mrb[103].mxu0 }
 0x1b5   : > { %2624 = vst.msk [vmem:[%s5081_s10 + $0x70] sm:$0xff] %vm216_vm3, %v2588_v60  ;;  %v2982_v8 = vadd.f32 %v4671_v56, %v2710_v1  ;;  %v2708_v9 = vld [vmem:[%s5081_s10 + $0x40] sm:$0xff]  ;;  %v2589_v31 = vadd.f32 %v4638_v6, %v2317_v26  ;;  %v2482_v17 = vpop.f32.mrb[103].mxu1  ;;  %v2323_v56 = vld [vmem:[%s5081_s10 + $0xa8] sm:$0xff] }
 0x1b6   : > { %2622 = vst.msk [vmem:[%s5081_s10 + $0x60] sm:$0xff] %vm216_vm3, %v2586_v3  ;;  %v2980_v4 = vadd.f32 %v2861_v59, %v2708_v9  ;;  %v2711_v30 = vld [vmem:[%s5081_s10 + $0x58] sm:$0xff]  ;;  %v2587_v5 = vadd.f32 %v2482_v17, %v2315_v10  ;;  %v2328_v3 = vld [vmem:[%s5081_s10 + $0xd0] sm:$0xff] }
 0x1b7   : > { %3018 = vst.msk [vmem:[%s5081_s10 + $0x50] sm:$0xff] %vm216_vm3, %v2982_v8  ;;  %2625 = vst.msk [vmem:[%s5081_s10 + $0x78] sm:$0xff] %vm216_vm3, %v2589_v31  ;;  %v2983_v12 = vadd.f32 %v4672_v63, %v2711_v30  ;;  %v2709_v14 = vld [vmem:[%s5081_s10 + $0x48] sm:$0xff]  ;;  %v2326_v8 = vld [vmem:[%s5081_s10 + $0xc0] sm:$0xff] }
 0x1b8   : > { %3016 = vst.msk [vmem:[%s5081_s10 + $0x40] sm:$0xff] %vm216_vm3, %v2980_v4  ;;  %2623 = vst.msk [vmem:[%s5081_s10 + $0x68] sm:$0xff] %vm216_vm3, %v2587_v5  ;;  %v2981_v16 = vadd.f32 %v2864_v7, %v2709_v14  ;;  %v2329_v4 = vld [vmem:[%s5081_s10 + $0xd8] sm:$0xff] }
 0x1b9   : > { %3019 = vst.msk [vmem:[%s5081_s10 + $0x58] sm:$0xff] %vm216_vm3, %v2983_v12  ;;  %v4675_v11 = vpop.f32.mrb[104].mxu0 }
 0x1ba   : > { %3017 = vst.msk [vmem:[%s5081_s10 + $0x48] sm:$0xff] %vm216_vm3, %v2981_v16  ;;  %v4641_v42 = vpop.f32.mrb[104].mxu1  ;;  %v2877_v52 = vpop.f32.mrb[105].mxu0 }
 0x1bb   : > { %v2592_v18 = vadd.f32 %v4641_v42, %v2320_v32  ;;  %v2495_v20 = vpop.f32.mrb[105].mxu1  ;;  %v4676_v54 = vpop.f32.mrb[106].mxu0 }
 0x1bc   : > { %v2714_v21 = vld [vmem:[%s5081_s10 + $0x70] sm:$0xff]  ;;  %v2590_v0 = vadd.f32 %v2495_v20, %v2318_v19  ;;  %v4642_v23 = vpop.f32.mrb[106].mxu1  ;;  %v2880_v24 = vpop.f32.mrb[107].mxu0 }
 0x1bd   : > { %2628 = vst.msk [vmem:[%s5081_s10 + $0x90] sm:$0xff] %vm216_vm3, %v2592_v18  ;;  %v2986_v2 = vadd.f32 %v4675_v11, %v2714_v21  ;;  %v2712_v25 = vld [vmem:[%s5081_s10 + $0x60] sm:$0xff]  ;;  %v2593_v13 = vadd.f32 %v4642_v23, %v2321_v22  ;;  %v2498_v33 = vpop.f32.mrb[107].mxu1  ;;  %v2327_v11 = vld [vmem:[%s5081_s10 + $0xc8] sm:$0xff] }
 0x1be   : > { %2626 = vst.msk [vmem:[%s5081_s10 + $0x80] sm:$0xff] %vm216_vm3, %v2590_v0  ;;  %v2984_v34 = vadd.f32 %v2877_v52, %v2712_v25  ;;  %v2715_v15 = vld [vmem:[%s5081_s10 + $0x78] sm:$0xff]  ;;  %v2591_v35 = vadd.f32 %v2498_v33, %v2319_v28  ;;  %v2332_v0 = vld [vmem:[%s5081_s10 + $0xf0] sm:$0xff] }
 0x1bf   : > { %3022 = vst.msk [vmem:[%s5081_s10 + $0x70] sm:$0xff] %vm216_vm3, %v2986_v2  ;;  %2629 = vst.msk [vmem:[%s5081_s10 + $0x98] sm:$0xff] %vm216_vm3, %v2593_v13  ;;  %v2987_v27 = vadd.f32 %v4676_v54, %v2715_v15  ;;  %v2713_v36 = vld [vmem:[%s5081_s10 + $0x68] sm:$0xff]  ;;  %v2330_v2 = vld [vmem:[%s5081_s10 + $0xe0] sm:$0xff] }
 0x1c0   : > { %3020 = vst.msk [vmem:[%s5081_s10 + $0x60] sm:$0xff] %vm216_vm3, %v2984_v34  ;;  %2627 = vst.msk [vmem:[%s5081_s10 + $0x88] sm:$0xff] %vm216_vm3, %v2591_v35  ;;  %v2985_v37 = vadd.f32 %v2880_v24, %v2713_v36  ;;  %v2333_v34 = vld [vmem:[%s5081_s10 + $0xf8] sm:$0xff] }
 0x1c1   : > { %3023 = vst.msk [vmem:[%s5081_s10 + $0x78] sm:$0xff] %vm216_vm3, %v2987_v27  ;;  %v4679_v38 = vpop.f32.mrb[108].mxu0 }
 0x1c2   : > { %3021 = vst.msk [vmem:[%s5081_s10 + $0x68] sm:$0xff] %vm216_vm3, %v2985_v37  ;;  %v4645_v39 = vpop.f32.mrb[108].mxu1  ;;  %v2893_v40 = vpop.f32.mrb[109].mxu0 }
 0x1c3   : > { %v2596_v41 = vadd.f32 %v4645_v39, %v2324_v29  ;;  %v2511_v44 = vpop.f32.mrb[109].mxu1  ;;  %v4680_v45 = vpop.f32.mrb[110].mxu0 }
 0x1c4   : > { %v2718_v46 = vld [vmem:[%s5081_s10 + $0x90] sm:$0xff]  ;;  %v2594_v47 = vadd.f32 %v2511_v44, %v2322_v43  ;;  %v4646_v49 = vpop.f32.mrb[110].mxu1  ;;  %v2896_v50 = vpop.f32.mrb[111].mxu0 }
 0x1c5   : > { %2632 = vst.msk [vmem:[%s5081_s10 + $0xb0] sm:$0xff] %vm216_vm3, %v2596_v41  ;;  %v2990_v51 = vadd.f32 %v4679_v38, %v2718_v46  ;;  %v2716_v53 = vld [vmem:[%s5081_s10 + $0x80] sm:$0xff]  ;;  %v2597_v55 = vadd.f32 %v4646_v49, %v2325_v48  ;;  %v2514_v57 = vpop.f32.mrb[111].mxu1  ;;  %v2331_v38 = vld [vmem:[%s5081_s10 + $0xe8] sm:$0xff] }
 0x1c6   : > { %2630 = vst.msk [vmem:[%s5081_s10 + $0xa0] sm:$0xff] %vm216_vm3, %v2594_v47  ;;  %v2988_v58 = vadd.f32 %v2893_v40, %v2716_v53  ;;  %v2719_v59 = vld [vmem:[%s5081_s10 + $0x98] sm:$0xff]  ;;  %v2595_v60 = vadd.f32 %v2514_v57, %v2323_v56  ;;  %v2336_v47 = vld [vmem:[%s5081_s10 + $0x110] sm:$0xff] }
 0x1c7   : > { %3026 = vst.msk [vmem:[%s5081_s10 + $0x90] sm:$0xff] %vm216_vm3, %v2990_v51  ;;  %2633 = vst.msk [vmem:[%s5081_s10 + $0xb8] sm:$0xff] %vm216_vm3, %v2597_v55  ;;  %v2991_v61 = vadd.f32 %v4680_v45, %v2719_v59  ;;  %v2717_v62 = vld [vmem:[%s5081_s10 + $0x88] sm:$0xff]  ;;  %v2334_v51 = vld [vmem:[%s5081_s10 + $0x100] sm:$0xff] }
 0x1c8   : > { %3024 = vst.msk [vmem:[%s5081_s10 + $0x80] sm:$0xff] %vm216_vm3, %v2988_v58  ;;  %2631 = vst.msk [vmem:[%s5081_s10 + $0xa8] sm:$0xff] %vm216_vm3, %v2595_v60  ;;  %v2989_v63 = vadd.f32 %v2896_v50, %v2717_v62  ;;  %v2337_v58 = vld [vmem:[%s5081_s10 + $0x118] sm:$0xff] }
 0x1c9   : > { %3027 = vst.msk [vmem:[%s5081_s10 + $0x98] sm:$0xff] %vm216_vm3, %v2991_v61  ;;  %v4683_v1 = vpop.f32.mrb[112].mxu0 }
 0x1ca   : > { %3025 = vst.msk [vmem:[%s5081_s10 + $0x88] sm:$0xff] %vm216_vm3, %v2989_v63  ;;  %v4649_v26 = vpop.f32.mrb[112].mxu1  ;;  %v2909_v6 = vpop.f32.mrb[113].mxu0 }
 0x1cb   : > { %v2600_v7 = vadd.f32 %v4649_v26, %v2328_v3  ;;  %v2527_v9 = vpop.f32.mrb[113].mxu1  ;;  %v4684_v31 = vpop.f32.mrb[114].mxu0 }
 0x1cc   : > { %v2722_v10 = vld [vmem:[%s5081_s10 + $0xb0] sm:$0xff]  ;;  %v2598_v17 = vadd.f32 %v2527_v9, %v2326_v8  ;;  %v4650_v30 = vpop.f32.mrb[114].mxu1  ;;  %v2912_v5 = vpop.f32.mrb[115].mxu0 }
 0x1cd   : > { %2636 = vst.msk [vmem:[%s5081_s10 + $0xd0] sm:$0xff] %vm216_vm3, %v2600_v7  ;;  %v2994_v12 = vadd.f32 %v4683_v1, %v2722_v10  ;;  %v2720_v14 = vld [vmem:[%s5081_s10 + $0xa0] sm:$0xff]  ;;  %v2601_v16 = vadd.f32 %v4650_v30, %v2329_v4  ;;  %v2530_v32 = vpop.f32.mrb[115].mxu1  ;;  %v2335_v1 = vld [vmem:[%s5081_s10 + $0x108] sm:$0xff] }
 0x1ce   : > { %2634 = vst.msk [vmem:[%s5081_s10 + $0xc0] sm:$0xff] %vm216_vm3, %v2598_v17  ;;  %v2992_v42 = vadd.f32 %v2909_v6, %v2720_v14  ;;  %v2723_v52 = vld [vmem:[%s5081_s10 + $0xb8] sm:$0xff]  ;;  %v2599_v18 = vadd.f32 %v2530_v32, %v2327_v11  ;;  %v3100_v17 = vld [vmem:[%s5081_s10 + $0x10] sm:$0xff] }
 0x1cf   : > { %3030 = vst.msk [vmem:[%s5081_s10 + $0xb0] sm:$0xff] %vm216_vm3, %v2994_v12  ;;  %2637 = vst.msk [vmem:[%s5081_s10 + $0xd8] sm:$0xff] %vm216_vm3, %v2601_v16  ;;  %v2995_v19 = vadd.f32 %v4684_v31, %v2723_v52  ;;  %v2721_v20 = vld [vmem:[%s5081_s10 + $0xa8] sm:$0xff]  ;;  %v3098_v12 = vld [vmem:[%s5081_s10] sm:$0xff] }
 0x1d0   : > { %3028 = vst.msk [vmem:[%s5081_s10 + $0xa0] sm:$0xff] %vm216_vm3, %v2992_v42  ;;  %2635 = vst.msk [vmem:[%s5081_s10 + $0xc8] sm:$0xff] %vm216_vm3, %v2599_v18  ;;  %v2993_v54 = vadd.f32 %v2912_v5, %v2721_v20  ;;  %v3101_v42 = vld [vmem:[%s5081_s10 + $0x18] sm:$0xff] }
 0x1d1   : > { %3031 = vst.msk [vmem:[%s5081_s10 + $0xb8] sm:$0xff] %vm216_vm3, %v2995_v19  ;;  %v4687_v21 = vpop.f32.mrb[116].mxu0 }
 0x1d2   : > { %3029 = vst.msk [vmem:[%s5081_s10 + $0xa8] sm:$0xff] %vm216_vm3, %v2993_v54  ;;  %v4653_v22 = vpop.f32.mrb[116].mxu1  ;;  %v2925_v23 = vpop.f32.mrb[117].mxu0 }
 0x1d3   : > { %v2604_v24 = vadd.f32 %v4653_v22, %v2332_v0  ;;  %v2543_v25 = vpop.f32.mrb[117].mxu1  ;;  %v4688_v13 = vpop.f32.mrb[118].mxu0 }
 0x1d4   : > { %v2726_v28 = vld [vmem:[%s5081_s10 + $0xd0] sm:$0xff]  ;;  %v2602_v33 = vadd.f32 %v2543_v25, %v2330_v2  ;;  %v4654_v15 = vpop.f32.mrb[118].mxu1  ;;  %v2928_v35 = vpop.f32.mrb[119].mxu0 }
 0x1d5   : > { %2640 = vst.msk [vmem:[%s5081_s10 + $0xf0] sm:$0xff] %vm216_vm3, %v2604_v24  ;;  %v2998_v27 = vadd.f32 %v4687_v21, %v2726_v28  ;;  %v2724_v36 = vld [vmem:[%s5081_s10 + $0xc0] sm:$0xff]  ;;  %v2605_v37 = vadd.f32 %v4654_v15, %v2333_v34  ;;  %v2546_v29 = vpop.f32.mrb[119].mxu1  ;;  %v3099_v21 = vld [vmem:[%s5081_s10 + $0x8] sm:$0xff] }
 0x1d6   : > { %2638 = vst.msk [vmem:[%s5081_s10 + $0xe0] sm:$0xff] %vm216_vm3, %v2602_v33  ;;  %v2996_v39 = vadd.f32 %v2925_v23, %v2724_v36  ;;  %v2727_v40 = vld [vmem:[%s5081_s10 + $0xd8] sm:$0xff]  ;;  %v2603_v41 = vadd.f32 %v2546_v29, %v2331_v38  ;;  %v3104_v33 = vld [vmem:[%s5081_s10 + $0x30] sm:$0xff] }
 0x1d7   : > { %3034 = vst.msk [vmem:[%s5081_s10 + $0xd0] sm:$0xff] %vm216_vm3, %v2998_v27  ;;  %2641 = vst.msk [vmem:[%s5081_s10 + $0xf8] sm:$0xff] %vm216_vm3, %v2605_v37  ;;  %v2999_v43 = vadd.f32 %v4688_v13, %v2727_v40  ;;  %v2725_v44 = vld [vmem:[%s5081_s10 + $0xc8] sm:$0xff]  ;;  %v3102_v27 = vld [vmem:[%s5081_s10 + $0x20] sm:$0xff] }
 0x1d8   : > { %3032 = vst.msk [vmem:[%s5081_s10 + $0xc0] sm:$0xff] %vm216_vm3, %v2996_v39  ;;  %2639 = vst.msk [vmem:[%s5081_s10 + $0xe8] sm:$0xff] %vm216_vm3, %v2603_v41  ;;  %v2997_v45 = vadd.f32 %v2928_v35, %v2725_v44  ;;  %v3105_v39 = vld [vmem:[%s5081_s10 + $0x38] sm:$0xff] }
 0x1d9   : > { %3035 = vst.msk [vmem:[%s5081_s10 + $0xd8] sm:$0xff] %vm216_vm3, %v2999_v43  ;;  %v4691_v46 = vpop.f32.mrb[120].mxu0 }
 0x1da   : > { %3033 = vst.msk [vmem:[%s5081_s10 + $0xc8] sm:$0xff] %vm216_vm3, %v2997_v45  ;;  %v4657_v48 = vpop.f32.mrb[120].mxu1  ;;  %v2941_v49 = vpop.f32.mrb[121].mxu0 }
 0x1db   : > { %v2608_v50 = vadd.f32 %v4657_v48, %v2336_v47  ;;  %v2559_v53 = vpop.f32.mrb[121].mxu1  ;;  %v4692_v55 = vpop.f32.mrb[122].mxu0 }
 0x1dc   : > { %v2730_v56 = vld [vmem:[%s5081_s10 + $0xf0] sm:$0xff]  ;;  %v2606_v57 = vadd.f32 %v2559_v53, %v2334_v51  ;;  %v4658_v59 = vpop.f32.mrb[122].mxu1  ;;  %v2944_v60 = vpop.f32.mrb[123].mxu0 }
 0x1dd   : > { %2644 = vst.msk [vmem:[%s5081_s10 + $0x110] sm:$0xff] %vm216_vm3, %v2608_v50  ;;  %v3002_v61 = vadd.f32 %v4691_v46, %v2730_v56  ;;  %v2728_v62 = vld [vmem:[%s5081_s10 + $0xe0] sm:$0xff]  ;;  %v2609_v63 = vadd.f32 %v4658_v59, %v2337_v58  ;;  %v2562_v3 = vpop.f32.mrb[123].mxu1  ;;  %v3103_v46 = vld [vmem:[%s5081_s10 + $0x28] sm:$0xff] }
 0x1de   : > { %2642 = vst.msk [vmem:[%s5081_s10 + $0x100] sm:$0xff] %vm216_vm3, %v2606_v57  ;;  %v3000_v26 = vadd.f32 %v2941_v49, %v2728_v62  ;;  %v2731_v6 = vld [vmem:[%s5081_s10 + $0xf8] sm:$0xff]  ;;  %v2607_v7 = vadd.f32 %v2562_v3, %v2335_v1  ;;  %v3108_v57 = vld [vmem:[%s5081_s10 + $0x50] sm:$0xff]  ;;  %v6298_v1 = vld [vmem:[%s6633_s2] ss:$0 sm:$0xff] }
 0x1df   : > { %3038 = vst.msk [vmem:[%s5081_s10 + $0xf0] sm:$0xff] %vm216_vm3, %v3002_v61  ;;  %2645 = vst.msk [vmem:[%s5081_s10 + $0x118] sm:$0xff] %vm216_vm3, %v2609_v63  ;;  %v3003_v8 = vadd.f32 %v4692_v55, %v2731_v6  ;;  %v2729_v9 = vld [vmem:[%s5081_s10 + $0xe8] sm:$0xff]  ;;  %v3106_v61 = vld [vmem:[%s5081_s10 + $0x40] sm:$0xff] }
 0x1e0   : > { %3036 = vst.msk [vmem:[%s5081_s10 + $0xe0] sm:$0xff] %vm216_vm3, %v3000_v26  ;;  %2643 = vst.msk [vmem:[%s5081_s10 + $0x108] sm:$0xff] %vm216_vm3, %v2607_v7  ;;  %v3001_v31 = vadd.f32 %v2944_v60, %v2729_v9  ;;  %v3109_v6 = vld [vmem:[%s5081_s10 + $0x58] sm:$0xff] }
 0x1e1   : > { %3039 = vst.msk [vmem:[%s5081_s10 + $0xf8] sm:$0xff] %vm216_vm3, %v3003_v8  ;;  %v4695_v10 = vpop.f32.mrb[124].mxu0 }
 0x1e2   : > { %3037 = vst.msk [vmem:[%s5081_s10 + $0xe8] sm:$0xff] %vm216_vm3, %v3001_v31  ;;  %v4701_v4 = vpop.f32.mrb[124].mxu1  ;;  %v2957_v30 = vpop.f32.mrb[125].mxu0 }
 0x1e3   : > { %v3372_v5 = vadd.f32 %v4701_v4, %v3100_v17  ;;  %v3227_v14 = vpop.f32.mrb[125].mxu1  ;;  %v4696_v16 = vpop.f32.mrb[126].mxu0  ;;  %v3107_v17 = vld [vmem:[%s5081_s10 + $0x48] sm:$0xff] }
 0x1e4   : > { %v2734_v11 = vld [vmem:[%s5081_s10 + $0x110] sm:$0xff]  ;;  %v3370_v32 = vadd.f32 %v3227_v14, %v3098_v12  ;;  %v4702_v52 = vpop.f32.mrb[126].mxu1  ;;  %v2960_v18 = vpop.f32.mrb[127].mxu0 }
 0x1e5   : > { %v3006_v19 = vadd.f32 %v4695_v10, %v2734_v11  ;;  %3408 = vst.msk [vmem:[%s5081_s10 + $0x10] sm:$0xff] %vm216_vm3, %v3372_v5  ;;  %v2732_v20 = vld [vmem:[%s5081_s10 + $0x100] sm:$0xff]  ;;  %v3373_v54 = vadd.f32 %v4702_v52, %v3101_v42  ;;  %v3230_v0 = vpop.f32.mrb[127].mxu1 }
 0x1e6   : > { %v3004_v22 = vadd.f32 %v2957_v30, %v2732_v20  ;;  %3406 = vst.msk [vmem:[%s5081_s10] sm:$0xff] %vm216_vm3, %v3370_v32  ;;  %v2735_v23 = vld [vmem:[%s5081_s10 + $0x118] sm:$0xff]  ;;  %v3371_v24 = vadd.f32 %v3230_v0, %v3099_v21 }
 0x1e7   : > { %3042 = vst.msk [vmem:[%s5081_s10 + $0x110] sm:$0xff] %vm216_vm3, %v3006_v19  ;;  %v3007_v2 = vadd.f32 %v4696_v16, %v2735_v23  ;;  %3409 = vst.msk [vmem:[%s5081_s10 + $0x18] sm:$0xff] %vm216_vm3, %v3373_v54  ;;  %v2733_v25 = vld [vmem:[%s5081_s10 + $0x108] sm:$0xff] }
 0x1e8   : > { %3040 = vst.msk [vmem:[%s5081_s10 + $0x100] sm:$0xff] %vm216_vm3, %v3004_v22  ;;  %v3005_v13 = vadd.f32 %v2960_v18, %v2733_v25  ;;  %3407 = vst.msk [vmem:[%s5081_s10 + $0x8] sm:$0xff] %vm216_vm3, %v3371_v24  ;;  %v3112_v24 = vld [vmem:[%s5081_s10 + $0x70] sm:$0xff] }
 0x1e9   : > { %3043 = vst.msk [vmem:[%s5081_s10 + $0x118] sm:$0xff] %vm216_vm3, %v3007_v2  ;;  %v4739_v28 = vpop.f32.mrb[128].mxu0 }
 0x1ea   : > { %3041 = vst.msk [vmem:[%s5081_s10 + $0x108] sm:$0xff] %vm216_vm3, %v3005_v13  ;;  %v4705_v34 = vpop.f32.mrb[128].mxu1  ;;  %v3625_v15 = vpop.f32.mrb[129].mxu0 }
 0x1eb   : > { %v3376_v35 = vadd.f32 %v4705_v34, %v3104_v33  ;;  %v3243_v36 = vpop.f32.mrb[129].mxu1  ;;  %v4740_v37 = vpop.f32.mrb[130].mxu0  ;;  %v3110_v33 = vld [vmem:[%s5081_s10 + $0x60] sm:$0xff] }
 0x1ec   : > { %v3498_v38 = vld [vmem:[%s5081_s10 + $0x10] sm:$0xff]  ;;  %v3374_v29 = vadd.f32 %v3243_v36, %v3102_v27  ;;  %v4706_v40 = vpop.f32.mrb[130].mxu1  ;;  %v3628_v41 = vpop.f32.mrb[131].mxu0 }
 0x1ed   : > { %3412 = vst.msk [vmem:[%s5081_s10 + $0x30] sm:$0xff] %vm216_vm3, %v3376_v35  ;;  %v3770_v43 = vadd.f32 %v4739_v28, %v3498_v38  ;;  %v3496_v44 = vld [vmem:[%s5081_s10] sm:$0xff]  ;;  %v3377_v45 = vadd.f32 %v4706_v40, %v3105_v39  ;;  %v3246_v47 = vpop.f32.mrb[131].mxu1 }
 0x1ee   : > { %3410 = vst.msk [vmem:[%s5081_s10 + $0x20] sm:$0xff] %vm216_vm3, %v3374_v29  ;;  %v3768_v48 = vadd.f32 %v3625_v15, %v3496_v44  ;;  %v3499_v49 = vld [vmem:[%s5081_s10 + $0x18] sm:$0xff]  ;;  %v3375_v50 = vadd.f32 %v3246_v47, %v3103_v46 }
 0x1ef   : > { %3806 = vst.msk [vmem:[%s5081_s10 + $0x10] sm:$0xff] %vm216_vm3, %v3770_v43  ;;  %3413 = vst.msk [vmem:[%s5081_s10 + $0x38] sm:$0xff] %vm216_vm3, %v3377_v45  ;;  %v3771_v51 = vadd.f32 %v4740_v37, %v3499_v49  ;;  %v3497_v53 = vld [vmem:[%s5081_s10 + $0x8] sm:$0xff]  ;;  %v3113_v37 = vld [vmem:[%s5081_s10 + $0x78] sm:$0xff] }
 0x1f0   : > { %3804 = vst.msk [vmem:[%s5081_s10] sm:$0xff] %vm216_vm3, %v3768_v48  ;;  %3411 = vst.msk [vmem:[%s5081_s10 + $0x28] sm:$0xff] %vm216_vm3, %v3375_v50  ;;  %v3769_v55 = vadd.f32 %v3628_v41, %v3497_v53  ;;  %v3111_v43 = vld [vmem:[%s5081_s10 + $0x68] sm:$0xff] }
 0x1f1   : > { %3807 = vst.msk [vmem:[%s5081_s10 + $0x18] sm:$0xff] %vm216_vm3, %v3771_v51  ;;  %v4743_v56 = vpop.f32.mrb[132].mxu0 }
 0x1f2   : > { %3805 = vst.msk [vmem:[%s5081_s10 + $0x8] sm:$0xff] %vm216_vm3, %v3769_v55  ;;  %v4709_v58 = vpop.f32.mrb[132].mxu1  ;;  %v3641_v59 = vpop.f32.mrb[133].mxu0 }
 0x1f3   : > { %v3380_v60 = vadd.f32 %v4709_v58, %v3108_v57  ;;  %v3259_v62 = vpop.f32.mrb[133].mxu1  ;;  %v4744_v63 = vpop.f32.mrb[134].mxu0 }
 0x1f4   : > { %v3502_v3 = vld [vmem:[%s5081_s10 + $0x30] sm:$0xff]  ;;  %v3378_v26 = vadd.f32 %v3259_v62, %v3106_v61  ;;  %v4710_v7 = vpop.f32.mrb[134].mxu1  ;;  %v3644_v8 = vpop.f32.mrb[135].mxu0 }
 0x1f5   : > { %3416 = vst.msk [vmem:[%s5081_s10 + $0x50] sm:$0xff] %vm216_vm3, %v3380_v60  ;;  %v3774_v9 = vadd.f32 %v4743_v56, %v3502_v3  ;;  %v3500_v31 = vld [vmem:[%s5081_s10 + $0x20] sm:$0xff]  ;;  %v3381_v10 = vadd.f32 %v4710_v7, %v3109_v6  ;;  %v3262_v4 = vpop.f32.mrb[135].mxu1  ;;  %v3116_v3 = vld [vmem:[%s5081_s10 + $0x90] sm:$0xff] }
 0x1f6   : > { %v3845_v30 = vld [vmem:[%s5081_s10 + $0x10] sm:$0xff]  ;;  %3414 = vst.msk [vmem:[%s5081_s10 + $0x40] sm:$0xff] %vm216_vm3, %v3378_v26  ;;  %v3772_v5 = vadd.f32 %v3641_v59, %v3500_v31  ;;  %v3503_v12 = vld [vmem:[%s5081_s10 + $0x38] sm:$0xff]  ;;  %v3379_v14 = vadd.f32 %v3262_v4, %v3107_v17 }
 0x1f7   : > { %v3888_v16 = vadd.f32 %v6298_v1, %v3845_v30  ;;  %v3843_v11 = vld [vmem:[%s5081_s10] sm:$0xff]  ;;  %3810 = vst.msk [vmem:[%s5081_s10 + $0x30] sm:$0xff] %vm216_vm3, %v3774_v9  ;;  %3417 = vst.msk [vmem:[%s5081_s10 + $0x58] sm:$0xff] %vm216_vm3, %v3381_v10  ;;  %v3775_v32 = vadd.f32 %v4744_v63, %v3503_v12  ;;  %v3501_v42 = vld [vmem:[%s5081_s10 + $0x28] sm:$0xff] }
 0x1f8   : > { %v3886_v52 = vadd.f32 %v6298_v1, %v3843_v11  ;;  %v3846_v18 = vld [vmem:[%s5081_s10 + $0x18] sm:$0xff]  ;;  %3808 = vst.msk [vmem:[%s5081_s10 + $0x20] sm:$0xff] %vm216_vm3, %v3772_v5  ;;  %3415 = vst.msk [vmem:[%s5081_s10 + $0x48] sm:$0xff] %vm216_vm3, %v3379_v14  ;;  %v3773_v19 = vadd.f32 %v3644_v8, %v3501_v42  ;;  %v3114_v9 = vld [vmem:[%s5081_s10 + $0x80] sm:$0xff] }
 0x1f9   : > { %v3924_v20 = vmax.f32 %v3888_v16, 0.0  ;;  %v3889_v54 = vadd.f32 %v6298_v1, %v3846_v18  ;;  %v3844_v21 = vld [vmem:[%s5081_s10 + $0x8] sm:$0xff]  ;;  %3811 = vst.msk [vmem:[%s5081_s10 + $0x38] sm:$0xff] %vm216_vm3, %v3775_v32  ;;  %v4747_v0 = vpop.f32.mrb[136].mxu0  ;;  %v3117_v5 = vld [vmem:[%s5081_s10 + $0x98] sm:$0xff] }
 0x1fa   : > { %v3922_v22 = vmax.f32 %v3886_v52, 0.0  ;;  %v3887_v23 = vadd.f32 %v6298_v1, %v3844_v21  ;;  %3809 = vst.msk [vmem:[%s5081_s10 + $0x28] sm:$0xff] %vm216_vm3, %v3773_v19  ;;  %v4713_v2 = vpop.f32.mrb[136].mxu1  ;;  %v3657_v25 = vpop.f32.mrb[137].mxu0  ;;  %v3115_v42 = vld [vmem:[%s5081_s10 + $0x88] sm:$0xff] }
 0x1fb   : > { %3960 = vst.msk [vmem:[%s5081_s10 + $0x10] sm:$0xff] %vm216_vm3, %v3924_v20  ;;  %v3925_v13 = vmax.f32 %v3889_v54, 0.0  ;;  %v3384_v28 = vadd.f32 %v4713_v2, %v3112_v24  ;;  %v3275_v34 = vpop.f32.mrb[137].mxu1  ;;  %v4748_v15 = vpop.f32.mrb[138].mxu0 }
 0x1fc   : > { %3958 = vst.msk [vmem:[%s5081_s10] sm:$0xff] %vm216_vm3, %v3922_v22  ;;  %v3923_v35 = vmax.f32 %v3887_v23, 0.0  ;;  %v3506_v27 = vld [vmem:[%s5081_s10 + $0x50] sm:$0xff]  ;;  %v3382_v36 = vadd.f32 %v3275_v34, %v3110_v33  ;;  %v4714_v38 = vpop.f32.mrb[138].mxu1  ;;  %v3660_v29 = vpop.f32.mrb[139].mxu0 }
 0x1fd   : > { %3961 = vst.msk [vmem:[%s5081_s10 + $0x18] sm:$0xff] %vm216_vm3, %v3925_v13  ;;  %3420 = vst.msk [vmem:[%s5081_s10 + $0x70] sm:$0xff] %vm216_vm3, %v3384_v28  ;;  %v3778_v39 = vadd.f32 %v4747_v0, %v3506_v27  ;;  %v3504_v40 = vld [vmem:[%s5081_s10 + $0x40] sm:$0xff]  ;;  %v3385_v41 = vadd.f32 %v4714_v38, %v3113_v37  ;;  %v3278_v44 = vpop.f32.mrb[139].mxu1  ;;  %v3120_v27 = vld [vmem:[%s5081_s10 + $0xb0] sm:$0xff] }
 0x1fe   : > { %3959 = vst.msk [vmem:[%s5081_s10 + $0x8] sm:$0xff] %vm216_vm3, %v3923_v35  ;;  %v3849_v45 = vld [vmem:[%s5081_s10 + $0x30] sm:$0xff]  ;;  %3418 = vst.msk [vmem:[%s5081_s10 + $0x60] sm:$0xff] %vm216_vm3, %v3382_v36  ;;  %v3776_v46 = vadd.f32 %v3657_v25, %v3504_v40  ;;  %v3507_v47 = vld [vmem:[%s5081_s10 + $0x58] sm:$0xff]  ;;  %v3383_v48 = vadd.f32 %v3278_v44, %v3111_v43 }
 0x1ff   : > { %v3892_v49 = vadd.f32 %v6298_v1, %v3849_v45  ;;  %v3847_v50 = vld [vmem:[%s5081_s10 + $0x20] sm:$0xff]  ;;  %3814 = vst.msk [vmem:[%s5081_s10 + $0x50] sm:$0xff] %vm216_vm3, %v3778_v39  ;;  %3421 = vst.msk [vmem:[%s5081_s10 + $0x78] sm:$0xff] %vm216_vm3, %v3385_v41  ;;  %v3779_v51 = vadd.f32 %v4748_v15, %v3507_v47  ;;  %v3505_v53 = vld [vmem:[%s5081_s10 + $0x48] sm:$0xff] }
 0x200   : > { %v3890_v55 = vadd.f32 %v6298_v1, %v3847_v50  ;;  %v3850_v56 = vld [vmem:[%s5081_s10 + $0x38] sm:$0xff]  ;;  %3812 = vst.msk [vmem:[%s5081_s10 + $0x40] sm:$0xff] %vm216_vm3, %v3776_v46  ;;  %3419 = vst.msk [vmem:[%s5081_s10 + $0x68] sm:$0xff] %vm216_vm3, %v3383_v48  ;;  %v3777_v57 = vadd.f32 %v3660_v29, %v3505_v53  ;;  %v3118_v39 = vld [vmem:[%s5081_s10 + $0xa0] sm:$0xff] }
 0x201   : > { %v3928_v58 = vmax.f32 %v3892_v49, 0.0  ;;  %v3893_v59 = vadd.f32 %v6298_v1, %v3850_v56  ;;  %v3848_v60 = vld [vmem:[%s5081_s10 + $0x28] sm:$0xff]  ;;  %3815 = vst.msk [vmem:[%s5081_s10 + $0x58] sm:$0xff] %vm216_vm3, %v3779_v51  ;;  %v4751_v61 = vpop.f32.mrb[140].mxu0  ;;  %v3121_v46 = vld [vmem:[%s5081_s10 + $0xb8] sm:$0xff] }
 0x202   : > { %v3926_v62 = vmax.f32 %v3890_v55, 0.0  ;;  %v3891_v63 = vadd.f32 %v6298_v1, %v3848_v60  ;;  %3813 = vst.msk [vmem:[%s5081_s10 + $0x48] sm:$0xff] %vm216_vm3, %v3777_v57  ;;  %v4717_v26 = vpop.f32.mrb[140].mxu1  ;;  %v3673_v6 = vpop.f32.mrb[141].mxu0  ;;  %v3119_v53 = vld [vmem:[%s5081_s10 + $0xa8] sm:$0xff] }
 0x203   : > { %3964 = vst.msk [vmem:[%s5081_s10 + $0x30] sm:$0xff] %vm216_vm3, %v3928_v58  ;;  %v3929_v7 = vmax.f32 %v3893_v59, 0.0  ;;  %v3388_v8 = vadd.f32 %v4717_v26, %v3116_v3  ;;  %v3291_v31 = vpop.f32.mrb[141].mxu1  ;;  %v4752_v10 = vpop.f32.mrb[142].mxu0 }
 0x204   : > { %3962 = vst.msk [vmem:[%s5081_s10 + $0x20] sm:$0xff] %vm216_vm3, %v3926_v62  ;;  %v3927_v17 = vmax.f32 %v3891_v63, 0.0  ;;  %v3510_v4 = vld [vmem:[%s5081_s10 + $0x70] sm:$0xff]  ;;  %v3386_v30 = vadd.f32 %v3291_v31, %v3114_v9  ;;  %v4718_v12 = vpop.f32.mrb[142].mxu1  ;;  %v3676_v14 = vpop.f32.mrb[143].mxu0 }
 0x205   : > { %3965 = vst.msk [vmem:[%s5081_s10 + $0x38] sm:$0xff] %vm216_vm3, %v3929_v7  ;;  %3424 = vst.msk [vmem:[%s5081_s10 + $0x90] sm:$0xff] %vm216_vm3, %v3388_v8  ;;  %v3782_v16 = vadd.f32 %v4751_v61, %v3510_v4  ;;  %v3508_v11 = vld [vmem:[%s5081_s10 + $0x60] sm:$0xff]  ;;  %v3389_v32 = vadd.f32 %v4718_v12, %v3117_v5  ;;  %v3294_v52 = vpop.f32.mrb[143].mxu1  ;;  %v3124_v4 = vld [vmem:[%s5081_s10 + $0xd0] sm:$0xff] }
 0x206   : > { %3963 = vst.msk [vmem:[%s5081_s10 + $0x28] sm:$0xff] %vm216_vm3, %v3927_v17  ;;  %v3853_v18 = vld [vmem:[%s5081_s10 + $0x50] sm:$0xff]  ;;  %3422 = vst.msk [vmem:[%s5081_s10 + $0x80] sm:$0xff] %vm216_vm3, %v3386_v30  ;;  %v3780_v19 = vadd.f32 %v3673_v6, %v3508_v11  ;;  %v3511_v20 = vld [vmem:[%s5081_s10 + $0x78] sm:$0xff]  ;;  %v3387_v54 = vadd.f32 %v3294_v52, %v3115_v42 }
 0x207   : > { %v3896_v21 = vadd.f32 %v6298_v1, %v3853_v18  ;;  %v3851_v0 = vld [vmem:[%s5081_s10 + $0x40] sm:$0xff]  ;;  %3818 = vst.msk [vmem:[%s5081_s10 + $0x70] sm:$0xff] %vm216_vm3, %v3782_v16  ;;  %3425 = vst.msk [vmem:[%s5081_s10 + $0x98] sm:$0xff] %vm216_vm3, %v3389_v32  ;;  %v3783_v22 = vadd.f32 %v4752_v10, %v3511_v20  ;;  %v3509_v23 = vld [vmem:[%s5081_s10 + $0x68] sm:$0xff] }
 0x208   : > { %v3894_v24 = vadd.f32 %v6298_v1, %v3851_v0  ;;  %v3854_v2 = vld [vmem:[%s5081_s10 + $0x58] sm:$0xff]  ;;  %3816 = vst.msk [vmem:[%s5081_s10 + $0x60] sm:$0xff] %vm216_vm3, %v3780_v19  ;;  %3423 = vst.msk [vmem:[%s5081_s10 + $0x88] sm:$0xff] %vm216_vm3, %v3387_v54  ;;  %v3781_v25 = vadd.f32 %v3676_v14, %v3509_v23  ;;  %v3122_v16 = vld [vmem:[%s5081_s10 + $0xc0] sm:$0xff] }
 0x209   : > { %v3932_v13 = vmax.f32 %v3896_v21, 0.0  ;;  %v3897_v28 = vadd.f32 %v6298_v1, %v3854_v2  ;;  %v3852_v33 = vld [vmem:[%s5081_s10 + $0x48] sm:$0xff]  ;;  %3819 = vst.msk [vmem:[%s5081_s10 + $0x78] sm:$0xff] %vm216_vm3, %v3783_v22  ;;  %v4755_v34 = vpop.f32.mrb[144].mxu0  ;;  %v3125_v19 = vld [vmem:[%s5081_s10 + $0xd8] sm:$0xff] }
 0x20a   : > { %v3930_v15 = vmax.f32 %v3894_v24, 0.0  ;;  %v3895_v35 = vadd.f32 %v6298_v1, %v3852_v33  ;;  %3817 = vst.msk [vmem:[%s5081_s10 + $0x68] sm:$0xff] %vm216_vm3, %v3781_v25  ;;  %v4721_v36 = vpop.f32.mrb[144].mxu1  ;;  %v3689_v37 = vpop.f32.mrb[145].mxu0  ;;  %v3123_v23 = vld [vmem:[%s5081_s10 + $0xc8] sm:$0xff] }
 0x20b   : > { %3968 = vst.msk [vmem:[%s5081_s10 + $0x50] sm:$0xff] %vm216_vm3, %v3932_v13  ;;  %v3933_v38 = vmax.f32 %v3897_v28, 0.0  ;;  %v3392_v29 = vadd.f32 %v4721_v36, %v3120_v27  ;;  %v3307_v40 = vpop.f32.mrb[145].mxu1  ;;  %v4756_v41 = vpop.f32.mrb[146].mxu0 }
 0x20c   : > { %3966 = vst.msk [vmem:[%s5081_s10 + $0x40] sm:$0xff] %vm216_vm3, %v3930_v15  ;;  %v3931_v43 = vmax.f32 %v3895_v35, 0.0  ;;  %v3514_v44 = vld [vmem:[%s5081_s10 + $0x90] sm:$0xff]  ;;  %v3390_v45 = vadd.f32 %v3307_v40, %v3118_v39  ;;  %v4722_v47 = vpop.f32.mrb[146].mxu1  ;;  %v3692_v48 = vpop.f32.mrb[147].mxu0 }
 0x20d   : > { %3969 = vst.msk [vmem:[%s5081_s10 + $0x58] sm:$0xff] %vm216_vm3, %v3933_v38  ;;  %3428 = vst.msk [vmem:[%s5081_s10 + $0xb0] sm:$0xff] %vm216_vm3, %v3392_v29  ;;  %v3786_v49 = vadd.f32 %v4755_v34, %v3514_v44  ;;  %v3512_v50 = vld [vmem:[%s5081_s10 + $0x80] sm:$0xff]  ;;  %v3393_v51 = vadd.f32 %v4722_v47, %v3121_v46  ;;  %v3310_v55 = vpop.f32.mrb[147].mxu1  ;;  %v3128_v44 = vld [vmem:[%s5081_s10 + $0xf0] sm:$0xff] }
 0x20e   : > { %3967 = vst.msk [vmem:[%s5081_s10 + $0x48] sm:$0xff] %vm216_vm3, %v3931_v43  ;;  %v3857_v56 = vld [vmem:[%s5081_s10 + $0x70] sm:$0xff]  ;;  %3426 = vst.msk [vmem:[%s5081_s10 + $0xa0] sm:$0xff] %vm216_vm3, %v3390_v45  ;;  %v3784_v57 = vadd.f32 %v3689_v37, %v3512_v50  ;;  %v3515_v58 = vld [vmem:[%s5081_s10 + $0x98] sm:$0xff]  ;;  %v3391_v59 = vadd.f32 %v3310_v55, %v3119_v53 }
 0x20f   : > { %v3900_v60 = vadd.f32 %v6298_v1, %v3857_v56  ;;  %v3855_v61 = vld [vmem:[%s5081_s10 + $0x60] sm:$0xff]  ;;  %3822 = vst.msk [vmem:[%s5081_s10 + $0x90] sm:$0xff] %vm216_vm3, %v3786_v49  ;;  %3429 = vst.msk [vmem:[%s5081_s10 + $0xb8] sm:$0xff] %vm216_vm3, %v3393_v51  ;;  %v3787_v62 = vadd.f32 %v4756_v41, %v3515_v58  ;;  %v3513_v63 = vld [vmem:[%s5081_s10 + $0x88] sm:$0xff] }
 0x210   : > { %v3898_v3 = vadd.f32 %v6298_v1, %v3855_v61  ;;  %v3858_v26 = vld [vmem:[%s5081_s10 + $0x78] sm:$0xff]  ;;  %3820 = vst.msk [vmem:[%s5081_s10 + $0x80] sm:$0xff] %vm216_vm3, %v3784_v57  ;;  %3427 = vst.msk [vmem:[%s5081_s10 + $0xa8] sm:$0xff] %vm216_vm3, %v3391_v59  ;;  %v3785_v6 = vadd.f32 %v3692_v48, %v3513_v63  ;;  %v3126_v49 = vld [vmem:[%s5081_s10 + $0xe0] sm:$0xff] }
 0x211   : > { %v3936_v7 = vmax.f32 %v3900_v60, 0.0  ;;  %v3901_v8 = vadd.f32 %v6298_v1, %v3858_v26  ;;  %v3856_v9 = vld [vmem:[%s5081_s10 + $0x68] sm:$0xff]  ;;  %3823 = vst.msk [vmem:[%s5081_s10 + $0x98] sm:$0xff] %vm216_vm3, %v3787_v62  ;;  %v4759_v31 = vpop.f32.mrb[148].mxu0  ;;  %v3129_v57 = vld [vmem:[%s5081_s10 + $0xf8] sm:$0xff] }
 0x212   : > { %v3934_v10 = vmax.f32 %v3898_v3, 0.0  ;;  %v3899_v17 = vadd.f32 %v6298_v1, %v3856_v9  ;;  %3821 = vst.msk [vmem:[%s5081_s10 + $0x88] sm:$0xff] %vm216_vm3, %v3785_v6  ;;  %v4725_v30 = vpop.f32.mrb[148].mxu1  ;;  %v3705_v5 = vpop.f32.mrb[149].mxu0  ;;  %v3127_v63 = vld [vmem:[%s5081_s10 + $0xe8] sm:$0xff] }
 0x213   : > { %3972 = vst.msk [vmem:[%s5081_s10 + $0x70] sm:$0xff] %vm216_vm3, %v3936_v7  ;;  %v3937_v12 = vmax.f32 %v3901_v8, 0.0  ;;  %v3396_v14 = vadd.f32 %v4725_v30, %v3124_v4  ;;  %v3323_v11 = vpop.f32.mrb[149].mxu1  ;;  %v4760_v32 = vpop.f32.mrb[150].mxu0 }
 0x214   : > { %3970 = vst.msk [vmem:[%s5081_s10 + $0x60] sm:$0xff] %vm216_vm3, %v3934_v10  ;;  %v3935_v42 = vmax.f32 %v3899_v17, 0.0  ;;  %v3518_v52 = vld [vmem:[%s5081_s10 + $0xb0] sm:$0xff]  ;;  %v3394_v18 = vadd.f32 %v3323_v11, %v3122_v16  ;;  %v4726_v20 = vpop.f32.mrb[150].mxu1  ;;  %v3708_v54 = vpop.f32.mrb[151].mxu0 }
 0x215   : > { %3973 = vst.msk [vmem:[%s5081_s10 + $0x78] sm:$0xff] %vm216_vm3, %v3937_v12  ;;  %3432 = vst.msk [vmem:[%s5081_s10 + $0xd0] sm:$0xff] %vm216_vm3, %v3396_v14  ;;  %v3790_v21 = vadd.f32 %v4759_v31, %v3518_v52  ;;  %v3516_v0 = vld [vmem:[%s5081_s10 + $0xa0] sm:$0xff]  ;;  %v3397_v22 = vadd.f32 %v4726_v20, %v3125_v19  ;;  %v3326_v24 = vpop.f32.mrb[151].mxu1  ;;  %v3132_v52 = vld [vmem:[%s5081_s10 + $0x110] sm:$0xff] }
 0x216   : > { %3971 = vst.msk [vmem:[%s5081_s10 + $0x68] sm:$0xff] %vm216_vm3, %v3935_v42  ;;  %v3861_v2 = vld [vmem:[%s5081_s10 + $0x90] sm:$0xff]  ;;  %3430 = vst.msk [vmem:[%s5081_s10 + $0xc0] sm:$0xff] %vm216_vm3, %v3394_v18  ;;  %v3788_v25 = vadd.f32 %v3705_v5, %v3516_v0  ;;  %v3519_v13 = vld [vmem:[%s5081_s10 + $0xb8] sm:$0xff]  ;;  %v3395_v28 = vadd.f32 %v3326_v24, %v3123_v23 }
 0x217   : > { %v3904_v33 = vadd.f32 %v6298_v1, %v3861_v2  ;;  %v3859_v34 = vld [vmem:[%s5081_s10 + $0x80] sm:$0xff]  ;;  %3826 = vst.msk [vmem:[%s5081_s10 + $0xb0] sm:$0xff] %vm216_vm3, %v3790_v21  ;;  %3433 = vst.msk [vmem:[%s5081_s10 + $0xd8] sm:$0xff] %vm216_vm3, %v3397_v22  ;;  %v3791_v15 = vadd.f32 %v4760_v32, %v3519_v13  ;;  %v3517_v35 = vld [vmem:[%s5081_s10 + $0xa8] sm:$0xff] }
 0x218   : > { %v3902_v27 = vadd.f32 %v6298_v1, %v3859_v34  ;;  %v3862_v36 = vld [vmem:[%s5081_s10 + $0x98] sm:$0xff]  ;;  %3824 = vst.msk [vmem:[%s5081_s10 + $0xa0] sm:$0xff] %vm216_vm3, %v3788_v25  ;;  %3431 = vst.msk [vmem:[%s5081_s10 + $0xc8] sm:$0xff] %vm216_vm3, %v3395_v28  ;;  %v3789_v37 = vadd.f32 %v3708_v54, %v3517_v35  ;;  %v3130_v21 = vld [vmem:[%s5081_s10 + $0x100] sm:$0xff] }
 0x219   : > { %v3940_v38 = vmax.f32 %v3904_v33, 0.0  ;;  %v3905_v29 = vadd.f32 %v6298_v1, %v3862_v36  ;;  %v3860_v39 = vld [vmem:[%s5081_s10 + $0x88] sm:$0xff]  ;;  %3827 = vst.msk [vmem:[%s5081_s10 + $0xb8] sm:$0xff] %vm216_vm3, %v3791_v15  ;;  %v4763_v40 = vpop.f32.mrb[152].mxu0  ;;  %v3133_v25 = vld [vmem:[%s5081_s10 + $0x118] sm:$0xff] }
 0x21a   : > { %v3938_v41 = vmax.f32 %v3902_v27, 0.0  ;;  %v3903_v43 = vadd.f32 %v6298_v1, %v3860_v39  ;;  %3825 = vst.msk [vmem:[%s5081_s10 + $0xa8] sm:$0xff] %vm216_vm3, %v3789_v37  ;;  %v4729_v45 = vpop.f32.mrb[152].mxu1  ;;  %v3721_v46 = vpop.f32.mrb[153].mxu0  ;;  %v3131_v35 = vld [vmem:[%s5081_s10 + $0x108] sm:$0xff] }
 0x21b   : > { %3976 = vst.msk [vmem:[%s5081_s10 + $0x90] sm:$0xff] %vm216_vm3, %v3940_v38  ;;  %v3941_v47 = vmax.f32 %v3905_v29, 0.0  ;;  %v3400_v48 = vadd.f32 %v4729_v45, %v3128_v44  ;;  %v3339_v50 = vpop.f32.mrb[153].mxu1  ;;  %v4764_v51 = vpop.f32.mrb[154].mxu0 }
 0x21c   : > { %3974 = vst.msk [vmem:[%s5081_s10 + $0x80] sm:$0xff] %vm216_vm3, %v3938_v41  ;;  %v3939_v53 = vmax.f32 %v3903_v43, 0.0  ;;  %v3522_v55 = vld [vmem:[%s5081_s10 + $0xd0] sm:$0xff]  ;;  %v3398_v56 = vadd.f32 %v3339_v50, %v3126_v49  ;;  %v4730_v58 = vpop.f32.mrb[154].mxu1  ;;  %v3724_v59 = vpop.f32.mrb[155].mxu0 }
 0x21d   : > { %3977 = vst.msk [vmem:[%s5081_s10 + $0x98] sm:$0xff] %vm216_vm3, %v3941_v47  ;;  %3436 = vst.msk [vmem:[%s5081_s10 + $0xf0] sm:$0xff] %vm216_vm3, %v3400_v48  ;;  %v3794_v60 = vadd.f32 %v4763_v40, %v3522_v55  ;;  %v3520_v61 = vld [vmem:[%s5081_s10 + $0xc0] sm:$0xff]  ;;  %v3401_v62 = vadd.f32 %v4730_v58, %v3129_v57  ;;  %v3342_v3 = vpop.f32.mrb[155].mxu1 }
 0x21e   : > { %3975 = vst.msk [vmem:[%s5081_s10 + $0x88] sm:$0xff] %vm216_vm3, %v3939_v53  ;;  %v3865_v26 = vld [vmem:[%s5081_s10 + $0xb0] sm:$0xff]  ;;  %3434 = vst.msk [vmem:[%s5081_s10 + $0xe0] sm:$0xff] %vm216_vm3, %v3398_v56  ;;  %v3792_v6 = vadd.f32 %v3721_v46, %v3520_v61  ;;  %v3523_v7 = vld [vmem:[%s5081_s10 + $0xd8] sm:$0xff]  ;;  %v3399_v8 = vadd.f32 %v3342_v3, %v3127_v63 }
 0x21f   : > { %v3908_v9 = vadd.f32 %v6298_v1, %v3865_v26  ;;  %v3863_v31 = vld [vmem:[%s5081_s10 + $0xa0] sm:$0xff]  ;;  %3830 = vst.msk [vmem:[%s5081_s10 + $0xd0] sm:$0xff] %vm216_vm3, %v3794_v60  ;;  %3437 = vst.msk [vmem:[%s5081_s10 + $0xf8] sm:$0xff] %vm216_vm3, %v3401_v62  ;;  %v3795_v10 = vadd.f32 %v4764_v51, %v3523_v7  ;;  %v3521_v17 = vld [vmem:[%s5081_s10 + $0xc8] sm:$0xff] }
 0x220   : > { %v3906_v4 = vadd.f32 %v6298_v1, %v3863_v31  ;;  %v3866_v30 = vld [vmem:[%s5081_s10 + $0xb8] sm:$0xff]  ;;  %3828 = vst.msk [vmem:[%s5081_s10 + $0xc0] sm:$0xff] %vm216_vm3, %v3792_v6  ;;  %3435 = vst.msk [vmem:[%s5081_s10 + $0xe8] sm:$0xff] %vm216_vm3, %v3399_v8  ;;  %v3793_v5 = vadd.f32 %v3724_v59, %v3521_v17 }
 0x221   : > { %v3944_v12 = vmax.f32 %v3908_v9, 0.0  ;;  %v3909_v14 = vadd.f32 %v6298_v1, %v3866_v30  ;;  %v3864_v16 = vld [vmem:[%s5081_s10 + $0xa8] sm:$0xff]  ;;  %3831 = vst.msk [vmem:[%s5081_s10 + $0xd8] sm:$0xff] %vm216_vm3, %v3795_v10  ;;  %v4767_v11 = vpop.f32.mrb[156].mxu0 }
 0x222   : > { %v3942_v32 = vmax.f32 %v3906_v4, 0.0  ;;  %v3907_v42 = vadd.f32 %v6298_v1, %v3864_v16  ;;  %3829 = vst.msk [vmem:[%s5081_s10 + $0xc8] sm:$0xff] %vm216_vm3, %v3793_v5  ;;  %v4733_v18 = vpop.f32.mrb[156].mxu1  ;;  %v3737_v19 = vpop.f32.mrb[157].mxu0 }
 0x223   : > { %3980 = vst.msk [vmem:[%s5081_s10 + $0xb0] sm:$0xff] %vm216_vm3, %v3944_v12  ;;  %v3945_v20 = vmax.f32 %v3909_v14, 0.0  ;;  %v3404_v54 = vadd.f32 %v4733_v18, %v3132_v52  ;;  %v3355_v0 = vpop.f32.mrb[157].mxu1  ;;  %v4768_v22 = vpop.f32.mrb[158].mxu0 }
 0x224   : > { %3978 = vst.msk [vmem:[%s5081_s10 + $0xa0] sm:$0xff] %vm216_vm3, %v3942_v32  ;;  %v3943_v23 = vmax.f32 %v3907_v42, 0.0  ;;  %v3526_v24 = vld [vmem:[%s5081_s10 + $0xf0] sm:$0xff]  ;;  %v3402_v2 = vadd.f32 %v3355_v0, %v3130_v21  ;;  %v4734_v13 = vpop.f32.mrb[158].mxu1  ;;  %v3740_v28 = vpop.f32.mrb[159].mxu0 }
 0x225   : > { %3981 = vst.msk [vmem:[%s5081_s10 + $0xb8] sm:$0xff] %vm216_vm3, %v3945_v20  ;;  %3440 = vst.msk [vmem:[%s5081_s10 + $0x110] sm:$0xff] %vm216_vm3, %v3404_v54  ;;  %v3798_v33 = vadd.f32 %v4767_v11, %v3526_v24  ;;  %v3524_v34 = vld [vmem:[%s5081_s10 + $0xe0] sm:$0xff]  ;;  %v3405_v15 = vadd.f32 %v4734_v13, %v3133_v25  ;;  %v3358_v27 = vpop.f32.mrb[159].mxu1 }
 0x226   : > { %3979 = vst.msk [vmem:[%s5081_s10 + $0xa8] sm:$0xff] %vm216_vm3, %v3943_v23  ;;  %v3869_v36 = vld [vmem:[%s5081_s10 + $0xd0] sm:$0xff]  ;;  %3438 = vst.msk [vmem:[%s5081_s10 + $0x100] sm:$0xff] %vm216_vm3, %v3402_v2  ;;  %v3796_v37 = vadd.f32 %v3737_v19, %v3524_v34  ;;  %v3527_v38 = vld [vmem:[%s5081_s10 + $0xf8] sm:$0xff]  ;;  %v3403_v29 = vadd.f32 %v3358_v27, %v3131_v35 }
 0x227   : > { %v3912_v39 = vadd.f32 %v6298_v1, %v3869_v36  ;;  %v3867_v40 = vld [vmem:[%s5081_s10 + $0xc0] sm:$0xff]  ;;  %3834 = vst.msk [vmem:[%s5081_s10 + $0xf0] sm:$0xff] %vm216_vm3, %v3798_v33  ;;  %3441 = vst.msk [vmem:[%s5081_s10 + $0x118] sm:$0xff] %vm216_vm3, %v3405_v15  ;;  %v3799_v41 = vadd.f32 %v4768_v22, %v3527_v38  ;;  %v3525_v43 = vld [vmem:[%s5081_s10 + $0xe8] sm:$0xff] }
 0x228   : > { %v3910_v44 = vadd.f32 %v6298_v1, %v3867_v40  ;;  %v3870_v45 = vld [vmem:[%s5081_s10 + $0xd8] sm:$0xff]  ;;  %3832 = vst.msk [vmem:[%s5081_s10 + $0xe0] sm:$0xff] %vm216_vm3, %v3796_v37  ;;  %3439 = vst.msk [vmem:[%s5081_s10 + $0x108] sm:$0xff] %vm216_vm3, %v3403_v29  ;;  %v3797_v46 = vadd.f32 %v3740_v28, %v3525_v43 }
 0x229   : > { %v3948_v47 = vmax.f32 %v3912_v39, 0.0  ;;  %v3913_v48 = vadd.f32 %v6298_v1, %v3870_v45  ;;  %v3868_v49 = vld [vmem:[%s5081_s10 + $0xc8] sm:$0xff]  ;;  %3835 = vst.msk [vmem:[%s5081_s10 + $0xf8] sm:$0xff] %vm216_vm3, %v3799_v41  ;;  %v4771_v50 = vpop.f32.mrb[160].mxu0 }
 0x22a   : > { %v3946_v51 = vmax.f32 %v3910_v44, 0.0  ;;  %v3911_v53 = vadd.f32 %v6298_v1, %v3868_v49  ;;  %3833 = vst.msk [vmem:[%s5081_s10 + $0xe8] sm:$0xff] %vm216_vm3, %v3797_v46  ;;  %v3753_v55 = vpop.f32.mrb[161].mxu0 }
 0x22b   : > { %3984 = vst.msk [vmem:[%s5081_s10 + $0xd0] sm:$0xff] %vm216_vm3, %v3948_v47  ;;  %v3949_v56 = vmax.f32 %v3913_v48, 0.0  ;;  %v4772_v57 = vpop.f32.mrb[162].mxu0 }
 0x22c   : > { %3982 = vst.msk [vmem:[%s5081_s10 + $0xc0] sm:$0xff] %vm216_vm3, %v3946_v51  ;;  %v3947_v58 = vmax.f32 %v3911_v53, 0.0  ;;  %v3530_v59 = vld [vmem:[%s5081_s10 + $0x110] sm:$0xff]  ;;  %v3756_v60 = vpop.f32.mrb[163].mxu0 }
 0x22d   : > { %3985 = vst.msk [vmem:[%s5081_s10 + $0xd8] sm:$0xff] %vm216_vm3, %v3949_v56  ;;  %v3802_v61 = vadd.f32 %v4771_v50, %v3530_v59  ;;  %v3528_v62 = vld [vmem:[%s5081_s10 + $0x100] sm:$0xff] }
 0x22e   : > { %3983 = vst.msk [vmem:[%s5081_s10 + $0xc8] sm:$0xff] %vm216_vm3, %v3947_v58  ;;  %v3873_v63 = vld [vmem:[%s5081_s10 + $0xf0] sm:$0xff]  ;;  %v3800_v3 = vadd.f32 %v3753_v55, %v3528_v62  ;;  %v3531_v26 = vld [vmem:[%s5081_s10 + $0x118] sm:$0xff] }
 0x22f   : > { %v3916_v6 = vadd.f32 %v6298_v1, %v3873_v63  ;;  %v3871_v7 = vld [vmem:[%s5081_s10 + $0xe0] sm:$0xff]  ;;  %3838 = vst.msk [vmem:[%s5081_s10 + $0x110] sm:$0xff] %vm216_vm3, %v3802_v61  ;;  %v3803_v8 = vadd.f32 %v4772_v57, %v3531_v26  ;;  %v3529_v9 = vld [vmem:[%s5081_s10 + $0x108] sm:$0xff] }
 0x230   : > { %v3914_v31 = vadd.f32 %v6298_v1, %v3871_v7  ;;  %v3874_v10 = vld [vmem:[%s5081_s10 + $0xf8] sm:$0xff]  ;;  %3836 = vst.msk [vmem:[%s5081_s10 + $0x100] sm:$0xff] %vm216_vm3, %v3800_v3  ;;  %v3801_v17 = vadd.f32 %v3756_v60, %v3529_v9 }
 0x231   : > { %v3952_v4 = vmax.f32 %v3916_v6, 0.0  ;;  %v3917_v30 = vadd.f32 %v6298_v1, %v3874_v10  ;;  %v3872_v5 = vld [vmem:[%s5081_s10 + $0xe8] sm:$0xff]  ;;  %3839 = vst.msk [vmem:[%s5081_s10 + $0x118] sm:$0xff] %vm216_vm3, %v3803_v8 }
 0x232   : > { %v3950_v12 = vmax.f32 %v3914_v31, 0.0  ;;  %v3915_v14 = vadd.f32 %v6298_v1, %v3872_v5  ;;  %3837 = vst.msk [vmem:[%s5081_s10 + $0x108] sm:$0xff] %vm216_vm3, %v3801_v17 }
 0x233   : > { %3988 = vst.msk [vmem:[%s5081_s10 + $0xf0] sm:$0xff] %vm216_vm3, %v3952_v4  ;;  %v3953_v16 = vmax.f32 %v3917_v30, 0.0 }
 0x234   : > { %3986 = vst.msk [vmem:[%s5081_s10 + $0xe0] sm:$0xff] %vm216_vm3, %v3950_v12  ;;  %v3951_v11 = vmax.f32 %v3915_v14, 0.0 }
 0x235   : > { %3989 = vst.msk [vmem:[%s5081_s10 + $0xf8] sm:$0xff] %vm216_vm3, %v3953_v16 }
 0x236   : > { %3987 = vst.msk [vmem:[%s5081_s10 + $0xe8] sm:$0xff] %vm216_vm3, %v3951_v11  ;;  %v3877_v32 = vld [vmem:[%s5081_s10 + $0x110] sm:$0xff] }
 0x237   : > { %v3920_v42 = vadd.f32 %v6298_v1, %v3877_v32  ;;  %v3875_v52 = vld [vmem:[%s5081_s10 + $0x100] sm:$0xff] }
 0x238   : > { %v3918_v18 = vadd.f32 %v6298_v1, %v3875_v52  ;;  %v3878_v19 = vld [vmem:[%s5081_s10 + $0x118] sm:$0xff] }
 0x239   : > { %v3956_v20 = vmax.f32 %v3920_v42, 0.0  ;;  %v3921_v54 = vadd.f32 %v6298_v1, %v3878_v19  ;;  %v3876_v21 = vld [vmem:[%s5081_s10 + $0x108] sm:$0xff] }
 0x23a   : > { %v3954_v0 = vmax.f32 %v3918_v18, 0.0  ;;  %v3919_v22 = vadd.f32 %v6298_v1, %v3876_v21 }
 0x23b   : > { %3992 = vst.msk [vmem:[%s5081_s10 + $0x110] sm:$0xff] %vm216_vm3, %v3956_v20  ;;  %v3957_v23 = vmax.f32 %v3921_v54, 0.0 }
 0x23c   : > { %3990 = vst.msk [vmem:[%s5081_s10 + $0x100] sm:$0xff] %vm216_vm3, %v3954_v0  ;;  %v3955_v24 = vmax.f32 %v3919_v22, 0.0 }
 0x23d   : > { %3993 = vst.msk [vmem:[%s5081_s10 + $0x118] sm:$0xff] %vm216_vm3, %v3957_v23 }
 0x23e   : > { %3991 = vst.msk [vmem:[%s5081_s10 + $0x108] sm:$0xff] %vm216_vm3, %v3955_v24 }
 0x23f PF: > { %s13_s14 = sadd.s32 1, %s4825_s14   ;;  %s6635_s12 = smov %s4821_s13 }
 0x240   : > { %p10_p5 = scmp.ge.s32.totalorder %s13_s14, 4   ;;  %s6636_s13 = smov %s6638_s15 }
 0x242   :  { %12 = sbr.rel (!%p10_p5) target bundleno = 2 (0x2), region = 81 }

</bundles_post_ra>
